<compile_context>
chip_gen: v7x
topology: tpu7x:2x2x1
jax: 0.10.0
libtpu: 0.0.40
codegen_flags: <defaults>
</compile_context>

<pallas_src>
import functools
import math

import jax
import jax.numpy as jnp
from jax.experimental import pallas as pl
from jax.experimental.pallas import tpu as pltpu

MIN_EXPERT_CAPACITY = 4
_MAX_UNROLLED_CHUNKS = 8   # static-unroll the one-hot loop only when short


def _capacities(group_size, num_gates, capacity_factor):
    cap = min(group_size, int(group_size * capacity_factor / num_gates))
    cap = max(cap, MIN_EXPERT_CAPACITY)
    # pad capacity so the flattened (expert, capacity) axis is a multiple of 128
    step = 128 // math.gcd(num_gates, 128)
    cap_pad = -(-cap // step) * step
    return cap, cap_pad


def _strict_lower_tri(n):
    r = jnp.arange(n)
    return (r[:, None] > r[None, :]).astype(jnp.bfloat16)


# --------------------------------------------------------------------------
# Shared gating math (runs inside both kernels, one group of N tokens)
# --------------------------------------------------------------------------
def _gating_math(x, probs, w, tri, *, eps, threshold, cap, cap_pad, num_gates):
    """Returns per-token (N,1) columns: gate_1, gate_2, mask_1_flat, mask_2_flat,
    slot_1, slot_2 (flattened expert*cap_pad+position) and the (1,1) loss partial."""
    N = x.shape[0]
    E = num_gates

    # raw_gates = softmax(x @ w_gating)    (exact divide -> tight aux loss)
    logits = jnp.dot(x, w, preferred_element_type=jnp.float32)
    logits = logits - jnp.max(logits, axis=-1, keepdims=True)
    ex = jnp.exp(logits)
    raw_gates = ex / jnp.sum(ex, axis=-1, keepdims=True)              # (N, E)

    e_iota = jax.lax.broadcasted_iota(jnp.int32, (N, E), 1)

    # top-1
    gate_1 = jnp.max(raw_gates, axis=-1, keepdims=True)
    index_1 = jnp.min(jnp.where(raw_gates >= gate_1, e_iota, E),
                      axis=-1, keepdims=True)
    mask_1 = (e_iota == index_1).astype(jnp.float32)                  # pre-capacity

    # top-2 (argmax with top-1 removed; always a different expert)
    gates_wo1 = raw_gates * (1.0 - mask_1)
    gate_2 = jnp.max(gates_wo1, axis=-1, keepdims=True)
    index_2 = jnp.min(jnp.where(gates_wo1 >= gate_2, e_iota, E),
                      axis=-1, keepdims=True)
    mask_2 = (e_iota == index_2).astype(jnp.float32)

    # renormalize (reciprocal on the EUP slot)
    inv_denom = pl.reciprocal(gate_1 + gate_2 + eps, approx=True)
    gate_1 = gate_1 * inv_denom
    gate_2 = gate_2 * inv_denom

    # aux load-balancing loss partial (uses pre-capacity, pre-policy mask_1):
    #   sum_e density_proxy[e] * density_1[e] = (1/N^2) sum_{n,e} rg * colsum(m1)
    col_sum_m1 = jnp.sum(mask_1, axis=0, keepdims=True)               # (1, E)
    lp = jnp.sum(raw_gates * col_sum_m1, axis=-1, keepdims=True)
    lp = jnp.sum(lp, axis=0, keepdims=True) * (1.0 / float(N * N))    # (1, 1)

    # second-expert policy == 'random': keep iff U(0,1) < gate_2 / threshold
    keep_2 = (probs < gate_2 * (1.0 / max(threshold, eps))).astype(jnp.float32)
    mask_2 = mask_2 * keep_2

    # exclusive cumsum along the group dim: strict-lower-tri bf16 MXU matmul,
    # both masks fused into one (N, 2E) RHS; exact 0/1 operands, f32 accumulate.
    masks_bf = jnp.concatenate([mask_1, mask_2], axis=-1).astype(jnp.bfloat16)
    cumsum = jnp.dot(tri, masks_bf, preferred_element_type=jnp.float32)  # (N, 2E)

    pos_1 = cumsum[:, :E] * mask_1
    mask_1_kept = mask_1 * (pos_1 < float(cap)).astype(jnp.float32)
    mask_1_count = jnp.sum(mask_1_kept, axis=0, keepdims=True)        # (1, E)

    pos_2 = (cumsum[:, E:] + mask_1_count) * mask_2
    mask_2_kept = mask_2 * (pos_2 < float(cap)).astype(jnp.float32)

    mask_1_flat = jnp.sum(mask_1_kept, axis=-1, keepdims=True)        # (N, 1)
    mask_2_flat = jnp.sum(mask_2_kept, axis=-1, keepdims=True)
    pos_1_tok = jnp.sum(pos_1, axis=-1, keepdims=True)
    pos_2_tok = jnp.sum(pos_2, axis=-1, keepdims=True)
    gate_1 = gate_1 * mask_1_flat
    gate_2 = gate_2 * mask_2_flat

    # flattened slot = expert * cap_pad + position.  Over-capacity / dropped
    # tokens carry zero gate & zero mask_flat, so whatever slot they alias
    # contributes nothing.
    slot_1 = index_1 * cap_pad + pos_1_tok.astype(jnp.int32)          # (N, 1)
    slot_2 = index_2 * cap_pad + pos_2_tok.astype(jnp.int32)
    return gate_1, gate_2, mask_1_flat, mask_2_flat, slot_1, slot_2, lp


def _chunk_loop(n_chunks, emit):
    """Static unroll for short loops, counted pl.loop otherwise (bounds vregs)."""
    if n_chunks <= _MAX_UNROLLED_CHUNKS:
        for c in range(n_chunks):
            emit(c * 128)
    else:
        @pl.loop(0, n_chunks)
        def _(c):
            emit(pl.multiple_of(c * 128, 128))


# --------------------------------------------------------------------------
# Kernel 1 (standalone): Top-2 gating -> dispatch / combine / loss
# --------------------------------------------------------------------------
def _top2_gating_kernel(tri_ref, probs_ref, x_ref, w_ref,
                        disp_ref, comb_ref, loss_ref, *,
                        eps, threshold, cap, cap_pad, num_gates):
    N = x_ref.shape[0]
    gate_1, gate_2, m1f, m2f, slot_1, slot_2, lp = _gating_math(
        x_ref[...], probs_ref[...], w_ref[...], tri_ref[...],
        eps=eps, threshold=threshold, cap=cap, cap_pad=cap_pad,
        num_gates=num_gates)
    loss_ref[0] = lp

    J = num_gates * cap_pad                           # multiple of 128
    base_iota = jax.lax.broadcasted_iota(jnp.int32, (N, 128), 1)

    def emit(j0):
        j_iota = base_iota + j0
        oh1 = (j_iota == slot_1).astype(jnp.float32)
        oh2 = (j_iota == slot_2).astype(jnp.float32)
        # slot_1 != slot_2 whenever both contributions are nonzero (top-2
        # expert differs from top-1; dropped tokens have zero gate/mask), so
        # one fused store per output is exact -- no read-modify-write.
        comb_ref[:, pl.ds(j0, 128)] = gate_1 * oh1 + gate_2 * oh2
        disp_ref[:, pl.ds(j0, 128)] = (m1f * oh1 + m2f * oh2).astype(jnp.bfloat16)

    _chunk_loop(J // 128, emit)


def _top2_gating_flat(x, w_gating, probs, *, eps=1e-9, second_threshold=0.2,
                      capacity_factor=1.25):
    """Flat, lane-padded gating tensors:
       dispatch (B*N, E*cap_pad) bf16, combine (B*N, E*cap_pad) f32, loss, cap, cap_pad."""
    B, N, D = x.shape
    E = w_gating.shape[-1]
    cap, cap_pad = _capacities(N, E, capacity_factor)
    J = E * cap_pad

    tri = _strict_lower_tri(N)                        # hoisted, resident constant
    x2 = x.reshape(B * N, D)
    probs2 = probs.reshape(B * N, 1)

    kernel = functools.partial(
        _top2_gating_kernel, eps=eps, threshold=second_threshold,
        cap=cap, cap_pad=cap_pad, num_gates=E)

    disp, comb, loss_part = pl.pallas_call(
        kernel,
        out_shape=(
            jax.ShapeDtypeStruct((B * N, J), jnp.bfloat16),   # dispatch (0/1)
            jax.ShapeDtypeStruct((B * N, J), jnp.float32),    # combine
            jax.ShapeDtypeStruct((B, 1, 1), jnp.float32),     # loss partials
        ),
        grid=(B,),
        in_specs=[
            pl.BlockSpec((N, N), lambda b: (0, 0)),   # tri (constant)
            pl.BlockSpec((N, 1), lambda b: (b, 0)),   # probs
            pl.BlockSpec((N, D), lambda b: (b, 0)),   # x
            pl.BlockSpec((D, E), lambda b: (0, 0)),   # w_gating (constant)
        ],
        out_specs=(
            pl.BlockSpec((N, J), lambda b: (b, 0)),
            pl.BlockSpec((N, J), lambda b: (b, 0)),
            pl.BlockSpec((1, 1, 1), lambda b: (b, 0, 0)),
        ),
        compiler_params=pltpu.CompilerParams(
            dimension_semantics=("parallel",)),
    )(tri, probs2, x2, w_gating)

    loss = loss_part.sum() / float(B * E) * float(E ** 2)
    return disp, comb, loss, cap, cap_pad


def top2_gating(x, w_gating, probs, **kwargs):
    """Top2Gating-compatible outputs: dispatch/combine (B, N, E, cap) f32, loss."""
    B, N, _ = x.shape
    E = w_gating.shape[-1]
    disp, comb, loss, cap, cap_pad = _top2_gating_flat(x, w_gating, probs, **kwargs)
    dispatch = disp.astype(jnp.float32).reshape(B, N, E, cap_pad)[..., :cap]
    combine = comb.reshape(B, N, E, cap_pad)[..., :cap]
    return dispatch, combine, loss


# --------------------------------------------------------------------------
# Kernel 2 (fused): gating -> dispatch gather -> expert FFN (ReLU) -> combine
# --------------------------------------------------------------------------
def _moe_fused_kernel(tri_ref, probs_ref, x_ref, w_ref, w1_ref, w2_ref,
                      o_ref, loss_ref,
                      ei_ref, eo_ref, comb_ref, *,
                      eps, threshold, cap, cap_pad, num_gates):
    N = x_ref.shape[0]
    x = x_ref[...]                                    # (N, D) f32
    gate_1, gate_2, m1f, m2f, slot_1, slot_2, lp = _gating_math(
        x, probs_ref[...], w_ref[...], tri_ref[...],
        eps=eps, threshold=threshold, cap=cap, cap_pad=cap_pad,
        num_gates=num_gates)
    loss_ref[0] = lp

    x_bf = x.astype(jnp.bfloat16)                     # bf16 MXU operand
    J = num_gates * cap_pad
    base_iota = jax.lax.broadcasted_iota(jnp.int32, (N, 128), 1)

    # Build combine (VMEM scratch, never hits HBM) and the expert inputs
    # (dispatch gather) one 128-slot chunk at a time; one store per output.
    def emit(j0):
        j_iota = base_iota + j0
        oh1 = (j_iota == slot_1).astype(jnp.float32)
        oh2 = (j_iota == slot_2).astype(jnp.float32)
        comb_ref[:, pl.ds(j0, 128)] = gate_1 * oh1 + gate_2 * oh2
        disp_c = (m1f * oh1 + m2f * oh2).astype(jnp.bfloat16)   # (N,128) exact 0/1
        # expert_inputs[j,:] = sum_n dispatch[n,j] * x[n,:]  (each slot holds at
        # most one token -> exact gather of bf16(x); bf16 store is lossless)
        ei_ref[pl.ds(j0, 128), :] = jax.lax.dot_general(
            disp_c, x_bf, (((0,), (0,)), ((), ())),
            preferred_element_type=jnp.float32).astype(jnp.bfloat16)

    _chunk_loop(J // 128, emit)

    # Per-expert ReLU FFN (bf16 operands, f32 accumulate).
    for e in range(num_gates):                        # static unroll (small E)
        lo = e * cap_pad
        h = jnp.dot(ei_ref[lo:lo + cap_pad, :], w1_ref[e],
                    preferred_element_type=jnp.float32)
        h = jnp.maximum(h, 0.0).astype(jnp.bfloat16)  # ReLU (MoE default)
        eo_ref[lo:lo + cap_pad, :] = jnp.dot(h, w2_ref[e],
                                             preferred_element_type=jnp.float32)

    # output[n,:] = sum_j combine[n,j] * expert_out[j,:]
    o_ref[...] = jnp.dot(comb_ref[...], eo_ref[...],
                         preferred_element_type=jnp.float32)


def moe_forward(x, w_gating, w1, w2, probs, *, second_threshold=0.2,
                capacity_factor=1.25, loss_coef=0.01, eps=1e-9):
    """MoE.forward (training mode: policy='random', threshold=0.2, cf=1.25)."""
    B, N, D = x.shape
    E = w_gating.shape[-1]
    H = w1.shape[-1]
    Dout = w2.shape[-1]
    cap, cap_pad = _capacities(N, E, capacity_factor)
    J = E * cap_pad

    tri = _strict_lower_tri(N)
    # bf16 expert weights: halves resident weight VMEM / HBM reads, f32 accumulate.
    w1_bf = w1.astype(jnp.bfloat16)
    w2_bf = w2.astype(jnp.bfloat16)

    kernel = functools.partial(
        _moe_fused_kernel, eps=eps, threshold=second_threshold,
        cap=cap, cap_pad=cap_pad, num_gates=E)

    out, loss_part = pl.pallas_call(
        kernel,
        out_shape=(
            jax.ShapeDtypeStruct((B * N, Dout), jnp.float32),
            jax.ShapeDtypeStruct((B, 1, 1), jnp.float32),
        ),
        grid=(B,),
        in_specs=[
            pl.BlockSpec((N, N), lambda b: (0, 0)),            # tri (constant)
            pl.BlockSpec((N, 1), lambda b: (b, 0)),            # probs
            pl.BlockSpec((N, D), lambda b: (b, 0)),            # x
            pl.BlockSpec((D, E), lambda b: (0, 0)),            # w_gating (constant)
            pl.BlockSpec((E, D, H), lambda b: (0, 0, 0)),      # w1 bf16 (constant)
            pl.BlockSpec((E, H, Dout), lambda b: (0, 0, 0)),   # w2 bf16 (constant)
        ],
        out_specs=(
            pl.BlockSpec((N, Dout), lambda b: (b, 0)),
            pl.BlockSpec((1, 1, 1), lambda b: (b, 0, 0)),
        ),
        scratch_shapes=[
            pltpu.VMEM((J, D), jnp.bfloat16),     # expert inputs (gathered bf16 x)
            pltpu.VMEM((J, Dout), jnp.float32),   # expert outputs
            pltpu.VMEM((N, J), jnp.float32),      # combine (never hits HBM)
        ],
        compiler_params=pltpu.CompilerParams(
            dimension_semantics=("parallel",)),
    )(tri, probs.reshape(B * N, 1), x.reshape(B * N, D), w_gating, w1_bf, w2_bf)

    loss = loss_part.sum() / float(B * E) * float(E ** 2)
    return out.reshape(B, N, Dout), loss * loss_coef


if __name__ == "__main__":
    B, N, D, E = 2, 128, 32, 8          # batch, group_size, dim, num_experts
    H = 4 * D                           # expert hidden dim (default input_dim*4)
    key = jax.random.PRNGKey(0)
    kx, kw, kp, k1, k2 = jax.random.split(key, 5)

    x = jax.random.normal(kx, (B, N, D), dtype=jnp.float32)
    w_gating = jax.random.normal(kw, (D, E), dtype=jnp.float32)       # torch.randn
    s1 = 1.0 / math.sqrt(H)
    s2 = 1.0 / math.sqrt(D)
    w1 = jax.random.uniform(k1, (E, D, H), jnp.float32, -s1, s1)      # init_
    w2 = jax.random.uniform(k2, (E, H, D), jnp.float32, -s2, s2)      # init_
    # Uniform(0,1) draws for the 'random' second-expert policy (replaces
    # torch's in-place .uniform_()).
    probs = jax.random.uniform(kp, (B, N, 1), dtype=jnp.float32)

    out, aux_loss = moe_forward(x, w_gating, w1, w2, probs)
    jax.block_until_ready((out, aux_loss))
    assert out.shape == (B, N, D)
    assert aux_loss.shape == ()

    # Top2Gating-shaped outputs (parity with the torch module)
    dispatch, combine, gate_loss = top2_gating(x, w_gating, probs)
    cap = max(min(N, int(N * 1.25 / E)), MIN_EXPERT_CAPACITY)
    assert dispatch.shape == (B, N, E, cap)
    assert combine.shape == (B, N, E, cap)

    # --- pure-JAX reference checks ---
    hi = jax.lax.Precision.HIGHEST
    # (a) aux loss (independent of the random policy / capacity)
    logits = jnp.einsum('bnd,de->bne', x, w_gating, precision=hi)
    rg = jax.nn.softmax(logits, axis=-1)
    m1 = jax.nn.one_hot(jnp.argmax(rg, axis=-1), E, dtype=jnp.float32)
    loss_ref = jnp.mean(m1.mean(axis=1) * rg.mean(axis=1)) * float(E ** 2)
    assert jnp.allclose(gate_loss, loss_ref, rtol=1e-3, atol=1e-6)
    assert jnp.allclose(aux_loss, loss_ref * 0.01, rtol=1e-3, atol=1e-8)

    # (b) fused dispatch / expert FFN / combine vs dense f32 einsums built on
    #     the standalone gating kernel's tensors (tolerance covers the bf16
    #     operand path of the fused kernel).
    disp_f, comb_f, _, _, cap_pad = _top2_gating_flat(x, w_gating, probs)
    d4 = disp_f.astype(jnp.float32).reshape(B, N, E, cap_pad)
    c4 = comb_f.reshape(B, N, E, cap_pad)
    ei = jnp.einsum('bnd,bnec->ebcd', x, d4, precision=hi)
    hid = jax.nn.relu(jnp.einsum('ebcd,edh->ebch', ei, w1, precision=hi))
    eo = jnp.einsum('ebch,ehd->ebcd', hid, w2, precision=hi)
    out_ref = jnp.einsum('ebcd,bnec->bnd', eo, c4, precision=hi)
    assert jnp.allclose(out, out_ref, atol=2e-2, rtol=2e-2)

    assert bool(jnp.isfinite(out).all()) and bool(jnp.isfinite(aux_loss))
    print("KERNEL_OK")
</pallas_src>

<mosaic_0001>
module attributes {stable_mosaic.version = 11 : i64} {
  func.func @_moe_fused_kernel(%arg0: i32, %arg1: memref<128x128xbf16, #tpu.memory_space<vmem>>, %arg2: memref<128x1xf32, #tpu.memory_space<vmem>>, %arg3: memref<128x32xf32, #tpu.memory_space<vmem>>, %arg4: memref<32x8xf32, #tpu.memory_space<vmem>>, %arg5: memref<8x32x128xbf16, #tpu.memory_space<vmem>>, %arg6: memref<8x128x32xbf16, #tpu.memory_space<vmem>>, %arg7: memref<128x32xf32, #tpu.memory_space<vmem>>, %arg8: memref<1x1x1xf32, #tpu.memory_space<vmem>>, %arg9: memref<256x32xbf16, #tpu.memory_space<vmem>>, %arg10: memref<256x32xf32, #tpu.memory_space<vmem>>, %arg11: memref<128x256xf32, #tpu.memory_space<vmem>>) attributes {dimension_semantics = [#tpu.dimension_semantics<parallel>], iteration_bounds = array<i64: 2>, scalar_prefetch = 0 : i64, scratch_operands = 3 : i64, tpu.core_type = #tpu.core_type<tc>, window_params = [{pipeline_mode = #tpu.pipeline_mode<synchronous>, transform_indices = @transform_0, window_bounds = array<i64: 128, 128>}, {transform_indices = @transform_1, window_bounds = array<i64: 128, 1>}, {transform_indices = @transform_2, window_bounds = array<i64: 128, 32>}, {pipeline_mode = #tpu.pipeline_mode<synchronous>, transform_indices = @transform_3, window_bounds = array<i64: 32, 8>}, {pipeline_mode = #tpu.pipeline_mode<synchronous>, transform_indices = @transform_4, window_bounds = array<i64: 8, 32, 128>}, {pipeline_mode = #tpu.pipeline_mode<synchronous>, transform_indices = @transform_5, window_bounds = array<i64: 8, 128, 32>}, {transform_indices = @transform_6, window_bounds = array<i64: 128, 32>}, {transform_indices = @transform_7, window_bounds = array<i64: 1, 1, 1>}]} {
    %c0 = arith.constant 0 : index
    %c0_0 = arith.constant 0 : index
    %0 = vector.load %arg3[%c0, %c0_0] : memref<128x32xf32, #tpu.memory_space<vmem>>, vector<128x32xf32>
    %c0_1 = arith.constant 0 : index
    %c0_2 = arith.constant 0 : index
    %1 = vector.load %arg2[%c0_1, %c0_2] : memref<128x1xf32, #tpu.memory_space<vmem>>, vector<128x1xf32>
    %c0_3 = arith.constant 0 : index
    %c0_4 = arith.constant 0 : index
    %2 = vector.load %arg4[%c0_3, %c0_4] : memref<32x8xf32, #tpu.memory_space<vmem>>, vector<32x8xf32>
    %c0_5 = arith.constant 0 : index
    %c0_6 = arith.constant 0 : index
    %3 = vector.load %arg1[%c0_5, %c0_6] : memref<128x128xbf16, #tpu.memory_space<vmem>>, vector<128x128xbf16>
    %cst = arith.constant dense<0.000000e+00> : vector<128x8xf32>
    %4 = tpu.matmul %0, %2, %cst {dimension_numbers = #tpu.dot_dimension_numbers<[1], [0], [0], [1], [0, 0, 1, 1], [], []>} : vector<128x32xf32>, vector<32x8xf32>, vector<128x8xf32> -> vector<128x8xf32>
    %cst_7 = arith.constant dense<0xFF800000> : vector<128xf32>
    %5 = vector.multi_reduction <maximumf>, %4, %cst_7 [1] : vector<128x8xf32> to vector<128xf32>
    %6 = vector.shape_cast %5 : vector<128xf32> to vector<128x1xf32>
    %7 = vector.broadcast %6 : vector<128x1xf32> to vector<128x8xf32>
    %8 = arith.subf %4, %7 : vector<128x8xf32>
    %9 = math.exp %8 : vector<128x8xf32>
    %cst_8 = arith.constant dense<0.000000e+00> : vector<128xf32>
    %10 = vector.multi_reduction <add>, %9, %cst_8 [1] : vector<128x8xf32> to vector<128xf32>
    %11 = vector.shape_cast %10 : vector<128xf32> to vector<128x1xf32>
    %12 = vector.broadcast %11 : vector<128x1xf32> to vector<128x8xf32>
    %13 = arith.divf %9, %12 : vector<128x8xf32>
    %14 = tpu.iota {dimensions = array<i32: 1>} : vector<128x8xi32>
    %cst_9 = arith.constant dense<0xFF800000> : vector<128xf32>
    %15 = vector.multi_reduction <maximumf>, %13, %cst_9 [1] : vector<128x8xf32> to vector<128xf32>
    %16 = vector.shape_cast %15 : vector<128xf32> to vector<128x1xf32>
    %17 = vector.broadcast %16 : vector<128x1xf32> to vector<128x8xf32>
    %18 = arith.cmpf oge, %13, %17 : vector<128x8xf32>
    %c8_i32 = arith.constant 8 : i32
    %19 = vector.broadcast %c8_i32 : i32 to vector<128x8xi32>
    %20 = arith.select %18, %14, %19 : vector<128x8xi1>, vector<128x8xi32>
    %cst_10 = arith.constant dense<2147483647> : vector<128xi32>
    %21 = vector.multi_reduction <minsi>, %20, %cst_10 [1] : vector<128x8xi32> to vector<128xi32>
    %22 = vector.shape_cast %21 : vector<128xi32> to vector<128x1xi32>
    %23 = vector.broadcast %22 : vector<128x1xi32> to vector<128x8xi32>
    %24 = arith.cmpi eq, %14, %23 : vector<128x8xi32>
    %25 = arith.extui %24 : vector<128x8xi1> to vector<128x8xi32>
    %26 = arith.sitofp %25 : vector<128x8xi32> to vector<128x8xf32>
    %cst_11 = arith.constant 1.000000e+00 : f32
    %27 = vector.broadcast %cst_11 : f32 to vector<128x8xf32>
    %28 = arith.subf %27, %26 : vector<128x8xf32>
    %29 = arith.mulf %13, %28 : vector<128x8xf32>
    %cst_12 = arith.constant dense<0xFF800000> : vector<128xf32>
    %30 = vector.multi_reduction <maximumf>, %29, %cst_12 [1] : vector<128x8xf32> to vector<128xf32>
    %31 = vector.shape_cast %30 : vector<128xf32> to vector<128x1xf32>
    %32 = vector.broadcast %31 : vector<128x1xf32> to vector<128x8xf32>
    %33 = arith.cmpf oge, %29, %32 : vector<128x8xf32>
    %c8_i32_13 = arith.constant 8 : i32
    %34 = vector.broadcast %c8_i32_13 : i32 to vector<128x8xi32>
    %35 = arith.select %33, %14, %34 : vector<128x8xi1>, vector<128x8xi32>
    %cst_14 = arith.constant dense<2147483647> : vector<128xi32>
    %36 = vector.multi_reduction <minsi>, %35, %cst_14 [1] : vector<128x8xi32> to vector<128xi32>
    %37 = vector.shape_cast %36 : vector<128xi32> to vector<128x1xi32>
    %38 = vector.broadcast %37 : vector<128x1xi32> to vector<128x8xi32>
    %39 = arith.cmpi eq, %14, %38 : vector<128x8xi32>
    %40 = arith.extui %39 : vector<128x8xi1> to vector<128x8xi32>
    %41 = arith.sitofp %40 : vector<128x8xi32> to vector<128x8xf32>
    %42 = arith.addf %16, %31 : vector<128x1xf32>
    %cst_15 = arith.constant 9.99999971E-10 : f32
    %43 = vector.broadcast %cst_15 : f32 to vector<128x1xf32>
    %44 = arith.addf %42, %43 : vector<128x1xf32>
    %45 = tpu.reciprocal %44 {approx = true} : vector<128x1xf32> -> vector<128x1xf32>
    %46 = arith.mulf %16, %45 : vector<128x1xf32>
    %47 = arith.mulf %31, %45 : vector<128x1xf32>
    %cst_16 = arith.constant dense<0.000000e+00> : vector<8xf32>
    %48 = vector.multi_reduction <add>, %26, %cst_16 [0] : vector<128x8xf32> to vector<8xf32>
    %49 = vector.shape_cast %48 : vector<8xf32> to vector<1x8xf32>
    %50 = vector.broadcast %49 : vector<1x8xf32> to vector<128x8xf32>
    %51 = arith.mulf %13, %50 : vector<128x8xf32>
    %cst_17 = arith.constant dense<0.000000e+00> : vector<128xf32>
    %52 = vector.multi_reduction <add>, %51, %cst_17 [1] : vector<128x8xf32> to vector<128xf32>
    %53 = vector.shape_cast %52 : vector<128xf32> to vector<128x1xf32>
    %cst_18 = arith.constant dense<0.000000e+00> : vector<1xf32>
    %54 = vector.multi_reduction <add>, %53, %cst_18 [0] : vector<128x1xf32> to vector<1xf32>
    %55 = vector.shape_cast %54 : vector<1xf32> to vector<1x1xf32>
    %cst_19 = arith.constant 6.10351563E-5 : f32
    %56 = vector.broadcast %cst_19 : f32 to vector<1x1xf32>
    %57 = arith.mulf %55, %56 : vector<1x1xf32>
    %cst_20 = arith.constant 5.000000e+00 : f32
    %58 = vector.broadcast %cst_20 : f32 to vector<128x1xf32>
    %59 = arith.mulf %47, %58 : vector<128x1xf32>
    %60 = arith.cmpf olt, %1, %59 : vector<128x1xf32>
    %61 = arith.extui %60 : vector<128x1xi1> to vector<128x1xi32>
    %62 = arith.sitofp %61 : vector<128x1xi32> to vector<128x1xf32>
    %63 = vector.broadcast %62 : vector<128x1xf32> to vector<128x8xf32>
    %64 = arith.mulf %41, %63 : vector<128x8xf32>
    %65 = tpu.concatenate %26, %64 in 1 : vector<128x8xf32>, vector<128x8xf32> -> vector<128x16xf32>
    %66 = arith.truncf %65 : vector<128x16xf32> to vector<128x16xbf16>
    %cst_21 = arith.constant dense<0.000000e+00> : vector<128x16xf32>
    %67 = tpu.matmul %3, %66, %cst_21 {dimension_numbers = #tpu.dot_dimension_numbers<[1], [0], [0], [1], [0, 0, 1, 1], [], []>} : vector<128x128xbf16>, vector<128x16xbf16>, vector<128x16xf32> -> vector<128x16xf32>
    %68 = vector.extract_strided_slice %67 {offsets = [0, 0], sizes = [128, 8], strides = [1, 1]} : vector<128x16xf32> to vector<128x8xf32>
    %69 = arith.mulf %68, %26 : vector<128x8xf32>
    %cst_22 = arith.constant 2.000000e+01 : f32
    %70 = vector.broadcast %cst_22 : f32 to vector<128x8xf32>
    %71 = arith.cmpf olt, %69, %70 : vector<128x8xf32>
    %72 = arith.extui %71 : vector<128x8xi1> to vector<128x8xi32>
    %73 = arith.sitofp %72 : vector<128x8xi32> to vector<128x8xf32>
    %74 = arith.mulf %26, %73 : vector<128x8xf32>
    %cst_23 = arith.constant dense<0.000000e+00> : vector<8xf32>
    %75 = vector.multi_reduction <add>, %74, %cst_23 [0] : vector<128x8xf32> to vector<8xf32>
    %76 = vector.shape_cast %75 : vector<8xf32> to vector<1x8xf32>
    %77 = vector.extract_strided_slice %67 {offsets = [0, 8], sizes = [128, 8], strides = [1, 1]} : vector<128x16xf32> to vector<128x8xf32>
    %78 = vector.broadcast %76 : vector<1x8xf32> to vector<128x8xf32>
    %79 = arith.addf %77, %78 : vector<128x8xf32>
    %80 = arith.mulf %79, %64 : vector<128x8xf32>
    %cst_24 = arith.constant 2.000000e+01 : f32
    %81 = vector.broadcast %cst_24 : f32 to vector<128x8xf32>
    %82 = arith.cmpf olt, %80, %81 : vector<128x8xf32>
    %83 = arith.extui %82 : vector<128x8xi1> to vector<128x8xi32>
    %84 = arith.sitofp %83 : vector<128x8xi32> to vector<128x8xf32>
    %85 = arith.mulf %64, %84 : vector<128x8xf32>
    %cst_25 = arith.constant dense<0.000000e+00> : vector<128xf32>
    %86 = vector.multi_reduction <add>, %74, %cst_25 [1] : vector<128x8xf32> to vector<128xf32>
    %87 = vector.shape_cast %86 : vector<128xf32> to vector<128x1xf32>
    %cst_26 = arith.constant dense<0.000000e+00> : vector<128xf32>
    %88 = vector.multi_reduction <add>, %85, %cst_26 [1] : vector<128x8xf32> to vector<128xf32>
    %89 = vector.shape_cast %88 : vector<128xf32> to vector<128x1xf32>
    %cst_27 = arith.constant dense<0.000000e+00> : vector<128xf32>
    %90 = vector.multi_reduction <add>, %69, %cst_27 [1] : vector<128x8xf32> to vector<128xf32>
    %91 = vector.shape_cast %90 : vector<128xf32> to vector<128x1xf32>
    %cst_28 = arith.constant dense<0.000000e+00> : vector<128xf32>
    %92 = vector.multi_reduction <add>, %80, %cst_28 [1] : vector<128x8xf32> to vector<128xf32>
    %93 = vector.shape_cast %92 : vector<128xf32> to vector<128x1xf32>
    %94 = arith.mulf %46, %87 : vector<128x1xf32>
    %95 = arith.mulf %47, %89 : vector<128x1xf32>
    %c32_i32 = arith.constant 32 : i32
    %96 = vector.broadcast %c32_i32 : i32 to vector<128x1xi32>
    %97 = arith.muli %22, %96 : vector<128x1xi32>
    %98 = arith.fptosi %91 : vector<128x1xf32> to vector<128x1xi32>
    %99 = arith.addi %97, %98 : vector<128x1xi32>
    %c32_i32_29 = arith.constant 32 : i32
    %100 = vector.broadcast %c32_i32_29 : i32 to vector<128x1xi32>
    %101 = arith.muli %37, %100 : vector<128x1xi32>
    %102 = arith.fptosi %93 : vector<128x1xf32> to vector<128x1xi32>
    %103 = arith.addi %101, %102 : vector<128x1xi32>
    %c0_30 = arith.constant 0 : index
    %c0_31 = arith.constant 0 : index
    %c0_32 = arith.constant 0 : index
    %104 = vector.load %arg8[%c0_30, %c0_31, %c0_32] : memref<1x1x1xf32, #tpu.memory_space<vmem>>, vector<1x1x1xf32>
    %105 = vector.shape_cast %104 : vector<1x1x1xf32> to vector<1x1xf32>
    %106 = vector.shape_cast %57 : vector<1x1xf32> to vector<1x1x1xf32>
    tpu.vector_store %arg8[%c0_30, %c0_31, %c0_32], %106 {strides = array<i32>} : memref<1x1x1xf32, #tpu.memory_space<vmem>>, vector<1x1x1xf32>,
    %107 = arith.truncf %0 : vector<128x32xf32> to vector<128x32xbf16>
    %108 = tpu.iota {dimensions = array<i32: 1>} : vector<128x128xi32>
    %c0_i32 = arith.constant 0 : i32
    %109 = vector.broadcast %c0_i32 : i32 to vector<128x128xi32>
    %110 = arith.addi %108, %109 : vector<128x128xi32>
    %111 = vector.broadcast %99 : vector<128x1xi32> to vector<128x128xi32>
    %112 = arith.cmpi eq, %110, %111 : vector<128x128xi32>
    %113 = arith.extui %112 : vector<128x128xi1> to vector<128x128xi32>
    %114 = arith.sitofp %113 : vector<128x128xi32> to vector<128x128xf32>
    %115 = vector.broadcast %103 : vector<128x1xi32> to vector<128x128xi32>
    %116 = arith.cmpi eq, %110, %115 : vector<128x128xi32>
    %117 = arith.extui %116 : vector<128x128xi1> to vector<128x128xi32>
    %118 = arith.sitofp %117 : vector<128x128xi32> to vector<128x128xf32>
    %119 = vector.broadcast %94 : vector<128x1xf32> to vector<128x128xf32>
    %120 = arith.mulf %119, %114 : vector<128x128xf32>
    %121 = vector.broadcast %95 : vector<128x1xf32> to vector<128x128xf32>
    %122 = arith.mulf %121, %118 : vector<128x128xf32>
    %123 = arith.addf %120, %122 : vector<128x128xf32>
    %c0_33 = arith.constant 0 : index
    %c0_34 = arith.constant 0 : index
    %124 = vector.load %arg11[%c0_33, %c0_34] : memref<128x256xf32, #tpu.memory_space<vmem>>, vector<128x128xf32>
    tpu.vector_store %arg11[%c0_33, %c0_34], %123 {strides = array<i32>} : memref<128x256xf32, #tpu.memory_space<vmem>>, vector<128x128xf32>,
    %125 = vector.broadcast %87 : vector<128x1xf32> to vector<128x128xf32>
    %126 = arith.mulf %125, %114 : vector<128x128xf32>
    %127 = vector.broadcast %89 : vector<128x1xf32> to vector<128x128xf32>
    %128 = arith.mulf %127, %118 : vector<128x128xf32>
    %129 = arith.addf %126, %128 : vector<128x128xf32>
    %130 = arith.truncf %129 : vector<128x128xf32> to vector<128x128xbf16>
    %cst_35 = arith.constant dense<0.000000e+00> : vector<128x32xf32>
    %131 = tpu.matmul %130, %107, %cst_35 {dimension_numbers = #tpu.dot_dimension_numbers<[0], [0], [1], [1], [0, 1, 1, 1], [], []>} : vector<128x128xbf16>, vector<128x32xbf16>, vector<128x32xf32> -> vector<128x32xf32>
    %132 = arith.truncf %131 : vector<128x32xf32> to vector<128x32xbf16>
    %c0_36 = arith.constant 0 : index
    %c0_37 = arith.constant 0 : index
    %133 = vector.load %arg9[%c0_36, %c0_37] : memref<256x32xbf16, #tpu.memory_space<vmem>>, vector<128x32xbf16>
    tpu.vector_store %arg9[%c0_36, %c0_37], %132 {strides = array<i32>} : memref<256x32xbf16, #tpu.memory_space<vmem>>, vector<128x32xbf16>,
    %c128_i32 = arith.constant 128 : i32
    %134 = vector.broadcast %c128_i32 : i32 to vector<128x128xi32>
    %135 = arith.addi %108, %134 : vector<128x128xi32>
    %136 = vector.broadcast %99 : vector<128x1xi32> to vector<128x128xi32>
    %137 = arith.cmpi eq, %135, %136 : vector<128x128xi32>
    %138 = arith.extui %137 : vector<128x128xi1> to vector<128x128xi32>
    %139 = arith.sitofp %138 : vector<128x128xi32> to vector<128x128xf32>
    %140 = vector.broadcast %103 : vector<128x1xi32> to vector<128x128xi32>
    %141 = arith.cmpi eq, %135, %140 : vector<128x128xi32>
    %142 = arith.extui %141 : vector<128x128xi1> to vector<128x128xi32>
    %143 = arith.sitofp %142 : vector<128x128xi32> to vector<128x128xf32>
    %144 = vector.broadcast %94 : vector<128x1xf32> to vector<128x128xf32>
    %145 = arith.mulf %144, %139 : vector<128x128xf32>
    %146 = vector.broadcast %95 : vector<128x1xf32> to vector<128x128xf32>
    %147 = arith.mulf %146, %143 : vector<128x128xf32>
    %148 = arith.addf %145, %147 : vector<128x128xf32>
    %c0_38 = arith.constant 0 : index
    %c128 = arith.constant 128 : index
    %149 = vector.load %arg11[%c0_38, %c128] : memref<128x256xf32, #tpu.memory_space<vmem>>, vector<128x128xf32>
    tpu.vector_store %arg11[%c0_38, %c128], %148 {strides = array<i32>} : memref<128x256xf32, #tpu.memory_space<vmem>>, vector<128x128xf32>,
    %150 = vector.broadcast %87 : vector<128x1xf32> to vector<128x128xf32>
    %151 = arith.mulf %150, %139 : vector<128x128xf32>
    %152 = vector.broadcast %89 : vector<128x1xf32> to vector<128x128xf32>
    %153 = arith.mulf %152, %143 : vector<128x128xf32>
    %154 = arith.addf %151, %153 : vector<128x128xf32>
    %155 = arith.truncf %154 : vector<128x128xf32> to vector<128x128xbf16>
    %cst_39 = arith.constant dense<0.000000e+00> : vector<128x32xf32>
    %156 = tpu.matmul %155, %107, %cst_39 {dimension_numbers = #tpu.dot_dimension_numbers<[0], [0], [1], [1], [0, 1, 1, 1], [], []>} : vector<128x128xbf16>, vector<128x32xbf16>, vector<128x32xf32> -> vector<128x32xf32>
    %157 = arith.truncf %156 : vector<128x32xf32> to vector<128x32xbf16>
    %c128_40 = arith.constant 128 : index
    %c0_41 = arith.constant 0 : index
    %158 = vector.load %arg9[%c128_40, %c0_41] : memref<256x32xbf16, #tpu.memory_space<vmem>>, vector<128x32xbf16>
    tpu.vector_store %arg9[%c128_40, %c0_41], %157 {strides = array<i32>} : memref<256x32xbf16, #tpu.memory_space<vmem>>, vector<128x32xbf16>,
    %c0_42 = arith.constant 0 : index
    %c0_43 = arith.constant 0 : index
    %159 = vector.load %arg9[%c0_42, %c0_43] : memref<256x32xbf16, #tpu.memory_space<vmem>>, vector<32x32xbf16>
    %c0_44 = arith.constant 0 : index
    %c0_45 = arith.constant 0 : index
    %c0_46 = arith.constant 0 : index
    %160 = vector.load %arg5[%c0_44, %c0_45, %c0_46] : memref<8x32x128xbf16, #tpu.memory_space<vmem>>, vector<1x32x128xbf16>
    %161 = vector.shape_cast %160 : vector<1x32x128xbf16> to vector<32x128xbf16>
    %cst_47 = arith.constant dense<0.000000e+00> : vector<32x128xf32>
    %162 = tpu.matmul %159, %161, %cst_47 {dimension_numbers = #tpu.dot_dimension_numbers<[1], [0], [0], [1], [0, 0, 1, 1], [], []>} : vector<32x32xbf16>, vector<32x128xbf16>, vector<32x128xf32> -> vector<32x128xf32>
    %cst_48 = arith.constant 0.000000e+00 : f32
    %163 = vector.broadcast %cst_48 : f32 to vector<32x128xf32>
    %164 = arith.maximumf %162, %163 : vector<32x128xf32>
    %165 = arith.truncf %164 : vector<32x128xf32> to vector<32x128xbf16>
    %c0_49 = arith.constant 0 : index
    %c0_50 = arith.constant 0 : index
    %c0_51 = arith.constant 0 : index
    %166 = vector.load %arg6[%c0_49, %c0_50, %c0_51] : memref<8x128x32xbf16, #tpu.memory_space<vmem>>, vector<1x128x32xbf16>
    %167 = vector.shape_cast %166 : vector<1x128x32xbf16> to vector<128x32xbf16>
    %cst_52 = arith.constant dense<0.000000e+00> : vector<32x32xf32>
    %168 = tpu.matmul %165, %167, %cst_52 {dimension_numbers = #tpu.dot_dimension_numbers<[1], [0], [0], [1], [0, 0, 1, 1], [], []>} : vector<32x128xbf16>, vector<128x32xbf16>, vector<32x32xf32> -> vector<32x32xf32>
    %c0_53 = arith.constant 0 : index
    %c0_54 = arith.constant 0 : index
    %169 = vector.load %arg10[%c0_53, %c0_54] : memref<256x32xf32, #tpu.memory_space<vmem>>, vector<32x32xf32>
    tpu.vector_store %arg10[%c0_53, %c0_54], %168 {strides = array<i32>} : memref<256x32xf32, #tpu.memory_space<vmem>>, vector<32x32xf32>,
    %c32 = arith.constant 32 : index
    %c0_55 = arith.constant 0 : index
    %170 = vector.load %arg9[%c32, %c0_55] : memref<256x32xbf16, #tpu.memory_space<vmem>>, vector<32x32xbf16>
    %c1 = arith.constant 1 : index
    %c0_56 = arith.constant 0 : index
    %c0_57 = arith.constant 0 : index
    %171 = vector.load %arg5[%c1, %c0_56, %c0_57] : memref<8x32x128xbf16, #tpu.memory_space<vmem>>, vector<1x32x128xbf16>
    %172 = vector.shape_cast %171 : vector<1x32x128xbf16> to vector<32x128xbf16>
    %cst_58 = arith.constant dense<0.000000e+00> : vector<32x128xf32>
    %173 = tpu.matmul %170, %172, %cst_58 {dimension_numbers = #tpu.dot_dimension_numbers<[1], [0], [0], [1], [0, 0, 1, 1], [], []>} : vector<32x32xbf16>, vector<32x128xbf16>, vector<32x128xf32> -> vector<32x128xf32>
    %cst_59 = arith.constant 0.000000e+00 : f32
    %174 = vector.broadcast %cst_59 : f32 to vector<32x128xf32>
    %175 = arith.maximumf %173, %174 : vector<32x128xf32>
    %176 = arith.truncf %175 : vector<32x128xf32> to vector<32x128xbf16>
    %c1_60 = arith.constant 1 : index
    %c0_61 = arith.constant 0 : index
    %c0_62 = arith.constant 0 : index
    %177 = vector.load %arg6[%c1_60, %c0_61, %c0_62] : memref<8x128x32xbf16, #tpu.memory_space<vmem>>, vector<1x128x32xbf16>
    %178 = vector.shape_cast %177 : vector<1x128x32xbf16> to vector<128x32xbf16>
    %cst_63 = arith.constant dense<0.000000e+00> : vector<32x32xf32>
    %179 = tpu.matmul %176, %178, %cst_63 {dimension_numbers = #tpu.dot_dimension_numbers<[1], [0], [0], [1], [0, 0, 1, 1], [], []>} : vector<32x128xbf16>, vector<128x32xbf16>, vector<32x32xf32> -> vector<32x32xf32>
    %c32_64 = arith.constant 32 : index
    %c0_65 = arith.constant 0 : index
    %180 = vector.load %arg10[%c32_64, %c0_65] : memref<256x32xf32, #tpu.memory_space<vmem>>, vector<32x32xf32>
    tpu.vector_store %arg10[%c32_64, %c0_65], %179 {strides = array<i32>} : memref<256x32xf32, #tpu.memory_space<vmem>>, vector<32x32xf32>,
    %c64 = arith.constant 64 : index
    %c0_66 = arith.constant 0 : index
    %181 = vector.load %arg9[%c64, %c0_66] : memref<256x32xbf16, #tpu.memory_space<vmem>>, vector<32x32xbf16>
    %c2 = arith.constant 2 : index
    %c0_67 = arith.constant 0 : index
    %c0_68 = arith.constant 0 : index
    %182 = vector.load %arg5[%c2, %c0_67, %c0_68] : memref<8x32x128xbf16, #tpu.memory_space<vmem>>, vector<1x32x128xbf16>
    %183 = vector.shape_cast %182 : vector<1x32x128xbf16> to vector<32x128xbf16>
    %cst_69 = arith.constant dense<0.000000e+00> : vector<32x128xf32>
    %184 = tpu.matmul %181, %183, %cst_69 {dimension_numbers = #tpu.dot_dimension_numbers<[1], [0], [0], [1], [0, 0, 1, 1], [], []>} : vector<32x32xbf16>, vector<32x128xbf16>, vector<32x128xf32> -> vector<32x128xf32>
    %cst_70 = arith.constant 0.000000e+00 : f32
    %185 = vector.broadcast %cst_70 : f32 to vector<32x128xf32>
    %186 = arith.maximumf %184, %185 : vector<32x128xf32>
    %187 = arith.truncf %186 : vector<32x128xf32> to vector<32x128xbf16>
    %c2_71 = arith.constant 2 : index
    %c0_72 = arith.constant 0 : index
    %c0_73 = arith.constant 0 : index
    %188 = vector.load %arg6[%c2_71, %c0_72, %c0_73] : memref<8x128x32xbf16, #tpu.memory_space<vmem>>, vector<1x128x32xbf16>
    %189 = vector.shape_cast %188 : vector<1x128x32xbf16> to vector<128x32xbf16>
    %cst_74 = arith.constant dense<0.000000e+00> : vector<32x32xf32>
    %190 = tpu.matmul %187, %189, %cst_74 {dimension_numbers = #tpu.dot_dimension_numbers<[1], [0], [0], [1], [0, 0, 1, 1], [], []>} : vector<32x128xbf16>, vector<128x32xbf16>, vector<32x32xf32> -> vector<32x32xf32>
    %c64_75 = arith.constant 64 : index
    %c0_76 = arith.constant 0 : index
    %191 = vector.load %arg10[%c64_75, %c0_76] : memref<256x32xf32, #tpu.memory_space<vmem>>, vector<32x32xf32>
    tpu.vector_store %arg10[%c64_75, %c0_76], %190 {strides = array<i32>} : memref<256x32xf32, #tpu.memory_space<vmem>>, vector<32x32xf32>,
    %c96 = arith.constant 96 : index
    %c0_77 = arith.constant 0 : index
    %192 = vector.load %arg9[%c96, %c0_77] : memref<256x32xbf16, #tpu.memory_space<vmem>>, vector<32x32xbf16>
    %c3 = arith.constant 3 : index
    %c0_78 = arith.constant 0 : index
    %c0_79 = arith.constant 0 : index
    %193 = vector.load %arg5[%c3, %c0_78, %c0_79] : memref<8x32x128xbf16, #tpu.memory_space<vmem>>, vector<1x32x128xbf16>
    %194 = vector.shape_cast %193 : vector<1x32x128xbf16> to vector<32x128xbf16>
    %cst_80 = arith.constant dense<0.000000e+00> : vector<32x128xf32>
    %195 = tpu.matmul %192, %194, %cst_80 {dimension_numbers = #tpu.dot_dimension_numbers<[1], [0], [0], [1], [0, 0, 1, 1], [], []>} : vector<32x32xbf16>, vector<32x128xbf16>, vector<32x128xf32> -> vector<32x128xf32>
    %cst_81 = arith.constant 0.000000e+00 : f32
    %196 = vector.broadcast %cst_81 : f32 to vector<32x128xf32>
    %197 = arith.maximumf %195, %196 : vector<32x128xf32>
    %198 = arith.truncf %197 : vector<32x128xf32> to vector<32x128xbf16>
    %c3_82 = arith.constant 3 : index
    %c0_83 = arith.constant 0 : index
    %c0_84 = arith.constant 0 : index
    %199 = vector.load %arg6[%c3_82, %c0_83, %c0_84] : memref<8x128x32xbf16, #tpu.memory_space<vmem>>, vector<1x128x32xbf16>
    %200 = vector.shape_cast %199 : vector<1x128x32xbf16> to vector<128x32xbf16>
    %cst_85 = arith.constant dense<0.000000e+00> : vector<32x32xf32>
    %201 = tpu.matmul %198, %200, %cst_85 {dimension_numbers = #tpu.dot_dimension_numbers<[1], [0], [0], [1], [0, 0, 1, 1], [], []>} : vector<32x128xbf16>, vector<128x32xbf16>, vector<32x32xf32> -> vector<32x32xf32>
    %c96_86 = arith.constant 96 : index
    %c0_87 = arith.constant 0 : index
    %202 = vector.load %arg10[%c96_86, %c0_87] : memref<256x32xf32, #tpu.memory_space<vmem>>, vector<32x32xf32>
    tpu.vector_store %arg10[%c96_86, %c0_87], %201 {strides = array<i32>} : memref<256x32xf32, #tpu.memory_space<vmem>>, vector<32x32xf32>,
    %c128_88 = arith.constant 128 : index
    %c0_89 = arith.constant 0 : index
    %203 = vector.load %arg9[%c128_88, %c0_89] : memref<256x32xbf16, #tpu.memory_space<vmem>>, vector<32x32xbf16>
    %c4 = arith.constant 4 : index
    %c0_90 = arith.constant 0 : index
    %c0_91 = arith.constant 0 : index
    %204 = vector.load %arg5[%c4, %c0_90, %c0_91] : memref<8x32x128xbf16, #tpu.memory_space<vmem>>, vector<1x32x128xbf16>
    %205 = vector.shape_cast %204 : vector<1x32x128xbf16> to vector<32x128xbf16>
    %cst_92 = arith.constant dense<0.000000e+00> : vector<32x128xf32>
    %206 = tpu.matmul %203, %205, %cst_92 {dimension_numbers = #tpu.dot_dimension_numbers<[1], [0], [0], [1], [0, 0, 1, 1], [], []>} : vector<32x32xbf16>, vector<32x128xbf16>, vector<32x128xf32> -> vector<32x128xf32>
    %cst_93 = arith.constant 0.000000e+00 : f32
    %207 = vector.broadcast %cst_93 : f32 to vector<32x128xf32>
    %208 = arith.maximumf %206, %207 : vector<32x128xf32>
    %209 = arith.truncf %208 : vector<32x128xf32> to vector<32x128xbf16>
    %c4_94 = arith.constant 4 : index
    %c0_95 = arith.constant 0 : index
    %c0_96 = arith.constant 0 : index
    %210 = vector.load %arg6[%c4_94, %c0_95, %c0_96] : memref<8x128x32xbf16, #tpu.memory_space<vmem>>, vector<1x128x32xbf16>
    %211 = vector.shape_cast %210 : vector<1x128x32xbf16> to vector<128x32xbf16>
    %cst_97 = arith.constant dense<0.000000e+00> : vector<32x32xf32>
    %212 = tpu.matmul %209, %211, %cst_97 {dimension_numbers = #tpu.dot_dimension_numbers<[1], [0], [0], [1], [0, 0, 1, 1], [], []>} : vector<32x128xbf16>, vector<128x32xbf16>, vector<32x32xf32> -> vector<32x32xf32>
    %c128_98 = arith.constant 128 : index
    %c0_99 = arith.constant 0 : index
    %213 = vector.load %arg10[%c128_98, %c0_99] : memref<256x32xf32, #tpu.memory_space<vmem>>, vector<32x32xf32>
    tpu.vector_store %arg10[%c128_98, %c0_99], %212 {strides = array<i32>} : memref<256x32xf32, #tpu.memory_space<vmem>>, vector<32x32xf32>,
    %c160 = arith.constant 160 : index
    %c0_100 = arith.constant 0 : index
    %214 = vector.load %arg9[%c160, %c0_100] : memref<256x32xbf16, #tpu.memory_space<vmem>>, vector<32x32xbf16>
    %c5 = arith.constant 5 : index
    %c0_101 = arith.constant 0 : index
    %c0_102 = arith.constant 0 : index
    %215 = vector.load %arg5[%c5, %c0_101, %c0_102] : memref<8x32x128xbf16, #tpu.memory_space<vmem>>, vector<1x32x128xbf16>
    %216 = vector.shape_cast %215 : vector<1x32x128xbf16> to vector<32x128xbf16>
    %cst_103 = arith.constant dense<0.000000e+00> : vector<32x128xf32>
    %217 = tpu.matmul %214, %216, %cst_103 {dimension_numbers = #tpu.dot_dimension_numbers<[1], [0], [0], [1], [0, 0, 1, 1], [], []>} : vector<32x32xbf16>, vector<32x128xbf16>, vector<32x128xf32> -> vector<32x128xf32>
    %cst_104 = arith.constant 0.000000e+00 : f32
    %218 = vector.broadcast %cst_104 : f32 to vector<32x128xf32>
    %219 = arith.maximumf %217, %218 : vector<32x128xf32>
    %220 = arith.truncf %219 : vector<32x128xf32> to vector<32x128xbf16>
    %c5_105 = arith.constant 5 : index
    %c0_106 = arith.constant 0 : index
    %c0_107 = arith.constant 0 : index
    %221 = vector.load %arg6[%c5_105, %c0_106, %c0_107] : memref<8x128x32xbf16, #tpu.memory_space<vmem>>, vector<1x128x32xbf16>
    %222 = vector.shape_cast %221 : vector<1x128x32xbf16> to vector<128x32xbf16>
    %cst_108 = arith.constant dense<0.000000e+00> : vector<32x32xf32>
    %223 = tpu.matmul %220, %222, %cst_108 {dimension_numbers = #tpu.dot_dimension_numbers<[1], [0], [0], [1], [0, 0, 1, 1], [], []>} : vector<32x128xbf16>, vector<128x32xbf16>, vector<32x32xf32> -> vector<32x32xf32>
    %c160_109 = arith.constant 160 : index
    %c0_110 = arith.constant 0 : index
    %224 = vector.load %arg10[%c160_109, %c0_110] : memref<256x32xf32, #tpu.memory_space<vmem>>, vector<32x32xf32>
    tpu.vector_store %arg10[%c160_109, %c0_110], %223 {strides = array<i32>} : memref<256x32xf32, #tpu.memory_space<vmem>>, vector<32x32xf32>,
    %c192 = arith.constant 192 : index
    %c0_111 = arith.constant 0 : index
    %225 = vector.load %arg9[%c192, %c0_111] : memref<256x32xbf16, #tpu.memory_space<vmem>>, vector<32x32xbf16>
    %c6 = arith.constant 6 : index
    %c0_112 = arith.constant 0 : index
    %c0_113 = arith.constant 0 : index
    %226 = vector.load %arg5[%c6, %c0_112, %c0_113] : memref<8x32x128xbf16, #tpu.memory_space<vmem>>, vector<1x32x128xbf16>
    %227 = vector.shape_cast %226 : vector<1x32x128xbf16> to vector<32x128xbf16>
    %cst_114 = arith.constant dense<0.000000e+00> : vector<32x128xf32>
    %228 = tpu.matmul %225, %227, %cst_114 {dimension_numbers = #tpu.dot_dimension_numbers<[1], [0], [0], [1], [0, 0, 1, 1], [], []>} : vector<32x32xbf16>, vector<32x128xbf16>, vector<32x128xf32> -> vector<32x128xf32>
    %cst_115 = arith.constant 0.000000e+00 : f32
    %229 = vector.broadcast %cst_115 : f32 to vector<32x128xf32>
    %230 = arith.maximumf %228, %229 : vector<32x128xf32>
    %231 = arith.truncf %230 : vector<32x128xf32> to vector<32x128xbf16>
    %c6_116 = arith.constant 6 : index
    %c0_117 = arith.constant 0 : index
    %c0_118 = arith.constant 0 : index
    %232 = vector.load %arg6[%c6_116, %c0_117, %c0_118] : memref<8x128x32xbf16, #tpu.memory_space<vmem>>, vector<1x128x32xbf16>
    %233 = vector.shape_cast %232 : vector<1x128x32xbf16> to vector<128x32xbf16>
    %cst_119 = arith.constant dense<0.000000e+00> : vector<32x32xf32>
    %234 = tpu.matmul %231, %233, %cst_119 {dimension_numbers = #tpu.dot_dimension_numbers<[1], [0], [0], [1], [0, 0, 1, 1], [], []>} : vector<32x128xbf16>, vector<128x32xbf16>, vector<32x32xf32> -> vector<32x32xf32>
    %c192_120 = arith.constant 192 : index
    %c0_121 = arith.constant 0 : index
    %235 = vector.load %arg10[%c192_120, %c0_121] : memref<256x32xf32, #tpu.memory_space<vmem>>, vector<32x32xf32>
    tpu.vector_store %arg10[%c192_120, %c0_121], %234 {strides = array<i32>} : memref<256x32xf32, #tpu.memory_space<vmem>>, vector<32x32xf32>,
    %c224 = arith.constant 224 : index
    %c0_122 = arith.constant 0 : index
    %236 = vector.load %arg9[%c224, %c0_122] : memref<256x32xbf16, #tpu.memory_space<vmem>>, vector<32x32xbf16>
    %c7 = arith.constant 7 : index
    %c0_123 = arith.constant 0 : index
    %c0_124 = arith.constant 0 : index
    %237 = vector.load %arg5[%c7, %c0_123, %c0_124] : memref<8x32x128xbf16, #tpu.memory_space<vmem>>, vector<1x32x128xbf16>
    %238 = vector.shape_cast %237 : vector<1x32x128xbf16> to vector<32x128xbf16>
    %cst_125 = arith.constant dense<0.000000e+00> : vector<32x128xf32>
    %239 = tpu.matmul %236, %238, %cst_125 {dimension_numbers = #tpu.dot_dimension_numbers<[1], [0], [0], [1], [0, 0, 1, 1], [], []>} : vector<32x32xbf16>, vector<32x128xbf16>, vector<32x128xf32> -> vector<32x128xf32>
    %cst_126 = arith.constant 0.000000e+00 : f32
    %240 = vector.broadcast %cst_126 : f32 to vector<32x128xf32>
    %241 = arith.maximumf %239, %240 : vector<32x128xf32>
    %242 = arith.truncf %241 : vector<32x128xf32> to vector<32x128xbf16>
    %c7_127 = arith.constant 7 : index
    %c0_128 = arith.constant 0 : index
    %c0_129 = arith.constant 0 : index
    %243 = vector.load %arg6[%c7_127, %c0_128, %c0_129] : memref<8x128x32xbf16, #tpu.memory_space<vmem>>, vector<1x128x32xbf16>
    %244 = vector.shape_cast %243 : vector<1x128x32xbf16> to vector<128x32xbf16>
    %cst_130 = arith.constant dense<0.000000e+00> : vector<32x32xf32>
    %245 = tpu.matmul %242, %244, %cst_130 {dimension_numbers = #tpu.dot_dimension_numbers<[1], [0], [0], [1], [0, 0, 1, 1], [], []>} : vector<32x128xbf16>, vector<128x32xbf16>, vector<32x32xf32> -> vector<32x32xf32>
    %c224_131 = arith.constant 224 : index
    %c0_132 = arith.constant 0 : index
    %246 = vector.load %arg10[%c224_131, %c0_132] : memref<256x32xf32, #tpu.memory_space<vmem>>, vector<32x32xf32>
    tpu.vector_store %arg10[%c224_131, %c0_132], %245 {strides = array<i32>} : memref<256x32xf32, #tpu.memory_space<vmem>>, vector<32x32xf32>,
    %c0_133 = arith.constant 0 : index
    %c0_134 = arith.constant 0 : index
    %247 = vector.load %arg11[%c0_133, %c0_134] : memref<128x256xf32, #tpu.memory_space<vmem>>, vector<128x256xf32>
    %c0_135 = arith.constant 0 : index
    %c0_136 = arith.constant 0 : index
    %248 = vector.load %arg10[%c0_135, %c0_136] : memref<256x32xf32, #tpu.memory_space<vmem>>, vector<256x32xf32>
    %cst_137 = arith.constant dense<0.000000e+00> : vector<128x32xf32>
    %249 = tpu.matmul %247, %248, %cst_137 {dimension_numbers = #tpu.dot_dimension_numbers<[1], [0], [0], [1], [0, 0, 1, 1], [], []>} : vector<128x256xf32>, vector<256x32xf32>, vector<128x32xf32> -> vector<128x32xf32>
    %c0_138 = arith.constant 0 : index
    %c0_139 = arith.constant 0 : index
    %250 = vector.load %arg7[%c0_138, %c0_139] : memref<128x32xf32, #tpu.memory_space<vmem>>, vector<128x32xf32>
    tpu.vector_store %arg7[%c0_138, %c0_139], %249 {strides = array<i32>} : memref<128x32xf32, #tpu.memory_space<vmem>>, vector<128x32xf32>,
    return
  }
  func.func @transform_0(%arg0: i32) -> (i32, i32) {
    %c0_i32 = arith.constant 0 : i32
    %c0_i32_0 = arith.constant 0 : i32
    %c0_i32_1 = arith.constant 0 : i32
    return %c0_i32, %c0_i32_0 : i32, i32
  }
  func.func @transform_1(%arg0: i32) -> (i32, i32) {
    %c0_i32 = arith.constant 0 : i32
    %c0_i32_0 = arith.constant 0 : i32
    return %arg0, %c0_i32 : i32, i32
  }
  func.func @transform_2(%arg0: i32) -> (i32, i32) {
    %c0_i32 = arith.constant 0 : i32
    %c0_i32_0 = arith.constant 0 : i32
    return %arg0, %c0_i32 : i32, i32
  }
  func.func @transform_3(%arg0: i32) -> (i32, i32) {
    %c0_i32 = arith.constant 0 : i32
    %c0_i32_0 = arith.constant 0 : i32
    %c0_i32_1 = arith.constant 0 : i32
    return %c0_i32, %c0_i32_0 : i32, i32
  }
  func.func @transform_4(%arg0: i32) -> (i32, i32, i32) {
    %c0_i32 = arith.constant 0 : i32
    %c0_i32_0 = arith.constant 0 : i32
    %c0_i32_1 = arith.constant 0 : i32
    %c0_i32_2 = arith.constant 0 : i32
    return %c0_i32, %c0_i32_0, %c0_i32_1 : i32, i32, i32
  }
  func.func @transform_5(%arg0: i32) -> (i32, i32, i32) {
    %c0_i32 = arith.constant 0 : i32
    %c0_i32_0 = arith.constant 0 : i32
    %c0_i32_1 = arith.constant 0 : i32
    %c0_i32_2 = arith.constant 0 : i32
    return %c0_i32, %c0_i32_0, %c0_i32_1 : i32, i32, i32
  }
  func.func @transform_6(%arg0: i32) -> (i32, i32) {
    %c0_i32 = arith.constant 0 : i32
    %c0_i32_0 = arith.constant 0 : i32
    return %arg0, %c0_i32 : i32, i32
  }
  func.func @transform_7(%arg0: i32) -> (i32, i32, i32) {
    %c0_i32 = arith.constant 0 : i32
    %c0_i32_0 = arith.constant 0 : i32
    %c0_i32_1 = arith.constant 0 : i32
    return %arg0, %c0_i32, %c0_i32_0 : i32, i32, i32
  }
}

</mosaic_0001>

<bundles_post_ra>
// kernel: tpu_custom_call.1
= control target key start
LH: loop header
LB: loop body
LE: loop exit
PB: predicated region body
PF: predicated region fallthrough
CT: control target
= control target key end

     0   :  { %s6816_s24 = smov 0   ;;  %s9998_s0 = inlined_call_operand.vmem [shape: bf16[128,128], index: 0, kind: input, shape index: {}]   ;;  %s9999_s1 = inlined_call_operand.vmem [shape: f32[256,1], index: 1, kind: input, shape index: {}]   ;;  %s10000_s2 = inlined_call_operand.vmem [shape: f32[256,32], index: 2, kind: input, shape index: {}]   ;;  %s10001_s3 = inlined_call_operand.vmem [shape: f32[32,8], index: 3, kind: input, shape index: {}]   ;;  %s10002_s4 = inlined_call_operand.vmem [shape: bf16[8,32,128], index: 4, kind: input, shape index: {}]   ;;  %s10003_s5 = inlined_call_operand.vmem [shape: bf16[8,128,32], index: 5, kind: input, shape index: {}]   ;;  %s10004_s6 = inlined_call_operand.vmem [shape: f32[256,32], index: 6, kind: output, shape index: {0}]   ;;  %s10005_s7 = inlined_call_operand.vmem [shape: f32[2,1,1], index: 7, kind: output, shape index: {1}]  }
   0x1 LB: > { %s6822_s25 = sadd.s32 4294967295, %s6770_s24   ;;  %p5357_p0 = scmp.ge.s32.totalorder %s6770_s24, 1  ;;  %s6770_s24 = sphi %s6816_s24, %s18_s24  }
   0x2   : > { %p252_p1 = scmp.lt.s32.totalorder %s6770_s24, 3 }
   0x4   : > { %p253_p2 = pnand %p5357_p0, %p252_p1 }
   0x6   : > { %256 = sbr.rel (%p253_p2) target bundleno = 4185 (0x1059), region = 44 }
   0xd   : > { %v346_v0 = vld [vmem:[%s10001_s3] sm:$0xff]  ;;  %v347_v1 = vld [vmem:[%s10001_s3 + $0x8] sm:$0xff]  ;;  %v348_v2 = vld [vmem:[%s10001_s3 + $0x10] sm:$0xff]  ;;  %s5358_s9 = sshll.u32 %s6822_s25, 4  ;;  %vm366_vm0 = vcmask 261120   ;;  %vm560_vm1 = vcmask 64512  }
   0xe   : > { %v6382_v3 = vpack.c.bf16 %v347_v1, %v346_v0  ;;  %v349_v4 = vld [vmem:[%s10001_s3 + $0x18] sm:$0xff]  ;;  %p293_p3 = scmp.lt.s32.totalorder %s5358_s9, 31  ;;  %s6774_s19 = smov 8  }
   0xf   : > { %v6386_v5 = vpack.c.bf16 %v349_v4, %v348_v2  ;;  %s6775_s16 = smov 120   ;;  %p310_p4 = scmp.lt.s32.totalorder %s6822_s25, 1 }
  0x10   : > { %6383 = vmatprep.subr.bf16.mxu0 %v6382_v3  ;;  %s10667_s9 = smov (!%p293_p3, %s5358_s9), 31 }
  0x11   : > { %6385 = vmatpush3.bf16.msra.mxu0 %v6382_v3  ;;  %s6839_s12 = sshll.u32 %s10667_s9, 3  ;;  %s10669_s25 = smov (!%p310_p4, %s6822_s25), 1 }
  0x12   : > { %6387 = vmatprep.subr.bf16.mxu0 %v6386_v5  ;;  %s6845_s15 = scalar_lea.vmem %s10000_s2, %s6839_s12  ;;  %s7748_s18 = scalar_lea.vmem %s9999_s1, %s6839_s12 }
  0x13   : > { %v314_v6 = vld [vmem:[%s6845_s15] sm:$0xff]  ;;  %v315_v7 = vld [vmem:[%s6845_s15 + $0x8] sm:$0xff]  ;;  %v316_v9 = vld [vmem:[%s6845_s15 + $0x10] sm:$0xff] }
  0x14   : > { %6038 = vmatprep.mubr.msk.f32.mxu0 %vm366_vm0, %v314_v6  ;;  %v6850_v8 = vpack.c.bf16 %v315_v7, %v314_v6  ;;  %v317_v10 = vld [vmem:[%s6845_s15 + $0x18] sm:$0xff]  ;;  %v318_v12 = vld [vmem:[%s6845_s15 + $0x20] sm:$0xff]  ;;  %v319_v13 = vld [vmem:[%s6845_s15 + $0x28] sm:$0xff] }
  0x15   : > { %6389 = vmatpush3.bf16.msra.mxu0 %v6386_v5  ;;  %v6854_v11 = vpack.c.bf16 %v317_v10, %v316_v9  ;;  %v6863_v14 = vpack.c.bf16 %v319_v13, %v318_v12  ;;  %v320_v15 = vld [vmem:[%s6845_s15 + $0x30] sm:$0xff]  ;;  %v321_v16 = vld [vmem:[%s6845_s15 + $0x38] sm:$0xff]  ;;  %v322_v18 = vld [vmem:[%s6845_s15 + $0x40] sm:$0xff] }
  0x16   : > { %10219 = vst [vmem:[#allocation5_spill] sm:$0xff] %v6850_v8  ;;  %6126 = vmatprep.subr.bf16.mxu1 %v6850_v8  ;;  %v6871_v17 = vpack.c.bf16 %v321_v16, %v320_v15  ;;  %v323_v19 = vld [vmem:[%s6845_s15 + $0x48] sm:$0xff]  ;;  %v324_v21 = vld [vmem:[%s6845_s15 + $0x50] sm:$0xff]  ;;  %v325_v22 = vld [vmem:[%s6845_s15 + $0x58] sm:$0xff] }
  0x17   : > { %10220 = vst [vmem:[#allocation6_spill] sm:$0xff] %v6854_v11  ;;  %6127 = vmatpush3.bf16.msra.mxu1 %v6850_v8  ;;  %10221 = vst [vmem:[#allocation7_spill] sm:$0xff] %v6863_v14  ;;  %v6879_v20 = vpack.c.bf16 %v323_v19, %v322_v18  ;;  %v6887_v23 = vpack.c.bf16 %v325_v22, %v324_v21  ;;  %v326_v24 = vld [vmem:[%s6845_s15 + $0x60] sm:$0xff]  ;;  %v327_v25 = vld [vmem:[%s6845_s15 + $0x68] sm:$0xff] }
  0x18   : > { %6039 = vmatmul.mubr.msk.f32.vlgmr.msra.gmra.mrb[0].mxu0 %vm366_vm0, %v315_v7  ;;  %6128 = vmatprep.subr.bf16.mxu1 %v6854_v11  ;;  %10222 = vst [vmem:[#allocation8_spill] sm:$0xff] %v6871_v17  ;;  %v6895_v26 = vpack.c.bf16 %v327_v25, %v326_v24  ;;  %v328_v27 = vld [vmem:[%s6845_s15 + $0x70] sm:$0xff]  ;;  %v329_v28 = vld [vmem:[%s6845_s15 + $0x78] sm:$0xff]  ;;  %s312_s15 = scalar_lea.vmem %s10005_s7, %s10669_s25 }
  0x19   : > { %6041 = vmatprep.mubr.msk.f32.mxu0 %vm366_vm0, %v316_v9  ;;  %10223 = vst [vmem:[#allocation9_spill] sm:$0xff] %v6879_v20  ;;  %10224 = vst [vmem:[#allocation10_spill] sm:$0xff] %v6887_v23  ;;  %v6903_v29 = vpack.c.bf16 %v329_v28, %v328_v27 }
  0x1a   : > { %10225 = vst [vmem:[#allocation11_spill] sm:$0xff] %v6895_v26 }
  0x1b   : > { %6129 = vmatpush3.bf16.msra.mxu1 %v6854_v11  ;;  %10226 = vst [vmem:[#allocation12_spill] sm:$0xff] %v6903_v29 }
  0x1c   : > { %6042 = vmatmul.mubr.msk.f32.gmra.mrb[2].mxu0 %vm366_vm0, %v317_v10  ;;  %6130 = vmatprep.subr.bf16.mxu1 %v6863_v14 }
  0x1d   : > { %6044 = vmatprep.mubr.msk.f32.mxu0 %vm366_vm0, %v318_v12 }
  0x1f   : > { %6131 = vmatpush3.bf16.msra.mxu1 %v6863_v14 }
  0x20   : > { %6045 = vmatmul.mubr.msk.f32.gmra.mrb[4].mxu0 %vm366_vm0, %v319_v13  ;;  %6132 = vmatprep.subr.bf16.mxu1 %v6871_v17 }
  0x21   : > { %6047 = vmatprep.mubr.msk.f32.mxu0 %vm366_vm0, %v320_v15 }
  0x23   : > { %6133 = vmatpush3.bf16.msra.mxu1 %v6871_v17 }
  0x24   : > { %6048 = vmatmul.mubr.msk.f32.gmra.mrb[6].mxu0 %vm366_vm0, %v321_v16  ;;  %6134 = vmatprep.subr.bf16.mxu1 %v6879_v20 }
  0x25   : > { %6050 = vmatprep.mubr.msk.f32.mxu0 %vm366_vm0, %v322_v18 }
  0x27   : > { %6135 = vmatpush3.bf16.msra.mxu1 %v6879_v20 }
  0x28   : > { %6051 = vmatmul.mubr.msk.f32.gmra.mrb[8].mxu0 %vm366_vm0, %v323_v19  ;;  %6136 = vmatprep.subr.bf16.mxu1 %v6887_v23 }
  0x29   : > { %6053 = vmatprep.mubr.msk.f32.mxu0 %vm366_vm0, %v324_v21 }
  0x2b   : > { %6137 = vmatpush3.bf16.msra.mxu1 %v6887_v23 }
  0x2c   : > { %6054 = vmatmul.mubr.msk.f32.gmra.mrb[10].mxu0 %vm366_vm0, %v325_v22  ;;  %6138 = vmatprep.subr.bf16.mxu1 %v6895_v26 }
  0x2d   : > { %6056 = vmatprep.mubr.msk.f32.mxu0 %vm366_vm0, %v326_v24 }
  0x2f   : > { %6139 = vmatpush3.bf16.msra.mxu1 %v6895_v26 }
  0x30   : > { %6057 = vmatmul.mubr.msk.f32.gmra.mrb[12].mxu0 %vm366_vm0, %v327_v25  ;;  %6140 = vmatprep.subr.bf16.mxu1 %v6903_v29 }
  0x31   : > { %6059 = vmatprep.mubr.msk.f32.mxu0 %vm366_vm0, %v328_v27 }
  0x33   : > { %6141 = vmatpush3.bf16.msra.mxu1 %v6903_v29 }
  0x34   : > { %6060 = vmatmul.mubr.msk.f32.gmra.mrb[14].mxu0 %vm366_vm0, %v329_v28 }
  0xeb   : > { %v6040_v30 = vpop.f32.mrb[0].mxu0 }
  0xec   : > { %v481_v31 = vpop.f32.mrb[1].mxu0  ;;  %v564_v36 = vsel %vm560_vm1, %v6040_v30, -inf }
  0xed   : > { %v561_v32 = vsel %vm560_vm1, %v481_v31, -inf }
  0xee   : > { %562 = vmax.xlane.f32.xlu0 %v561_v32 }
  0xef   : > { %v6043_v33 = vpop.f32.mrb[2].mxu0 }
  0xf0   : > { %v491_v34 = vpop.f32.mrb[3].mxu0  ;;  %v570_v35 = vsel %vm560_vm1, %v6043_v33, -inf }
  0xf1   : > { %571 = vmax.xlane.f32.xlu1 %v570_v35  ;;  %v567_v39 = vsel %vm560_vm1, %v491_v34, -inf }
  0xf2   : > { %565 = vmax.xlane.f32.xlu0 %v564_v36 }
  0xf3   : > { %v6046_v37 = vpop.f32.mrb[4].mxu0 }
  0xf4   : > { %v501_v38 = vpop.f32.mrb[5].mxu0  ;;  %v576_v41 = vsel %vm560_vm1, %v6046_v37, -inf }
  0xf5   : > { %568 = vmax.xlane.f32.xlu1 %v567_v39  ;;  %v573_v40 = vsel %vm560_vm1, %v501_v38, -inf }
  0xf6   : > { %574 = vmax.xlane.f32.xlu0 %v573_v40 }
  0xf7   : > { %v6917_v42 = vpop.f32.mrb[6].mxu0 }
  0xf8   : > { %v511_v43 = vpop.f32.mrb[7].mxu0  ;;  %v582_v45 = vsel %vm560_vm1, %v6917_v42, -inf }
  0xf9   : > { %577 = vmax.xlane.f32.xlu1 %v576_v41  ;;  %v579_v44 = vsel %vm560_vm1, %v511_v43, -inf }
  0xfa   : > { %580 = vmax.xlane.f32.xlu0 %v579_v44 }
  0xfb   : > { %v6922_v46 = vpop.f32.mrb[8].mxu0 }
  0xfc   : > { %v521_v47 = vpop.f32.mrb[9].mxu0  ;;  %v588_v49 = vsel %vm560_vm1, %v6922_v46, -inf }
  0xfd   : > { %583 = vmax.xlane.f32.xlu1 %v582_v45  ;;  %v585_v48 = vsel %vm560_vm1, %v521_v47, -inf }
  0xfe   : > { %586 = vmax.xlane.f32.xlu0 %v585_v48 }
  0xff   : > { %v6927_v50 = vpop.f32.mrb[10].mxu0 }
 0x100   : > { %v6929_v51 = vpop.f32.mrb[11].mxu0  ;;  %v594_v53 = vsel %vm560_vm1, %v6927_v50, -inf }
 0x101   : > { %589 = vmax.xlane.f32.xlu1 %v588_v49  ;;  %v591_v52 = vsel %vm560_vm1, %v6929_v51, -inf }
 0x102   : > { %592 = vmax.xlane.f32.xlu0 %v591_v52 }
 0x103   : > { %v6935_v54 = vpop.f32.mrb[12].mxu0 }
 0x104   : > { %v6937_v55 = vpop.f32.mrb[13].mxu0  ;;  %v600_v57 = vsel %vm560_vm1, %v6935_v54, -inf }
 0x105   : > { %595 = vmax.xlane.f32.xlu1 %v594_v53  ;;  %v597_v56 = vsel %vm560_vm1, %v6937_v55, -inf }
 0x106   : > { %598 = vmax.xlane.f32.xlu0 %v597_v56 }
 0x107   : > { %v6943_v58 = vpop.f32.mrb[14].mxu0 }
 0x108   : > { %v6945_v59 = vpop.f32.mrb[15].mxu0  ;;  %v606_v61 = vsel %vm560_vm1, %v6943_v58, -inf }
 0x109   : > { %601 = vmax.xlane.f32.xlu1 %v600_v57  ;;  %v603_v60 = vsel %vm560_vm1, %v6945_v59, -inf }
 0x10a   : > { %604 = vmax.xlane.f32.xlu0 %v603_v60 }
 0x10d   : > { %607 = vmax.xlane.f32.xlu1 %v606_v61 }
 0x17b   : > { %v563_v62 = vpop.xlane.xlu0 %562 }
 0x17c   : > { %v609_v63 = vsub.f32 %v481_v31, %v563_v62 }
 0x17e   : > { %v625_v0 = vmul.f32 1.442695, %v609_v63  ;;  %v572_v1 = vpop.xlane.xlu1 %571 }
 0x17f   : > { %v612_v2 = vsub.f32 %v6043_v33, %v572_v1  ;;  %v566_v3 = vpop.xlane.xlu0 %565 }
 0x180   : > { %6668 = vpow2.f32 %v625_v0  ;;  %v610_v4 = vsub.f32 %v6040_v30, %v566_v3 }
 0x181   : > { %v631_v5 = vmul.f32 1.442695, %v612_v2 }
 0x182   : > { %v627_v6 = vmul.f32 1.442695, %v610_v4  ;;  %v569_v7 = vpop.xlane.xlu1 %568 }
 0x183   : > { %v611_v9 = vsub.f32 %v491_v34, %v569_v7  ;;  %v575_v10 = vpop.xlane.xlu0 %574 }
 0x184   : > { %6670 = vpow2.f32 %v627_v6  ;;  %v613_v12 = vsub.f32 %v501_v38, %v575_v10 }
 0x185   : > { %v629_v13 = vmul.f32 1.442695, %v611_v9  ;;  %6672 = vpow2.f32 %v631_v5 }
 0x186   : > { %v633_v15 = vmul.f32 1.442695, %v613_v12  ;;  %v578_v16 = vpop.xlane.xlu1 %577 }
 0x187   : > { %6674 = vpow2.f32 %v629_v13  ;;  %v614_v18 = vsub.f32 %v6046_v37, %v578_v16  ;;  %v581_v19 = vpop.xlane.xlu0 %580 }
 0x188   : > { %v615_v21 = vsub.f32 %v511_v43, %v581_v19  ;;  %6676 = vpow2.f32 %v633_v15 }
 0x189   : > { %v635_v22 = vmul.f32 1.442695, %v614_v18 }
 0x18a   : > { %v6951_v24 = vpop.eup %6668  ;;  %v637_v25 = vmul.f32 1.442695, %v615_v21  ;;  %v584_v27 = vpop.xlane.xlu1 %583 }
 0x18b   : > { %6678 = vpow2.f32 %v635_v22  ;;  %v616_v28 = vsub.f32 %v6917_v42, %v584_v27  ;;  %v587_v30 = vpop.xlane.xlu0 %586  ;;  %v657_v31 = vsel %vm560_vm1, %v6951_v24, 0.0 }
 0x18c   : > { %v617_v32 = vsub.f32 %v521_v47, %v587_v30  ;;  %658 = vadd.xlane.f32.xlu0 %v657_v31  ;;  %6680 = vpow2.f32 %v637_v25 }
 0x18d   : > { %v639_v33 = vmul.f32 1.442695, %v616_v28 }
 0x18e   : > { %v6956_v34 = vpop.eup %6670  ;;  %v641_v35 = vmul.f32 1.442695, %v617_v32  ;;  %v590_v36 = vpop.xlane.xlu1 %589 }
 0x18f   : > { %6682 = vpow2.f32 %v639_v33  ;;  %v618_v37 = vsub.f32 %v6922_v46, %v590_v36  ;;  %v593_v38 = vpop.xlane.xlu0 %592  ;;  %v660_v39 = vsel %vm560_vm1, %v6956_v34, 0.0  ;;  %v6961_v40 = vpop.eup %6672 }
 0x190   : > { %v619_v41 = vsub.f32 %v6929_v51, %v593_v38  ;;  %661 = vadd.xlane.f32.xlu1 %v660_v39  ;;  %6684 = vpow2.f32 %v641_v35  ;;  %v666_v51 = vsel %vm560_vm1, %v6961_v40, 0.0 }
 0x191   : > { %v6964_v42 = vpop.eup %6674  ;;  %v643_v43 = vmul.f32 1.442695, %v618_v37 }
 0x192   : > { %v645_v44 = vmul.f32 1.442695, %v619_v41  ;;  %v596_v45 = vpop.xlane.xlu1 %595  ;;  %v663_v47 = vsel %vm560_vm1, %v6964_v42, 0.0  ;;  %v6968_v48 = vpop.eup %6676 }
 0x193   : > { %6686 = vpow2.f32 %v643_v43  ;;  %v620_v46 = vsub.f32 %v6927_v50, %v596_v45  ;;  %v599_v49 = vpop.xlane.xlu0 %598  ;;  %664 = vadd.xlane.f32.xlu0 %v663_v47  ;;  %v669_v61 = vsel %vm560_vm1, %v6968_v48, 0.0 }
 0x194   : > { %v621_v52 = vsub.f32 %v6937_v55, %v599_v49  ;;  %667 = vadd.xlane.f32.xlu1 %v666_v51  ;;  %6688 = vpow2.f32 %v645_v44 }
 0x195   : > { %v6974_v53 = vpop.eup %6678  ;;  %v647_v56 = vmul.f32 1.442695, %v620_v46 }
 0x196   : > { %v649_v57 = vmul.f32 1.442695, %v621_v52  ;;  %v602_v60 = vpop.xlane.xlu1 %601  ;;  %v672_v50 = vsel %vm560_vm1, %v6974_v53, 0.0  ;;  %v6980_v62 = vpop.eup %6680 }
 0x197   : > { %6690 = vpow2.f32 %v647_v56  ;;  %v622_v63 = vsub.f32 %v6935_v54, %v602_v60  ;;  %670 = vadd.xlane.f32.xlu0 %v669_v61  ;;  %v605_v55 = vpop.xlane.xlu0 %604  ;;  %v675_v5 = vsel %vm560_vm1, %v6980_v62, 0.0 }
 0x198   : > { %v623_v0 = vsub.f32 %v6945_v59, %v605_v55  ;;  %673 = vadd.xlane.f32.xlu1 %v672_v50  ;;  %6692 = vpow2.f32 %v649_v57 }
 0x199   : > { %v6984_v1 = vpop.eup %6682  ;;  %v651_v2 = vmul.f32 1.442695, %v622_v63 }
 0x19a   : > { %v653_v3 = vmul.f32 1.442695, %v623_v0  ;;  %v608_v4 = vpop.xlane.xlu1 %607  ;;  %v678_v6 = vsel %vm560_vm1, %v6984_v1, 0.0  ;;  %v6990_v7 = vpop.eup %6684 }
 0x19b   : > { %6694 = vpow2.f32 %v651_v2  ;;  %v624_v54 = vsub.f32 %v6943_v58, %v608_v4  ;;  %676 = vadd.xlane.f32.xlu0 %v675_v5  ;;  %v681_v10 = vsel %vm560_vm1, %v6990_v7, 0.0 }
 0x19c   : > { %679 = vadd.xlane.f32.xlu1 %v678_v6  ;;  %6696 = vpow2.f32 %v653_v3 }
 0x19d   : > { %v6993_v59 = vpop.eup %6686  ;;  %v655_v9 = vmul.f32 1.442695, %v624_v54 }
 0x19e   : > { %v684_v12 = vsel %vm560_vm1, %v6993_v59, 0.0  ;;  %v6999_v13 = vpop.eup %6688 }
 0x19f   : > { %6698 = vpow2.f32 %v655_v9  ;;  %682 = vadd.xlane.f32.xlu0 %v681_v10  ;;  %v687_v58 = vsel %vm560_vm1, %v6999_v13, 0.0 }
 0x1a0   : > { %685 = vadd.xlane.f32.xlu1 %v684_v12 }
 0x1a1   : > { %v7001_v15 = vpop.eup %6690 }
 0x1a2   : > { %v690_v16 = vsel %vm560_vm1, %v7001_v15, 0.0  ;;  %v7007_v18 = vpop.eup %6692 }
 0x1a3   : > { %688 = vadd.xlane.f32.xlu0 %v687_v58  ;;  %v693_v21 = vsel %vm560_vm1, %v7007_v18, 0.0 }
 0x1a4   : > { %691 = vadd.xlane.f32.xlu1 %v690_v16 }
 0x1a5   : > { %v7009_v19 = vpop.eup %6694 }
 0x1a6   : > { %v696_v22 = vsel %vm560_vm1, %v7009_v19, 0.0  ;;  %v7015_v25 = vpop.eup %6696 }
 0x1a7   : > { %694 = vadd.xlane.f32.xlu0 %v693_v21  ;;  %v699_v28 = vsel %vm560_vm1, %v7015_v25, 0.0 }
 0x1a8   : > { %697 = vadd.xlane.f32.xlu1 %v696_v22 }
 0x1a9   : > { %v7017_v27 = vpop.eup %6698 }
 0x1aa   : > { %v702_v30 = vsel %vm560_vm1, %v7017_v27, 0.0 }
 0x1ab   : > { %700 = vadd.xlane.f32.xlu0 %v699_v28 }
 0x1ac   : > { %703 = vadd.xlane.f32.xlu1 %v702_v30 }
 0x219   : > { %v659_v31 = vpop.xlane.xlu0 %658 }
 0x21a   : > { %6700 = vrcp.f32 %v659_v31 }
 0x21d   : > { %v662_v32 = vpop.xlane.xlu1 %661 }
 0x21e   : > { %6702 = vrcp.f32 %v662_v32 }
 0x220   : > { %v665_v33 = vpop.xlane.xlu0 %664 }
 0x221   : > { %6704 = vrcp.f32 %v665_v33  ;;  %v668_v35 = vpop.xlane.xlu1 %667 }
 0x222   : > { %6706 = vrcp.f32 %v668_v35 }
 0x224   : > { %v6701_v36 = vpop.eup %6700  ;;  %v671_v37 = vpop.xlane.xlu0 %670 }
 0x225   : > { %6708 = vrcp.f32 %v671_v37  ;;  %v674_v38 = vpop.xlane.xlu1 %673  ;;  %v7024_v39 = vmul.f32 %v6701_v36, %v6951_v24 }
 0x226   : > { %6710 = vrcp.f32 %v674_v38 }
 0x227   : > { %10227 = vst [vmem:[#allocation13_spill] sm:$0xff] %v7024_v39  ;;  %v739_v41 = vsel %vm560_vm1, %v7024_v39, -inf }
 0x228   : > { %v6703_v43 = vpop.eup %6702  ;;  %740 = vmax.xlane.f32.xlu0 %v739_v41  ;;  %v677_v44 = vpop.xlane.xlu0 %676 }
 0x229   : > { %6712 = vrcp.f32 %v677_v44  ;;  %v680_v45 = vpop.xlane.xlu1 %679  ;;  %v7029_v47 = vmul.f32 %v6703_v43, %v6956_v34 }
 0x22a   : > { %6714 = vrcp.f32 %v680_v45  ;;  %v737_v45 = vlaneseq }
 0x22b   : > { %10228 = vst [vmem:[#allocation14_spill] sm:$0xff] %v7029_v47  ;;  %v6705_v46 = vpop.eup %6704  ;;  %v742_v49 = vsel %vm560_vm1, %v7029_v47, -inf }
 0x22c   : > { %v6707_v51 = vpop.eup %6706  ;;  %743 = vmax.xlane.f32.xlu1 %v742_v49  ;;  %v683_v24 = vpop.xlane.xlu0 %682  ;;  %v7034_v52 = vmul.f32 %v6705_v46, %v6964_v42  ;;  %v7103_v46 = vand.u32 127, %v737_v45 }
 0x22d   : > { %6716 = vrcp.f32 %v683_v24  ;;  %v686_v56 = vpop.xlane.xlu1 %685  ;;  %v7037_v57 = vmul.f32 %v6707_v51, %v6961_v40 }
 0x22e   : > { %10229 = vst [vmem:[#allocation15_spill] sm:$0xff] %v7034_v52  ;;  %6718 = vrcp.f32 %v686_v56  ;;  %v745_v34 = vsel %vm560_vm1, %v7034_v52, -inf }
 0x22f   : > { %10230 = vst [vmem:[#allocation16_spill] sm:$0xff] %v7037_v57  ;;  %v6709_v60 = vpop.eup %6708  ;;  %746 = vmax.xlane.f32.xlu0 %v745_v34  ;;  %v748_v61 = vsel %vm560_vm1, %v7037_v57, -inf }
 0x230   : > { %v6711_v50 = vpop.eup %6710  ;;  %749 = vmax.xlane.f32.xlu1 %v748_v61  ;;  %v689_v63 = vpop.xlane.xlu0 %688  ;;  %v7044_v42 = vmul.f32 %v6709_v60, %v6968_v48 }
 0x231   : > { %6720 = vrcp.f32 %v689_v63  ;;  %v692_v55 = vpop.xlane.xlu1 %691  ;;  %v7047_v40 = vmul.f32 %v6711_v50, %v6974_v53 }
 0x232   : > { %10231 = vst [vmem:[#allocation17_spill] sm:$0xff] %v7044_v42  ;;  %6722 = vrcp.f32 %v692_v55  ;;  %v751_v0 = vsel %vm560_vm1, %v7044_v42, -inf }
 0x233   : > { %10232 = vst [vmem:[#allocation18_spill] sm:$0xff] %v7047_v40  ;;  %v6713_v2 = vpop.eup %6712  ;;  %752 = vmax.xlane.f32.xlu0 %v751_v0  ;;  %v754_v3 = vsel %vm560_vm1, %v7047_v40, -inf }
 0x234   : > { %v6715_v4 = vpop.eup %6714  ;;  %755 = vmax.xlane.f32.xlu1 %v754_v3  ;;  %v695_v5 = vpop.xlane.xlu0 %694  ;;  %v7054_v48 = vmul.f32 %v6713_v2, %v6980_v62 }
 0x235   : > { %6724 = vrcp.f32 %v695_v5  ;;  %v698_v6 = vpop.xlane.xlu1 %697  ;;  %v7057_v53 = vmul.f32 %v6715_v4, %v6984_v1 }
 0x236   : > { %10233 = vst [vmem:[#allocation19_spill] sm:$0xff] %v7054_v48  ;;  %6726 = vrcp.f32 %v698_v6  ;;  %v757_v54 = vsel %vm560_vm1, %v7054_v48, -inf }
 0x237   : > { %10234 = vst [vmem:[#allocation20_spill] sm:$0xff] %v7057_v53  ;;  %v6717_v9 = vpop.eup %6716  ;;  %758 = vmax.xlane.f32.xlu0 %v757_v54  ;;  %v760_v10 = vsel %vm560_vm1, %v7057_v53, -inf }
 0x238   : > { %v6719_v12 = vpop.eup %6718  ;;  %761 = vmax.xlane.f32.xlu1 %v760_v10  ;;  %v701_v58 = vpop.xlane.xlu0 %700  ;;  %v7064_v62 = vmul.f32 %v6717_v9, %v6990_v7 }
 0x239   : > { %6728 = vrcp.f32 %v701_v58  ;;  %v704_v16 = vpop.xlane.xlu1 %703  ;;  %v7067_v1 = vmul.f32 %v6719_v12, %v6993_v59 }
 0x23a   : > { %10235 = vst [vmem:[#allocation21_spill] sm:$0xff] %v7064_v62  ;;  %6730 = vrcp.f32 %v704_v16  ;;  %v763_v21 = vsel %vm560_vm1, %v7064_v62, -inf }
 0x23b   : > { %10236 = vst [vmem:[#allocation22_spill] sm:$0xff] %v7067_v1  ;;  %v6721_v22 = vpop.eup %6720  ;;  %764 = vmax.xlane.f32.xlu0 %v763_v21  ;;  %v766_v28 = vsel %vm560_vm1, %v7067_v1, -inf }
 0x23c   : > { %v6723_v30 = vpop.eup %6722  ;;  %767 = vmax.xlane.f32.xlu1 %v766_v28  ;;  %v7074_v31 = vmul.f32 %v6721_v22, %v6999_v13 }
 0x23d   : > { %v7077_v7 = vmul.f32 %v6723_v30, %v7001_v15 }
 0x23e   : > { %10237 = vst [vmem:[#allocation23_spill] sm:$0xff] %v7074_v31  ;;  %v769_v59 = vsel %vm560_vm1, %v7074_v31, -inf }
 0x23f   : > { %10238 = vst [vmem:[#allocation24_spill] sm:$0xff] %v7077_v7  ;;  %v6725_v32 = vpop.eup %6724  ;;  %770 = vmax.xlane.f32.xlu0 %v769_v59  ;;  %v772_v33 = vsel %vm560_vm1, %v7077_v7, -inf }
 0x240   : > { %v6727_v35 = vpop.eup %6726  ;;  %773 = vmax.xlane.f32.xlu1 %v772_v33  ;;  %v7084_v36 = vmul.f32 %v6725_v32, %v7007_v18 }
 0x241   : > { %v7087_v37 = vmul.f32 %v6727_v35, %v7009_v19 }
 0x242   : > { %10239 = vst [vmem:[#allocation25_spill] sm:$0xff] %v7084_v36  ;;  %v775_v13 = vsel %vm560_vm1, %v7084_v36, -inf }
 0x243   : > { %10240 = vst [vmem:[#allocation26_spill] sm:$0xff] %v7087_v37  ;;  %v6729_v15 = vpop.eup %6728  ;;  %776 = vmax.xlane.f32.xlu0 %v775_v13  ;;  %v778_v38 = vsel %vm560_vm1, %v7087_v37, -inf }
 0x244   : > { %v6731_v41 = vpop.eup %6730  ;;  %779 = vmax.xlane.f32.xlu1 %v778_v38  ;;  %v7094_v43 = vmul.f32 %v6729_v15, %v7015_v25 }
 0x245   : > { %v7097_v44 = vmul.f32 %v6731_v41, %v7017_v27 }
 0x246   : > { %10241 = vst [vmem:[#allocation27_spill] sm:$0xff] %v7094_v43  ;;  %v781_v18 = vsel %vm560_vm1, %v7094_v43, -inf }
 0x247   : > { %10242 = vst [vmem:[#allocation28_spill] sm:$0xff] %v7097_v44  ;;  %782 = vmax.xlane.f32.xlu0 %v781_v18  ;;  %v784_v19 = vsel %vm560_vm1, %v7097_v44, -inf }
 0x248   : > { %785 = vmax.xlane.f32.xlu1 %v784_v19 }
 0x2b5   : > { %v7105_v49 = vpop.xlane.xlu0 %740 }
 0x2b6   : > { %10243 = vst [vmem:[#allocation29_spill] sm:$0xff] %v7105_v49  ;;  %vm787_vm2 = vcmp.ge.f32.partialorder %v7024_v39, %v7105_v49 }
 0x2b7   : > { %v803_v25 = vsel %vm787_vm2, %v7103_v46, 8 }
 0x2b8   : > { %v7111_v27 = vsel %vm560_vm1, %v803_v25, 2147483647 }
 0x2b9   : > { %v7113_v51 = vpop.xlane.xlu1 %743  ;;  %v821_v24 = vshra.s32 %v7111_v27, 16 }
 0x2ba   : > { %10244 = vst [vmem:[#allocation30_spill] sm:$0xff] %v7113_v51  ;;  %vm788_vm3 = vcmp.ge.f32.partialorder %v7029_v47, %v7113_v51 }
 0x2bb   : > { %v7118_v56 = vcvt.s32.f32 %v821_v24  ;;  %v804_v34 = vsel %vm788_vm3, %v7103_v46, 8 }
 0x2bc   : > { %v7121_v60 = vpop.xlane.xlu0 %746  ;;  %v7124_v61 = vsel %vm560_vm1, %v804_v34, 2147483647 }
 0x2bd   : > { %10245 = vst [vmem:[#allocation31_spill] sm:$0xff] %v7121_v60  ;;  %v7126_v50 = vpop.xlane.xlu1 %749  ;;  %824 = vmin.xlane.f32.xlu0 %v7118_v56  ;;  %v836_v63 = vshra.s32 %v7124_v61, 16  ;;  %vm789_vm4 = vcmp.ge.f32.partialorder %v7034_v52, %v7121_v60 }
 0x2be   : > { %10246 = vst [vmem:[#allocation32_spill] sm:$0xff] %v7126_v50  ;;  %v805_v55 = vsel %vm789_vm4, %v7103_v46, 8  ;;  %vm790_vm5 = vcmp.ge.f32.partialorder %v7037_v57, %v7126_v50 }
 0x2bf   : > { %v7135_v0 = vcvt.s32.f32 %v836_v63  ;;  %v7138_v2 = vsel %vm560_vm1, %v805_v55, 2147483647  ;;  %v806_v3 = vsel %vm790_vm5, %v7103_v46, 8 }
 0x2c0   : > { %v7141_v4 = vpop.xlane.xlu0 %752  ;;  %v851_v5 = vshra.s32 %v7138_v2, 16  ;;  %v7145_v6 = vsel %vm560_vm1, %v806_v3, 2147483647 }
 0x2c1   : > { %10247 = vst [vmem:[#allocation33_spill] sm:$0xff] %v7141_v4  ;;  %839 = vmin.xlane.f32.xlu1 %v7135_v0  ;;  %v7148_v54 = vpop.xlane.xlu1 %755  ;;  %v866_v9 = vshra.s32 %v7145_v6, 16  ;;  %vm791_vm6 = vcmp.ge.f32.partialorder %v7044_v42, %v7141_v4 }
 0x2c2   : > { %10248 = vst [vmem:[#allocation34_spill] sm:$0xff] %v7148_v54  ;;  %v7153_v10 = vcvt.s32.f32 %v851_v5  ;;  %v807_v12 = vsel %vm791_vm6, %v7103_v46, 8  ;;  %vm792_vm7 = vcmp.ge.f32.partialorder %v7047_v40, %v7148_v54 }
 0x2c3   : > { %v7158_v58 = vcvt.s32.f32 %v866_v9  ;;  %v7161_v16 = vsel %vm560_vm1, %v807_v12, 2147483647  ;;  %v808_v21 = vsel %vm792_vm7, %v7103_v46, 8 }
 0x2c4   : > { %854 = vmin.xlane.f32.xlu0 %v7153_v10  ;;  %v7165_v22 = vpop.xlane.xlu0 %758  ;;  %v881_v28 = vshra.s32 %v7161_v16, 16  ;;  %v7169_v30 = vsel %vm560_vm1, %v808_v21, 2147483647  ;;  %v880_v54 = vand.u32 65535, %v7161_v16 }
 0x2c5   : > { %10249 = vst [vmem:[#allocation35_spill] sm:$0xff] %v7165_v22  ;;  %869 = vmin.xlane.f32.xlu1 %v7158_v58  ;;  %v7172_v59 = vpop.xlane.xlu1 %761  ;;  %v896_v32 = vshra.s32 %v7169_v30, 16  ;;  %vm793_vm8 = vcmp.ge.f32.partialorder %v7054_v48, %v7165_v22  ;;  %v865_v22 = vand.u32 65535, %v7145_v6 }
 0x2c6   : > { %10250 = vst [vmem:[#allocation36_spill] sm:$0xff] %v7172_v59  ;;  %v7177_v33 = vcvt.s32.f32 %v881_v28  ;;  %v809_v35 = vsel %vm793_vm8, %v7103_v46, 8  ;;  %vm794_vm9 = vcmp.ge.f32.partialorder %v7057_v53, %v7172_v59 }
 0x2c7   : > { %v7182_v13 = vcvt.s32.f32 %v896_v32  ;;  %v7185_v15 = vsel %vm560_vm1, %v809_v35, 2147483647  ;;  %v810_v38 = vsel %vm794_vm9, %v7103_v46, 8 }
 0x2c8   : > { %884 = vmin.xlane.f32.xlu0 %v7177_v33  ;;  %v7189_v41 = vpop.xlane.xlu0 %764  ;;  %v911_v18 = vshra.s32 %v7185_v15, 16  ;;  %v7193_v19 = vsel %vm560_vm1, %v810_v38, 2147483647  ;;  %v910_v16 = vand.u32 65535, %v7185_v15 }
 0x2c9   : > { %10251 = vst [vmem:[#allocation37_spill] sm:$0xff] %v7189_v41  ;;  %899 = vmin.xlane.f32.xlu1 %v7182_v13  ;;  %v7196_v45 = vpop.xlane.xlu1 %767  ;;  %v926_v25 = vshra.s32 %v7193_v19, 16  ;;  %vm795_vm10 = vcmp.ge.f32.partialorder %v7064_v62, %v7189_v41 }
 0x2ca   : > { %10252 = vst [vmem:[#allocation38_spill] sm:$0xff] %v7196_v45  ;;  %v7201_v24 = vcvt.s32.f32 %v911_v18  ;;  %v811_v34 = vsel %vm795_vm10, %v7103_v46, 8  ;;  %vm796_vm11 = vcmp.ge.f32.partialorder %v7067_v1, %v7196_v45 }
 0x2cb   : > { %v7206_v63 = vcvt.s32.f32 %v926_v25  ;;  %v7209_v55 = vsel %vm560_vm1, %v811_v34, 2147483647  ;;  %v812_v3 = vsel %vm796_vm11, %v7103_v46, 8 }
 0x2cc   : > { %914 = vmin.xlane.f32.xlu0 %v7201_v24  ;;  %v7213_v5 = vpop.xlane.xlu0 %770  ;;  %v941_v9 = vshra.s32 %v7209_v55, 16  ;;  %v7217_v12 = vsel %vm560_vm1, %v812_v3, 2147483647  ;;  %v940_v15 = vand.u32 65535, %v7209_v55 }
 0x2cd   : > { %10253 = vst [vmem:[#allocation39_spill] sm:$0xff] %v7213_v5  ;;  %929 = vmin.xlane.f32.xlu1 %v7206_v63  ;;  %v7220_v21 = vpop.xlane.xlu1 %773  ;;  %v956_v28 = vshra.s32 %v7217_v12, 16  ;;  %vm797_vm12 = vcmp.ge.f32.partialorder %v7074_v31, %v7213_v5 }
 0x2ce   : > { %10254 = vst [vmem:[#allocation40_spill] sm:$0xff] %v7220_v21  ;;  %v7225_v32 = vcvt.s32.f32 %v941_v9  ;;  %v813_v35 = vsel %vm797_vm12, %v7103_v46, 8  ;;  %vm798_vm13 = vcmp.ge.f32.partialorder %v7077_v7, %v7220_v21 }
 0x2cf   : > { %v7230_v38 = vcvt.s32.f32 %v956_v28  ;;  %v7233_v18 = vsel %vm560_vm1, %v813_v35, 2147483647  ;;  %v814_v25 = vsel %vm798_vm13, %v7103_v46, 8 }
 0x2d0   : > { %944 = vmin.xlane.f32.xlu0 %v7225_v32  ;;  %v7237_v34 = vpop.xlane.xlu0 %776  ;;  %v971_v3 = vshra.s32 %v7233_v18, 16  ;;  %v7241_v9 = vsel %vm560_vm1, %v814_v25, 2147483647  ;;  %v970_v55 = vand.u32 65535, %v7233_v18 }
 0x2d1   : > { %10255 = vst [vmem:[#allocation41_spill] sm:$0xff] %v7237_v34  ;;  %959 = vmin.xlane.f32.xlu1 %v7230_v38  ;;  %v7244_v29 = vpop.xlane.xlu1 %779  ;;  %v986_v28 = vshra.s32 %v7241_v9, 16  ;;  %vm799_vm14 = vcmp.ge.f32.partialorder %v7084_v36, %v7237_v34 }
 0x2d2   : > { %10256 = vst [vmem:[#allocation42_spill] sm:$0xff] %v7244_v29  ;;  %v7249_v35 = vcvt.s32.f32 %v971_v3  ;;  %v815_v26 = vsel %vm799_vm14, %v7103_v46, 8  ;;  %vm800_vm15 = vcmp.ge.f32.partialorder %v7087_v37, %v7244_v29 }
 0x2d3   : > { %v7254_v23 = vcvt.s32.f32 %v986_v28  ;;  %v7257_v25 = vsel %vm560_vm1, %v815_v26, 2147483647  ;;  %v816_v20 = vsel %vm800_vm15, %v7103_v46, 8 }
 0x2d4   : > { %974 = vmin.xlane.f32.xlu0 %v7249_v35  ;;  %v7261_v17 = vpop.xlane.xlu0 %782  ;;  %v1001_v14 = vshra.s32 %v7257_v25, 16  ;;  %v7265_v3 = vsel %vm560_vm1, %v816_v20, 2147483647  ;;  %v1000_v18 = vand.u32 65535, %v7257_v25 }
 0x2d5   : > { %10257 = vst [vmem:[#allocation43_spill] sm:$0xff] %v7261_v17  ;;  %989 = vmin.xlane.f32.xlu1 %v7254_v23  ;;  %v7268_v11 = vpop.xlane.xlu1 %785  ;;  %v1016_v28 = vshra.s32 %v7265_v3, 16  ;;  %vm801_vm2 = vcmp.ge.f32.partialorder %v7094_v43, %v7261_v17 }
 0x2d6   : > { %10258 = vst [vmem:[#allocation44_spill] sm:$0xff] %v7268_v11  ;;  %v7273_v26 = vcvt.s32.f32 %v1001_v14  ;;  %v817_v8 = vsel %vm801_vm2, %v7103_v46, 8  ;;  %vm802_vm3 = vcmp.ge.f32.partialorder %v7097_v44, %v7268_v11 }
 0x2d7   : > { %v7278_v29 = vcvt.s32.f32 %v1016_v28  ;;  %v7281_v20 = vsel %vm560_vm1, %v817_v8, 2147483647  ;;  %v818_v34 = vsel %vm802_vm3, %v7103_v46, 8  ;;  %v820_v8 = vand.u32 65535, %v7111_v27 }
 0x2d8   : > { %1004 = vmin.xlane.f32.xlu0 %v7273_v26  ;;  %v1031_v21 = vshra.s32 %v7281_v20, 16  ;;  %v7287_v17 = vsel %vm560_vm1, %v818_v34, 2147483647  ;;  %v835_v34 = vand.u32 65535, %v7124_v61  ;;  %v1030_v25 = vand.u32 65535, %v7281_v20 }
 0x2d9   : > { %1019 = vmin.xlane.f32.xlu1 %v7278_v29  ;;  %v1046_v14 = vshra.s32 %v7287_v17, 16  ;;  %v822_v45 = vcvt.s32.f32 %v820_v8 }
 0x2da   : > { %v7291_v5 = vcvt.s32.f32 %v1031_v21  ;;  %v850_v21 = vand.u32 65535, %v7138_v2  ;;  %v837_v59 = vcvt.s32.f32 %v835_v34  ;;  %v867_v2 = vcvt.s32.f32 %v865_v22 }
 0x2db   : > { %v7293_v28 = vcvt.s32.f32 %v1046_v14  ;;  %v925_v22 = vand.u32 65535, %v7193_v19  ;;  %v955_v19 = vand.u32 65535, %v7217_v12  ;;  %v985_v12 = vand.u32 65535, %v7241_v9 }
 0x2dc   : > { %1034 = vmin.xlane.f32.xlu0 %v7291_v5  ;;  %v852_v61 = vcvt.s32.f32 %v850_v21  ;;  %v1015_v9 = vand.u32 65535, %v7265_v3  ;;  %v1045_v3 = vand.u32 65535, %v7287_v17 }
 0x2dd   : > { %1049 = vmin.xlane.f32.xlu1 %v7293_v28 }
 0x2de   : > { %v1047_v20 = vcvt.s32.f32 %v1045_v3 }
 0x34a   : > { %v7298_v11 = vpop.xlane.xlu0 %824 }
 0x34b   : > { %vm826_vm4 = vcmp.eq.f32.partialorder %v7118_v56, %v7298_v11 }
 0x34c   : > { %v827_v41 = vsel %vm826_vm4, %v822_v45, inf }
 0x34d   : > { %828 = vmin.xlane.f32.xlu0 %v827_v41  ;;  %v895_v41 = vand.u32 65535, %v7169_v30 }
 0x34e   : > { %v7304_v14 = vpop.xlane.xlu1 %839 }
 0x34f   : > { %vm841_vm5 = vcmp.eq.f32.partialorder %v7135_v0, %v7304_v14 }
 0x350   : > { %v842_v27 = vsel %vm841_vm5, %v837_v59, inf  ;;  %v882_v59 = vcvt.s32.f32 %v880_v54  ;;  %v912_v54 = vcvt.s32.f32 %v910_v16  ;;  %v972_v16 = vcvt.s32.f32 %v970_v55 }
 0x351   : > { %843 = vmin.xlane.f32.xlu1 %v842_v27  ;;  %v7309_v8 = vpop.xlane.xlu0 %854  ;;  %v846_v55 = vcvt.f32.s32 %v7304_v14 }
 0x352   : > { %v7312_v56 = vpop.xlane.xlu1 %869  ;;  %vm856_vm6 = vcmp.eq.f32.partialorder %v7153_v10, %v7309_v8  ;;  %v897_v10 = vcvt.s32.f32 %v895_v41  ;;  %v942_v41 = vcvt.s32.f32 %v940_v15 }
 0x353   : > { %v857_v45 = vsel %vm856_vm6, %v852_v61, inf  ;;  %vm871_vm7 = vcmp.eq.f32.partialorder %v7158_v58, %v7312_v56 }
 0x354   : > { %858 = vmin.xlane.f32.xlu0 %v857_v45  ;;  %v872_v0 = vsel %vm871_vm7, %v867_v2, inf }
 0x355   : > { %873 = vmin.xlane.f32.xlu1 %v872_v0  ;;  %v7319_v6 = vpop.xlane.xlu0 %884 }
 0x356   : > { %v7322_v34 = vpop.xlane.xlu1 %899  ;;  %vm886_vm8 = vcmp.eq.f32.partialorder %v7177_v33, %v7319_v6  ;;  %v927_v33 = vcvt.s32.f32 %v925_v22 }
 0x357   : > { %v887_v30 = vsel %vm886_vm8, %v882_v59, inf  ;;  %vm901_vm9 = vcmp.eq.f32.partialorder %v7182_v13, %v7322_v34 }
 0x358   : > { %888 = vmin.xlane.f32.xlu0 %v887_v30  ;;  %v902_v58 = vsel %vm901_vm9, %v897_v10, inf }
 0x359   : > { %903 = vmin.xlane.f32.xlu1 %v902_v58  ;;  %v7329_v21 = vpop.xlane.xlu0 %914  ;;  %v1002_v58 = vcvt.s32.f32 %v1000_v18  ;;  %v10051_v18 = vmov 0.0  }
 0x35a   : > { %v7332_v27 = vpop.xlane.xlu1 %929  ;;  %vm916_vm10 = vcmp.eq.f32.partialorder %v7201_v24, %v7329_v21  ;;  %v957_v24 = vcvt.s32.f32 %v955_v19  ;;  %v1032_v19 = vcvt.s32.f32 %v1030_v25 }
 0x35b   : > { %v917_v61 = vsel %vm916_vm10, %v912_v54, inf  ;;  %vm931_vm11 = vcmp.eq.f32.partialorder %v7206_v63, %v7332_v27 }
 0x35c   : > { %918 = vmin.xlane.f32.xlu0 %v917_v61  ;;  %v932_v13 = vsel %vm931_vm11, %v927_v33, inf }
 0x35d   : > { %933 = vmin.xlane.f32.xlu1 %v932_v13  ;;  %v7339_v2 = vpop.xlane.xlu0 %944 }
 0x35e   : > { %v7342_v45 = vpop.xlane.xlu1 %959  ;;  %vm946_vm12 = vcmp.eq.f32.partialorder %v7225_v32, %v7339_v2  ;;  %v987_v32 = vcvt.s32.f32 %v985_v12 }
 0x35f   : > { %v947_v0 = vsel %vm946_vm12, %v942_v41, inf  ;;  %vm961_vm13 = vcmp.eq.f32.partialorder %v7230_v38, %v7342_v45 }
 0x360   : > { %948 = vmin.xlane.f32.xlu0 %v947_v0  ;;  %v962_v63 = vsel %vm961_vm13, %v957_v24, inf  ;;  %v861_v0 = vcvt.f32.s32 %v7309_v8  ;;  %v891_v8 = vcvt.f32.s32 %v7319_v6 }
 0x361   : > { %963 = vmin.xlane.f32.xlu1 %v962_v63  ;;  %v7349_v59 = vpop.xlane.xlu0 %974  ;;  %v847_v63 = vshll.u32 %v846_v55, 16 }
 0x362   : > { %v7352_v10 = vpop.xlane.xlu1 %989  ;;  %vm976_vm14 = vcmp.eq.f32.partialorder %v7249_v35, %v7349_v59  ;;  %v1017_v35 = vcvt.s32.f32 %v1015_v9 }
 0x363   : > { %v977_v22 = vsel %vm976_vm14, %v972_v16, inf  ;;  %vm991_vm15 = vcmp.eq.f32.partialorder %v7254_v23, %v7352_v10  ;;  %v876_v16 = vcvt.f32.s32 %v7312_v56 }
 0x364   : > { %978 = vmin.xlane.f32.xlu0 %v977_v22  ;;  %v992_v38 = vsel %vm991_vm15, %v987_v32, inf  ;;  %v862_v22 = vshll.u32 %v861_v0, 16  ;;  %v936_v0 = vcvt.f32.s32 %v7332_v27 }
 0x365   : > { %993 = vmin.xlane.f32.xlu1 %v992_v38  ;;  %v7359_v30 = vpop.xlane.xlu0 %1004  ;;  %v877_v25 = vshll.u32 %v876_v16, 16  ;;  %v951_v16 = vcvt.f32.s32 %v7339_v2 }
 0x366   : > { %v7362_v54 = vpop.xlane.xlu1 %1019  ;;  %vm1006_vm2 = vcmp.eq.f32.partialorder %v7273_v26, %v7359_v30 }
 0x367   : > { %v1007_v15 = vsel %vm1006_vm2, %v1002_v58, inf  ;;  %vm1021_vm3 = vcmp.eq.f32.partialorder %v7278_v29, %v7362_v54  ;;  %v831_v29 = vcvt.f32.s32 %v7298_v11 }
 0x368   : > { %1008 = vmin.xlane.f32.xlu0 %v1007_v15  ;;  %v1022_v23 = vsel %vm1021_vm3, %v1017_v35, inf }
 0x369   : > { %1023 = vmin.xlane.f32.xlu1 %v1022_v23  ;;  %v7369_v33 = vpop.xlane.xlu0 %1034  ;;  %v832_v41 = vshll.u32 %v831_v29, 16  ;;  %v906_v23 = vcvt.f32.s32 %v7322_v34  ;;  %v921_v29 = vcvt.f32.s32 %v7329_v21 }
 0x36a   : > { %v7371_v61 = vpop.xlane.xlu1 %1049  ;;  %vm1036_vm4 = vcmp.eq.f32.partialorder %v7291_v5, %v7369_v33 }
 0x36b   : > { %v1037_v26 = vsel %vm1036_vm4, %v1032_v19, inf  ;;  %vm1051_vm5 = vcmp.eq.f32.partialorder %v7293_v28, %v7371_v61 }
 0x36c   : > { %1038 = vmin.xlane.f32.xlu0 %v1037_v26  ;;  %v1052_v17 = vsel %vm1051_vm5, %v1047_v20, inf }
 0x36d   : > { %1053 = vmin.xlane.f32.xlu1 %v1052_v17  ;;  %v892_v17 = vshll.u32 %v891_v8, 16 }
 0x3da   : > { %v829_v13 = vpop.xlane.xlu0 %828 }
 0x3db   : > { %v830_v24 = vcvt.f32.s32 %v829_v13 }
 0x3dd   : > { %v7379_v12 = vadd.s32 %v832_v41, %v830_v24 }
 0x3de   : > { %v844_v5 = vpop.xlane.xlu1 %843 }
 0x3df   : > { %10259 = vst [vmem:[#allocation45_spill] sm:$0xff] %v7379_v12  ;;  %vm1059_vm6 = vcmp.eq.s32.totalorder %v7103_v46, %v7379_v12  ;;  %v845_v28 = vcvt.f32.s32 %v844_v5 }
 0x3e0   : > { %v7386_v11 = vsel %vm1059_vm6, 1.0, %v10051_v18 }
 0x3e1   : > { %10260 = vst [vmem:[#allocation46_spill] sm:$0xff] %v7386_v11  ;;  %v7388_v32 = vadd.s32 %v847_v63, %v845_v28  ;;  %v859_v14 = vpop.xlane.xlu0 %858  ;;  %v1107_v9 = vsub.f32 1.0, %v7386_v11  ;;  %v907_v63 = vshll.u32 %v906_v23, 16  ;;  %v952_v23 = vshll.u32 %v951_v16, 16 }
 0x3e2   : > { %v860_v38 = vcvt.f32.s32 %v859_v14  ;;  %v874_v58 = vpop.xlane.xlu1 %873  ;;  %v1011_v16 = vcvt.f32.s32 %v7359_v30 }
 0x3e3   : > { %10261 = vst [vmem:[#allocation47_spill] sm:$0xff] %v7388_v32  ;;  %vm1060_vm7 = vcmp.eq.s32.totalorder %v7103_v46, %v7388_v32  ;;  %v875_v56 = vcvt.f32.s32 %v874_v58  ;;  %v7395_v35 = vmul.f32 %v1107_v9, %v7024_v39  ;;  %v922_v9 = vshll.u32 %v921_v29, 16 }
 0x3e4   : > { %v7398_v3 = vsel %vm1060_vm7, 1.0, %v10051_v18  ;;  %v7400_v15 = vadd.s32 %v862_v22, %v860_v38  ;;  %v981_v29 = vcvt.f32.s32 %v7349_v59 }
 0x3e5   : > { %10262 = vst [vmem:[#allocation48_spill] sm:$0xff] %v7398_v3  ;;  %v7403_v19 = vadd.s32 %v877_v25, %v875_v56  ;;  %v889_v6 = vpop.xlane.xlu0 %888  ;;  %v1139_v20 = vsel %vm560_vm1, %v7395_v35, -inf  ;;  %v1108_v26 = vsub.f32 1.0, %v7398_v3  ;;  %v937_v25 = vshll.u32 %v936_v0, 16 }
 0x3e6   : > { %10263 = vst [vmem:[#allocation49_spill] sm:$0xff] %v7400_v15  ;;  %vm1061_vm8 = vcmp.eq.s32.totalorder %v7103_v46, %v7400_v15  ;;  %v890_v13 = vcvt.f32.s32 %v889_v6  ;;  %v904_v41 = vpop.xlane.xlu1 %903  ;;  %1140 = vmax.xlane.f32.xlu0 %v1139_v20  ;;  %v966_v6 = vcvt.f32.s32 %v7342_v45 }
 0x3e7   : > { %10264 = vst [vmem:[#allocation50_spill] sm:$0xff] %v7403_v19  ;;  %v7412_v55 = vsel %vm1061_vm8, 1.0, %v10051_v18  ;;  %vm1062_vm9 = vcmp.eq.s32.totalorder %v7103_v46, %v7403_v19  ;;  %v905_v34 = vcvt.f32.s32 %v904_v41  ;;  %v7417_v24 = vmul.f32 %v1108_v26, %v7029_v47 }
 0x3e8   : > { %10265 = vst [vmem:[#allocation51_spill] sm:$0xff] %v7412_v55  ;;  %v7420_v5 = vadd.s32 %v892_v17, %v890_v13  ;;  %v1109_v21 = vsub.f32 1.0, %v7412_v55  ;;  %v7427_v22 = vsel %vm1062_vm9, 1.0, %v10051_v18  ;;  %v996_v13 = vcvt.f32.s32 %v7352_v10 }
 0x3e9   : > { %v919_v28 = vpop.xlane.xlu0 %918  ;;  %v1142_v14 = vsel %vm560_vm1, %v7417_v24, -inf  ;;  %10267 = vst [vmem:[#allocation53_spill] sm:$0xff] %v7427_v22  ;;  %v7432_v58 = vadd.s32 %v907_v63, %v905_v34  ;;  %v1110_v17 = vsub.f32 1.0, %v7427_v22  ;;  %v967_v59 = vshll.u32 %v966_v6, 16 }
 0x3ea   : > { %10266 = vst [vmem:[#allocation52_spill] sm:$0xff] %v7420_v5  ;;  %v920_v8 = vcvt.f32.s32 %v919_v28  ;;  %1143 = vmax.xlane.f32.xlu1 %v1142_v14  ;;  %v934_v38 = vpop.xlane.xlu1 %933  ;;  %v7430_v27 = vmul.f32 %v1109_v21, %v7034_v52  ;;  %vm1063_vm10 = vcmp.eq.s32.totalorder %v7103_v46, %v7420_v5 }
 0x3eb   : > { %10268 = vst [vmem:[#allocation54_spill] sm:$0xff] %v7432_v58  ;;  %v935_v56 = vcvt.f32.s32 %v934_v38  ;;  %v7447_v21 = vsel %vm1063_vm10, 1.0, %v10051_v18  ;;  %vm1064_vm11 = vcmp.eq.s32.totalorder %v7103_v46, %v7432_v58  ;;  %v7452_v45 = vmul.f32 %v1110_v17, %v7037_v57 }
 0x3ec   : > { %v7436_v2 = vadd.s32 %v922_v9, %v920_v8  ;;  %v1145_v20 = vsel %vm560_vm1, %v7430_v27, -inf  ;;  %10271 = vst [vmem:[#allocation57_spill] sm:$0xff] %v7447_v21  ;;  %v982_v9 = vshll.u32 %v981_v29, 16  ;;  %v7464_v8 = vsel %vm1064_vm11, 1.0, %v10051_v18 }
 0x3ed   : > { %v949_v26 = vpop.xlane.xlu0 %948  ;;  %v7444_v41 = vadd.s32 %v937_v25, %v935_v56  ;;  %1146 = vmax.xlane.f32.xlu0 %v1145_v20  ;;  %v1148_v28 = vsel %vm560_vm1, %v7452_v45, -inf  ;;  %10273 = vst [vmem:[#allocation59_spill] sm:$0xff] %v7464_v8  ;;  %v1111_v30 = vsub.f32 1.0, %v7447_v21  ;;  %v997_v25 = vshll.u32 %v996_v13, 16 }
 0x3ee   : > { %10269 = vst [vmem:[#allocation55_spill] sm:$0xff] %v7436_v2  ;;  %v950_v34 = vcvt.f32.s32 %v949_v26  ;;  %v964_v0 = vpop.xlane.xlu1 %963  ;;  %vm1065_vm12 = vcmp.eq.s32.totalorder %v7103_v46, %v7436_v2  ;;  %1149 = vmax.xlane.f32.xlu1 %v1148_v28  ;;  %v1026_v56 = vcvt.f32.s32 %v7362_v54  ;;  %v1012_v20 = vshll.u32 %v1011_v16, 16 }
 0x3ef   : > { %10270 = vst [vmem:[#allocation56_spill] sm:$0xff] %v7444_v41  ;;  %v965_v63 = vcvt.f32.s32 %v964_v0  ;;  %vm1066_vm13 = vcmp.eq.s32.totalorder %v7103_v46, %v7444_v41  ;;  %v7469_v6 = vsel %vm1065_vm12, 1.0, %v10051_v18  ;;  %v7477_v17 = vmul.f32 %v1111_v30, %v7044_v42 }
 0x3f0   : > { %v7459_v10 = vadd.s32 %v952_v23, %v950_v34  ;;  %10274 = vst [vmem:[#allocation60_spill] sm:$0xff] %v7469_v6  ;;  %v7474_v26 = vsel %vm1066_vm13, 1.0, %v10051_v18  ;;  %v1041_v34 = vcvt.f32.s32 %v7369_v33  ;;  %v1112_v54 = vsub.f32 1.0, %v7464_v8 }
 0x3f1   : > { %v979_v14 = vpop.xlane.xlu0 %978  ;;  %v7471_v23 = vadd.s32 %v967_v59, %v965_v63  ;;  %10276 = vst [vmem:[#allocation62_spill] sm:$0xff] %v7474_v26  ;;  %v1151_v63 = vsel %vm560_vm1, %v7477_v17, -inf  ;;  %v1113_v59 = vsub.f32 1.0, %v7469_v6 }
 0x3f2   : > { %10272 = vst [vmem:[#allocation58_spill] sm:$0xff] %v7459_v10  ;;  %v994_v38 = vpop.xlane.xlu1 %993  ;;  %v980_v29 = vcvt.f32.s32 %v979_v14  ;;  %vm1067_vm14 = vcmp.eq.s32.totalorder %v7103_v46, %v7459_v10  ;;  %1152 = vmax.xlane.f32.xlu0 %v1151_v63  ;;  %v7491_v33 = vmul.f32 %v1112_v54, %v7047_v40  ;;  %v1027_v63 = vshll.u32 %v1026_v56, 16 }
 0x3f3   : > { %10275 = vst [vmem:[#allocation61_spill] sm:$0xff] %v7471_v23  ;;  %v995_v13 = vcvt.f32.s32 %v994_v38  ;;  %vm1068_vm15 = vcmp.eq.s32.totalorder %v7103_v46, %v7471_v23  ;;  %v1114_v38 = vsub.f32 1.0, %v7474_v26  ;;  %v7508_v54 = vsel %vm1067_vm14, 1.0, %v10051_v18 }
 0x3f4   : > { %v7485_v16 = vadd.s32 %v982_v9, %v980_v29  ;;  %v7499_v9 = vmul.f32 %v1113_v59, %v7054_v48  ;;  %10280 = vst [vmem:[#allocation66_spill] sm:$0xff] %v7508_v54  ;;  %v7515_v59 = vsel %vm1068_vm15, 1.0, %v10051_v18 }
 0x3f5   : > { %v1009_v0 = vpop.xlane.xlu0 %1008  ;;  %v7493_v14 = vadd.s32 %v997_v25, %v995_v13  ;;  %v1154_v25 = vsel %vm560_vm1, %v7491_v33, -inf  ;;  %10281 = vst [vmem:[#allocation67_spill] sm:$0xff] %v7515_v59  ;;  %v7526_v40 = vmul.f32 %v1114_v38, %v7057_v53  ;;  %v1116_v39 = vsub.f32 1.0, %v7515_v59 }
 0x3f6   : > { %10277 = vst [vmem:[#allocation63_spill] sm:$0xff] %v7485_v16  ;;  %v1010_v28 = vcvt.f32.s32 %v1009_v0  ;;  %v1024_v30 = vpop.xlane.xlu1 %1023  ;;  %vm1069_vm2 = vcmp.eq.s32.totalorder %v7103_v46, %v7485_v16  ;;  %v1056_v0 = vcvt.f32.s32 %v7371_v61  ;;  %1155 = vmax.xlane.f32.xlu1 %v1154_v25  ;;  %v1157_v61 = vsel %vm560_vm1, %v7499_v9, -inf }
 0x3f7   : > { %10278 = vst [vmem:[#allocation64_spill] sm:$0xff] %v7493_v14  ;;  %vm1070_vm3 = vcmp.eq.s32.totalorder %v7103_v46, %v7493_v14  ;;  %v7520_v48 = vsel %vm1069_vm2, 1.0, %v10051_v18  ;;  %1158 = vmax.xlane.f32.xlu0 %v1157_v61  ;;  %v1025_v56 = vcvt.f32.s32 %v1024_v30  ;;  %v1115_v25 = vsub.f32 1.0, %v7508_v54 }
 0x3f8   : > { %v7501_v29 = vadd.s32 %v1012_v20, %v1010_v28  ;;  %v1042_v28 = vshll.u32 %v1041_v34, 16  ;;  %10282 = vst [vmem:[#allocation68_spill] sm:$0xff] %v7520_v48  ;;  %v7523_v42 = vsel %vm1070_vm3, 1.0, %v10051_v18  ;;  %v1057_v57 = vshll.u32 %v1056_v0, 16 }
 0x3f9   : > { %v1039_v13 = vpop.xlane.xlu0 %1038  ;;  %10283 = vst [vmem:[#allocation69_spill] sm:$0xff] %v7523_v42  ;;  %v1160_v34 = vsel %vm560_vm1, %v7526_v40, -inf  ;;  %v7534_v18 = vadd.s32 %v1027_v63, %v1025_v56  ;;  %v7537_v38 = vmul.f32 %v1115_v25, %v7064_v62  ;;  %v1117_v30 = vsub.f32 1.0, %v7520_v48 }
 0x3fa   : > { %10279 = vst [vmem:[#allocation65_spill] sm:$0xff] %v7501_v29  ;;  %v1054_v20 = vpop.xlane.xlu1 %1053  ;;  %vm1071_vm4 = vcmp.eq.s32.totalorder %v7103_v46, %v7501_v29  ;;  %v1040_v52 = vcvt.f32.s32 %v1039_v13  ;;  %1161 = vmax.xlane.f32.xlu1 %v1160_v34  ;;  %v10286_v53 = vmov 0.0   ;;  %v7546_v0 = vmul.f32 %v1116_v39, %v7067_v1 }
 0x3fb   : > { %v1055_v47 = vcvt.f32.s32 %v1054_v20  ;;  %10284 = vst [vmem:[#allocation70_spill] sm:$0xff] %v7534_v18  ;;  %v7543_v29 = vsel %vm1071_vm4, 1.0, %v10286_v53  ;;  %v1118_v20 = vsub.f32 1.0, %v7523_v42  ;;  %vm1072_vm5 = vcmp.eq.s32.totalorder %v7103_v46, %v7534_v18  ;;  %v336_v42 = vld [vmem:[%s7748_s18 + $0x30] sm:$0xff] }
 0x3fc   : > { %v7539_v61 = vadd.s32 %v1042_v28, %v1040_v52  ;;  %10287 = vst [vmem:[#allocation72_spill] sm:$0xff] %v7543_v29  ;;  %v1163_v63 = vsel %vm560_vm1, %v7537_v38, -inf  ;;  %v7558_v52 = vmul.f32 %v1117_v30, %v7074_v31  ;;  %v7561_v28 = vsel %vm1072_vm5, 1.0, %v10286_v53 }
 0x3fd   : > { %v7548_v13 = vadd.s32 %v1057_v57, %v1055_v47  ;;  %10289 = vst [vmem:[#allocation74_spill] sm:$0xff] %v7561_v28  ;;  %1164 = vmax.xlane.f32.xlu0 %v1163_v63  ;;  %v1166_v47 = vsel %vm560_vm1, %v7546_v0, -inf  ;;  %v7576_v25 = vmul.f32 %v1118_v20, %v7077_v7  ;;  %v1119_v34 = vsub.f32 1.0, %v7543_v29  ;;  %v335_v29 = vld [vmem:[%s7748_s18 + $0x28] sm:$0xff] }
 0x3fe   : > { %10285 = vst [vmem:[#allocation71_spill] sm:$0xff] %v7539_v61  ;;  %vm1073_vm6 = vcmp.eq.s32.totalorder %v7103_v46, %v7539_v61  ;;  %1167 = vmax.xlane.f32.xlu1 %v1166_v47  ;;  %v1169_v56 = vsel %vm560_vm1, %v7558_v52, -inf  ;;  %v1120_v30 = vsub.f32 1.0, %v7561_v28 }
 0x3ff   : > { %10288 = vst [vmem:[#allocation73_spill] sm:$0xff] %v7548_v13  ;;  %v7564_v39 = vsel %vm1073_vm6, 1.0, %v10286_v53  ;;  %vm1074_vm7 = vcmp.eq.s32.totalorder %v7103_v46, %v7548_v13  ;;  %v1172_v47 = vsel %vm560_vm1, %v7576_v25, -inf  ;;  %v7585_v62 = vmul.f32 %v1119_v34, %v7084_v36 }
 0x400   : > { %10290 = vst [vmem:[#allocation75_spill] sm:$0xff] %v7564_v39  ;;  %v7571_v57 = vsel %vm1074_vm7, 1.0, %v10286_v53  ;;  %v1121_v63 = vsub.f32 1.0, %v7564_v39  ;;  %v7588_v1 = vmul.f32 %v1120_v30, %v7087_v37 }
 0x401   : > { %10291 = vst [vmem:[#allocation76_spill] sm:$0xff] %v7571_v57  ;;  %v1122_v31 = vsub.f32 1.0, %v7571_v57  ;;  %1170 = vmax.xlane.f32.xlu0 %v1169_v56  ;;  %v1175_v7 = vsel %vm560_vm1, %v7585_v62, -inf }
 0x402   : > { %1173 = vmax.xlane.f32.xlu1 %v1172_v47  ;;  %v7591_v20 = vmul.f32 %v1121_v63, %v7094_v43  ;;  %v1178_v56 = vsel %vm560_vm1, %v7588_v1, -inf  ;;  %v6773_v63 = vmov 0  }
 0x403   : > { %v7596_v18 = vmul.f32 %v1122_v31, %v7097_v44  ;;  %6504 = vset.pattern.permute.xlu1 %v6773_v63  ;;  %6498 = vset.pattern.permute.xlu0 %v6773_v63 }
 0x404   : > { %v1181_v34 = vsel %vm560_vm1, %v7591_v20, -inf }
 0x405   : > { %1176 = vmax.xlane.f32.xlu0 %v1175_v7  ;;  %v1184_v30 = vsel %vm560_vm1, %v7596_v18, -inf }
 0x406   : > { %1179 = vmax.xlane.f32.xlu1 %v1178_v56 }
 0x409   : > { %1182 = vmax.xlane.f32.xlu0 %v1181_v34 }
 0x40a   : > { %1185 = vmax.xlane.f32.xlu1 %v1184_v30 }
 0x473   : > { %v7604_v47 = vpop.xlane.xlu0 %1140 }
 0x474   : > { %vm1187_vm8 = vcmp.ge.f32.partialorder %v7395_v35, %v7604_v47  ;;  %v1507_v37 = vadd.f32 %v7604_v47, %v7105_v49 }
 0x475   : > { %v1203_v31 = vsel %vm1187_vm8, %v7103_v46, 8 }
 0x476   : > { %v7610_v7 = vsel %vm560_vm1, %v1203_v31, 2147483647  ;;  %v1523_v10 = vadd.f32 1e-09, %v1507_v37 }
 0x477   : > { %v7612_v56 = vpop.xlane.xlu1 %1143  ;;  %v1221_v43 = vshra.s32 %v7610_v7, 16 }
 0x478   : > { %vm1188_vm9 = vcmp.ge.f32.partialorder %v7417_v24, %v7612_v56  ;;  %6732 = vrcp.f32 %v1523_v10 }
 0x479   : > { %v7617_v34 = vcvt.s32.f32 %v1221_v43  ;;  %v1204_v30 = vsel %vm1188_vm9, %v7103_v46, 8 }
 0x47a   : > { %v7621_v63 = vsel %vm560_vm1, %v1204_v30, 2147483647  ;;  %v7623_v35 = vpop.xlane.xlu0 %1146 }
 0x47b   : > { %1224 = vmin.xlane.f32.xlu0 %v7617_v34  ;;  %v1236_v31 = vshra.s32 %v7621_v63, 16  ;;  %vm1189_vm10 = vcmp.ge.f32.partialorder %v7430_v27, %v7623_v35  ;;  %v7635_v36 = vpop.xlane.xlu1 %1149  ;;  %v1509_v61 = vadd.f32 %v7623_v35, %v7121_v60 }
 0x47c   : > { %v1205_v24 = vsel %vm1189_vm10, %v7103_v46, 8  ;;  %vm1190_vm11 = vcmp.ge.f32.partialorder %v7452_v45, %v7635_v36  ;;  %v1510_v23 = vadd.f32 %v7635_v36, %v7126_v50 }
 0x47d   : > { %v7629_v44 = vcvt.s32.f32 %v1236_v31  ;;  %v7633_v43 = vsel %vm560_vm1, %v1205_v24, 2147483647  ;;  %v1206_v31 = vsel %vm1190_vm11, %v7103_v46, 8  ;;  %v1508_v24 = vadd.f32 %v7612_v56, %v7113_v51 }
 0x47e   : > { %v1251_v30 = vshra.s32 %v7633_v43, 16  ;;  %v7649_v13 = vsel %vm560_vm1, %v1206_v31, 2147483647  ;;  %v1525_v58 = vadd.f32 1e-09, %v1509_v61 }
 0x47f   : > { %1239 = vmin.xlane.f32.xlu1 %v7629_v44  ;;  %v1266_v45 = vshra.s32 %v7649_v13, 16  ;;  %v1524_v31 = vadd.f32 1e-09, %v1508_v24  ;;  %v1526_v2 = vadd.f32 1e-09, %v1510_v23 }
 0x480   : > { %v7643_v27 = vcvt.s32.f32 %v1251_v30  ;;  %v7657_v30 = vpop.xlane.xlu0 %1152 }
 0x481   : > { %vm1191_vm12 = vcmp.ge.f32.partialorder %v7477_v17, %v7657_v30  ;;  %v7661_v14 = vcvt.s32.f32 %v1266_v45  ;;  %6734 = vrcp.f32 %v1524_v31 }
 0x482   : > { %1254 = vmin.xlane.f32.xlu0 %v7643_v27  ;;  %v1207_v16 = vsel %vm1191_vm12, %v7103_v46, 8  ;;  %6736 = vrcp.f32 %v1525_v58  ;;  %v7715_v51 = vpop.eup %6732 }
 0x483   : > { %v7664_v5 = vpop.xlane.xlu1 %1155  ;;  %1269 = vmin.xlane.f32.xlu1 %v7661_v14  ;;  %v7668_v41 = vsel %vm560_vm1, %v1207_v16, 2147483647  ;;  %6738 = vrcp.f32 %v1526_v2  ;;  %10292 = vst [vmem:[#allocation77_spill] sm:$0xff] %v7715_v51 }
 0x484   : > { %vm1192_vm13 = vcmp.ge.f32.partialorder %v7491_v33, %v7664_v5  ;;  %v7672_v37 = vpop.xlane.xlu0 %1158  ;;  %v1281_v17 = vshra.s32 %v7668_v41, 16 }
 0x485   : > { %vm1193_vm14 = vcmp.ge.f32.partialorder %v7499_v9, %v7672_v37  ;;  %v1208_v24 = vsel %vm1192_vm13, %v7103_v46, 8 }
 0x486   : > { %v7677_v61 = vcvt.s32.f32 %v1281_v17  ;;  %v1209_v16 = vsel %vm1193_vm14, %v7103_v46, 8  ;;  %v7684_v33 = vsel %vm560_vm1, %v1208_v24, 2147483647 }
 0x487   : > { %v7681_v23 = vpop.xlane.xlu1 %1161  ;;  %v7687_v45 = vsel %vm560_vm1, %v1209_v16, 2147483647  ;;  %v1296_v10 = vshra.s32 %v7684_v33, 16 }
 0x488   : > { %vm1194_vm15 = vcmp.ge.f32.partialorder %v7526_v40, %v7681_v23  ;;  %1284 = vmin.xlane.f32.xlu0 %v7677_v61  ;;  %v1311_v9 = vshra.s32 %v7687_v45, 16 }
 0x489   : > { %v1210_v58 = vsel %vm1194_vm15, %v7103_v46, 8  ;;  %v7695_v31 = vcvt.s32.f32 %v1296_v10 }
 0x48a   : > { %v7698_v17 = vsel %vm560_vm1, %v1210_v58, 2147483647  ;;  %v7702_v16 = vcvt.s32.f32 %v1311_v9 }
 0x48b   : > { %v7700_v24 = vpop.xlane.xlu1 %1167  ;;  %1299 = vmin.xlane.f32.xlu1 %v7695_v31  ;;  %v1326_v40 = vshra.s32 %v7698_v17, 16  ;;  %v7718_v49 = vpop.eup %6734 }
 0x48c   : > { %vm1196_vm2 = vcmp.ge.f32.partialorder %v7546_v0, %v7700_v24  ;;  %1314 = vmin.xlane.f32.xlu0 %v7702_v16  ;;  %10293 = vst [vmem:[#allocation78_spill] sm:$0xff] %v7718_v49  ;;  %v7721_v0 = vpop.eup %6736 }
 0x48d   : > { %v1212_v2 = vsel %vm1196_vm2, %v7103_v46, 8  ;;  %v7710_v10 = vcvt.s32.f32 %v1326_v40  ;;  %10294 = vst [vmem:[#allocation79_spill] sm:$0xff] %v7721_v0  ;;  %v7725_v50 = vpop.eup %6738  ;;  %v7729_v40 = vmul.f32 %v7718_v49, %v7612_v56  ;;  %v7738_v60 = vmul.f32 %v7721_v0, %v7623_v35  ;;  %v331_v56 = vld [vmem:[%s7748_s18 + $0x8] sm:$0xff]  ;;  %v330_v0 = vld [vmem:[%s7748_s18] sm:$0xff] }
 0x48e   : > { %v7713_v58 = vsel %vm560_vm1, %v1212_v2, 2147483647  ;;  %10295 = vst [vmem:[#allocation80_spill] sm:$0xff] %v7725_v50  ;;  %v7734_v2 = vmul.f32 %v7715_v51, %v7604_v47 }
 0x48f   : > { %v1356_v9 = vshra.s32 %v7713_v58, 16  ;;  %1329 = vmin.xlane.f32.xlu1 %v7710_v10  ;;  %10296 = vst [vmem:[#allocation81_spill] sm:$0xff] %v7729_v40  ;;  %10298 = vst [vmem:[#allocation83_spill] sm:$0xff] %v7738_v60  ;;  %v1711_v47 = vmul.f32 5.0, %v7729_v40  ;;  %v1712_v35 = vmul.f32 5.0, %v7738_v60  ;;  %v7762_v60 = vpop.xlane.xlu0 %1164 }
 0x490   : > { %10297 = vst [vmem:[#allocation82_spill] sm:$0xff] %v7734_v2  ;;  %v1710_v49 = vmul.f32 5.0, %v7734_v2  ;;  %vm1195_vm7 = vcmp.ge.f32.partialorder %v7537_v38, %v7762_v60 }
 0x491   : > { %v7723_v19 = vcvt.s32.f32 %v1356_v9  ;;  %v7742_v9 = vmul.f32 %v7725_v50, %v7635_v36  ;;  %v332_v36 = vld [vmem:[%s7748_s18 + $0x10] sm:$0xff]  ;;  %v333_v50 = vld [vmem:[%s7748_s18 + $0x18] sm:$0xff]  ;;  %vm1727_vm3 = vcmp.lt.f32.partialorder %v331_v56, %v1711_v47 }
 0x492   : > { %vm1728_vm4 = vcmp.lt.f32.partialorder %v332_v36, %v1712_v35  ;;  %vm1726_vm6 = vcmp.lt.f32.partialorder %v330_v0, %v1710_v49  ;;  %v5413_v32 = vsel %vm1727_vm3, 1.0, %v10286_v53  ;;  %v1511_v49 = vadd.f32 %v7657_v30, %v7141_v4  ;;  %v10301_v35 = vld [vmem:[#allocation35_spill] sm:$0xff] }
 0x493   : > { %1359 = vmin.xlane.f32.xlu1 %v7723_v19  ;;  %10299 = vst [vmem:[#allocation84_spill] sm:$0xff] %v7742_v9  ;;  %v1713_v51 = vmul.f32 5.0, %v7742_v9  ;;  %v5414_v12 = vsel %vm1728_vm4, 1.0, %v10286_v53  ;;  %v5412_v15 = vsel %vm1726_vm6, 1.0, %v10286_v53  ;;  %v7764_v9 = vpop.xlane.xlu0 %1170  ;;  %v1513_v36 = vadd.f32 %v7672_v37, %v10301_v35 }
 0x494   : > { %v6499_v2 = vpack.i.bf16 %v5413_v32, %v5412_v15  ;;  %v1211_v32 = vsel %vm1195_vm7, %v7103_v46, 8  ;;  %vm1197_vm8 = vcmp.ge.f32.partialorder %v7558_v52, %v7764_v9  ;;  %v1527_v15 = vadd.f32 1e-09, %v1511_v49  ;;  %v10302_v49 = vld [vmem:[#allocation36_spill] sm:$0xff] }
 0x495   : > { %vm1729_vm5 = vcmp.lt.f32.partialorder %v333_v50, %v1713_v51  ;;  %v10300_v51 = vld [vmem:[#allocation34_spill] sm:$0xff]  ;;  %v1213_v38 = vsel %vm1197_vm8, %v7103_v46, 8 }
 0x496   : > { %v5415_v40 = vsel %vm1729_vm5, 1.0, %v10286_v53  ;;  %v1512_v50 = vadd.f32 %v7664_v5, %v10300_v51  ;;  %6740 = vrcp.f32 %v1527_v15  ;;  %v7791_v47 = vsel %vm560_vm1, %v1213_v38, 2147483647 }
 0x497   : > { %v6505_v39 = vpack.i.bf16 %v5415_v40, %v5414_v12  ;;  %v7772_v0 = vpop.xlane.xlu0 %1176  ;;  %v7777_v12 = vpop.xlane.xlu1 %1173  ;;  %v7780_v40 = vsel %vm560_vm1, %v1211_v32, 2147483647  ;;  %v1371_v32 = vshra.s32 %v7791_v47, 16  ;;  %v1529_v38 = vadd.f32 1e-09, %v1513_v36 }
 0x498   : > { %vm1198_vm9 = vcmp.ge.f32.partialorder %v7576_v25, %v7777_v12  ;;  %vm1199_vm10 = vcmp.ge.f32.partialorder %v7585_v62, %v7772_v0  ;;  %v1341_v52 = vshra.s32 %v7780_v40, 16 }
 0x499   : > { %v1214_v56 = vsel %vm1198_vm9, %v7103_v46, 8  ;;  %v1215_v25 = vsel %vm1199_vm10, %v7103_v46, 8  ;;  %v7813_v35 = vcvt.s32.f32 %v1371_v32 }
 0x49a   : > { %v7801_v62 = vcvt.s32.f32 %v1341_v52  ;;  %v7805_v15 = vsel %vm560_vm1, %v1214_v56, 2147483647 }
 0x4a0   : > { %v7819_v56 = vpop.eup %6740 }
 0x4a1   : > { %10303 = vst [vmem:[#allocation85_spill] sm:$0xff] %v7819_v56 }
 0x4a2   : > { %6500 = vperm.xlu0 %6498, %v6499_v2   ;;  %v7787_v2 = vpop.xlane.xlu0 %1182 }
 0x4a3   : > { %vm1201_vm11 = vcmp.ge.f32.partialorder %v7591_v20, %v7787_v2 }
 0x4a4   : > { %6506 = vperm.xlu1 %6504, %v6505_v39   ;;  %v1528_v39 = vadd.f32 1e-09, %v1512_v50  ;;  %v1514_v50 = vadd.f32 %v7681_v23, %v10302_v49  ;;  %v1217_v51 = vsel %vm1201_vm11, %v7103_v46, 8  ;;  %v1386_v49 = vshra.s32 %v7805_v15, 16 }
 0x4a5   : > { %v7817_v52 = vsel %vm560_vm1, %v1217_v51, 2147483647  ;;  %v7832_v51 = vmul.f32 %v7819_v56, %v7657_v30 }
 0x4a6   : > { %6742 = vrcp.f32 %v1528_v39  ;;  %v7808_v39 = vsel %vm560_vm1, %v1215_v25, 2147483647  ;;  %v1530_v4 = vadd.f32 1e-09, %v1514_v50  ;;  %v7824_v25 = vcvt.s32.f32 %v1386_v49 }
 0x4a7   : > { %v1401_v20 = vshra.s32 %v7808_v39, 16  ;;  %6744 = vrcp.f32 %v1529_v38  ;;  %v1431_v32 = vshra.s32 %v7817_v52, 16  ;;  %10305 = vst [vmem:[#allocation87_spill] sm:$0xff] %v7832_v51 }
 0x4a8   : > { %6746 = vrcp.f32 %v1530_v4  ;;  %v1714_v4 = vmul.f32 5.0, %v7832_v51 }
 0x4a9   : > { %v7826_v50 = vcvt.s32.f32 %v1401_v20  ;;  %v7839_v57 = vcvt.s32.f32 %v1431_v32  ;;  %v334_v20 = vld [vmem:[%s7748_s18 + $0x20] sm:$0xff] }
 0x4aa   : > { %vm1730_vm12 = vcmp.lt.f32.partialorder %v334_v20, %v1714_v4  ;;  %v337_v4 = vld [vmem:[%s7748_s18 + $0x38] sm:$0xff]  ;;  %v10310_v20 = vld [vmem:[#allocation37_spill] sm:$0xff] }
 0x4ab   : > { %v5416_v51 = vsel %vm1730_vm12, 1.0, %v10286_v53 }
 0x4b0   : > { %v7822_v36 = vpop.eup %6742 }
 0x4b1   : > { %10304 = vst [vmem:[#allocation86_spill] sm:$0xff] %v7822_v36  ;;  %v7836_v38 = vmul.f32 %v7822_v36, %v7664_v5  ;;  %v7846_v30 = vpop.eup %6744 }
 0x4b2   : > { %v7848_v56 = vpop.eup %6746  ;;  %v7852_v5 = vmul.f32 %v7846_v30, %v7672_v37 }
 0x4b3   : > { %10306 = vst [vmem:[#allocation88_spill] sm:$0xff] %v7836_v38  ;;  %v1715_v49 = vmul.f32 5.0, %v7836_v38  ;;  %10307 = vst [vmem:[#allocation89_spill] sm:$0xff] %v7848_v56  ;;  %v7856_v32 = vmul.f32 %v7848_v56, %v7681_v23  ;;  %v1515_v56 = vadd.f32 %v7762_v60, %v10310_v20  ;;  %v339_v20 = vld [vmem:[%s7748_s18 + $0x48] sm:$0xff] }
 0x4b4   : > { %10308 = vst [vmem:[#allocation90_spill] sm:$0xff] %v7852_v5  ;;  %v1716_v36 = vmul.f32 5.0, %v7852_v5  ;;  %v10311_v5 = vld [vmem:[#allocation38_spill] sm:$0xff] }
 0x4b5   : > { %vm1731_vm13 = vcmp.lt.f32.partialorder %v335_v29, %v1715_v49  ;;  %10309 = vst [vmem:[#allocation91_spill] sm:$0xff] %v7856_v32  ;;  %v1717_v28 = vmul.f32 5.0, %v7856_v32  ;;  %v7866_v49 = vpop.xlane.xlu1 %1179  ;;  %v1516_v32 = vadd.f32 %v7700_v24, %v10311_v5  ;;  %v338_v5 = vld [vmem:[%s7748_s18 + $0x40] sm:$0xff] }
 0x4b6   : > { %v5417_v38 = vsel %vm1731_vm13, 1.0, %v10286_v53  ;;  %vm1732_vm14 = vcmp.lt.f32.partialorder %v336_v42, %v1716_v36  ;;  %vm1200_vm2 = vcmp.ge.f32.partialorder %v7588_v1, %v7866_v49  ;;  %v1531_v42 = vadd.f32 1e-09, %v1515_v56 }
 0x4b7   : > { %v6510_v48 = vpack.i.bf16 %v5417_v38, %v5416_v51  ;;  %vm1733_vm15 = vcmp.lt.f32.partialorder %v337_v4, %v1717_v28  ;;  %v5418_v29 = vsel %vm1732_vm14, 1.0, %v10286_v53  ;;  %v1532_v28 = vadd.f32 1e-09, %v1516_v32 }
 0x4b8   : > { %v5419_v37 = vsel %vm1733_vm15, 1.0, %v10286_v53  ;;  %v1216_v36 = vsel %vm1200_vm2, %v7103_v46, 8  ;;  %6748 = vrcp.f32 %v1531_v42 }
 0x4b9   : > { %v6515_v23 = vpack.i.bf16 %v5419_v37, %v5418_v29  ;;  %v7880_v51 = vsel %vm560_vm1, %v1216_v36, 2147483647  ;;  %6750 = vrcp.f32 %v1532_v28  ;;  %v1220_v37 = vand.u32 65535, %v7610_v7 }
 0x4ba   : > { %v1416_v4 = vshra.s32 %v7880_v51, 16 }
 0x4bc   : > { %v7887_v29 = vcvt.s32.f32 %v1416_v4 }
 0x4c1   : > { %1344 = vmin.xlane.f32.xlu0 %v7801_v62 }
 0x4c5   : > { %1374 = vmin.xlane.f32.xlu0 %v7813_v35 }
 0x4c8   : > { %1389 = vmin.xlane.f32.xlu1 %v7824_v25 }
 0x4c9   : > { %1404 = vmin.xlane.f32.xlu0 %v7826_v50 }
 0x4cd   : > { %1434 = vmin.xlane.f32.xlu0 %v7839_v57 }
 0x4d9   : > { %6511 = vperm.xlu1 %6504, %v6510_v48   ;;  %v7874_v48 = vpop.xlane.xlu1 %1185 }
 0x4da   : > { %vm1202_vm3 = vcmp.ge.f32.partialorder %v7596_v18, %v7874_v48  ;;  %v7891_v18 = vpop.eup %6748 }
 0x4db   : > { %v1218_v38 = vsel %vm1202_vm3, %v7103_v46, 8  ;;  %v7893_v32 = vpop.eup %6750  ;;  %v7901_v42 = vmul.f32 %v7891_v18, %v7762_v60  ;;  %v1250_v60 = vand.u32 65535, %v7633_v43 }
 0x4dc   : > { %v7885_v1 = vsel %vm560_vm1, %v1218_v38, 2147483647  ;;  %10312 = vst [vmem:[#allocation92_spill] sm:$0xff] %v7893_v32  ;;  %v7905_v28 = vmul.f32 %v7893_v32, %v7700_v24  ;;  %v1222_v38 = vcvt.s32.f32 %v1220_v37 }
 0x4dd   : > { %v1446_v56 = vshra.s32 %v7885_v1, 16  ;;  %10313 = vst [vmem:[#allocation93_spill] sm:$0xff] %v7901_v42  ;;  %v1718_v7 = vmul.f32 5.0, %v7901_v42  ;;  %v1252_v32 = vcvt.s32.f32 %v1250_v60  ;;  %v1265_v60 = vand.u32 65535, %v7649_v13 }
 0x4de   : > { %10314 = vst [vmem:[#allocation94_spill] sm:$0xff] %v7905_v28 }
 0x4df   : > { %vm1734_vm5 = vcmp.lt.f32.partialorder %v338_v5, %v1718_v7  ;;  %v1310_v5 = vand.u32 65535, %v7687_v45 }
 0x4e1   : > { %v1312_v7 = vcvt.s32.f32 %v1310_v5 }
 0x4e3   : > { %6516 = vperm.xlu0 %6498, %v6515_v23   ;;  %v7896_v23 = vcvt.s32.f32 %v1446_v56  ;;  %v1719_v56 = vmul.f32 5.0, %v7905_v28 }
 0x4e5   : > { %vm1735_vm6 = vcmp.lt.f32.partialorder %v339_v20, %v1719_v56  ;;  %v1235_v56 = vand.u32 65535, %v7621_v63  ;;  %v1325_v63 = vand.u32 65535, %v7698_v17  ;;  %v1340_v17 = vand.u32 65535, %v7780_v40 }
 0x4e6   : > { %v5421_v37 = vsel %vm1735_vm6, 1.0, %v10286_v53  ;;  %v1385_v40 = vand.u32 65535, %v7805_v15 }
 0x4e7   : > { %v1237_v45 = vcvt.s32.f32 %v1235_v56  ;;  %v1370_v56 = vand.u32 65535, %v7791_v47  ;;  %v1400_v47 = vand.u32 65535, %v7808_v39 }
 0x4fd   : > { %1419 = vmin.xlane.f32.xlu1 %v7887_v29 }
 0x501   : > { %1449 = vmin.xlane.f32.xlu1 %v7896_v23 }
 0x508   : > { %v7907_v36 = vpop.xlane.xlu0 %1224 }
 0x509   : > { %vm1226_vm4 = vcmp.eq.f32.partialorder %v7617_v34, %v7907_v36  ;;  %v5420_v34 = vsel %vm1734_vm5, 1.0, %v10286_v53 }
 0x50a   : > { %v1227_v4 = vsel %vm1226_vm4, %v1222_v38, inf  ;;  %v6520_v42 = vpack.i.bf16 %v5421_v37, %v5420_v34  ;;  %v1295_v37 = vand.u32 65535, %v7684_v33  ;;  %v1355_v33 = vand.u32 65535, %v7713_v58  ;;  %v10315_v58 = vld [vmem:[#allocation39_spill] sm:$0xff] }
 0x50b   : > { %1228 = vmin.xlane.f32.xlu0 %v1227_v4  ;;  %v1280_v4 = vand.u32 65535, %v7668_v41 }
 0x50c   : > { %v7932_v41 = vpop.xlane.xlu1 %1239 }
 0x50d   : > { %v1282_v43 = vcvt.s32.f32 %v1280_v4  ;;  %vm1241_vm10 = vcmp.eq.f32.partialorder %v7629_v44, %v7932_v41  ;;  %v1297_v44 = vcvt.s32.f32 %v1295_v37 }
 0x50e   : > { %v1242_v34 = vsel %vm1241_vm10, %v1237_v45, inf  ;;  %v1517_v45 = vadd.f32 %v7764_v9, %v10315_v58 }
 0x50f   : > { %v7916_v24 = vpop.xlane.xlu0 %1254 }
 0x510   : > { %vm1256_vm7 = vcmp.eq.f32.partialorder %v7643_v27, %v7916_v24 }
 0x511   : > { %v1257_v38 = vsel %vm1256_vm7, %v1252_v32, inf }
 0x512   : > { %1258 = vmin.xlane.f32.xlu0 %v1257_v38  ;;  %6521 = vperm.xlu1 %6504, %v6520_v42   ;;  %v7934_v42 = vpop.xlane.xlu1 %1269 }
 0x513   : > { %vm1271_vm11 = vcmp.eq.f32.partialorder %v7661_v14, %v7934_v42  ;;  %v1327_v14 = vcvt.s32.f32 %v1325_v63 }
 0x515   : > { %v7923_v28 = vpop.xlane.xlu0 %1284 }
 0x516   : > { %vm1286_vm8 = vcmp.eq.f32.partialorder %v7677_v61, %v7923_v28 }
 0x517   : > { %v1287_v20 = vsel %vm1286_vm8, %v1282_v43, inf }
 0x518   : > { %1288 = vmin.xlane.f32.xlu0 %v1287_v20  ;;  %v7939_v61 = vpop.xlane.xlu1 %1299  ;;  %v1357_v20 = vcvt.s32.f32 %v1355_v33 }
 0x519   : > { %v7928_v27 = vpop.xlane.xlu0 %1314  ;;  %vm1301_vm12 = vcmp.eq.f32.partialorder %v7695_v31, %v7939_v61 }
 0x51a   : > { %vm1316_vm9 = vcmp.eq.f32.partialorder %v7702_v16, %v7928_v27  ;;  %v1267_v16 = vcvt.s32.f32 %v1265_v60  ;;  %v1302_v43 = vsel %vm1301_vm12, %v1297_v44, inf }
 0x51b   : > { %v1317_v32 = vsel %vm1316_vm9, %v1312_v7, inf }
 0x51c   : > { %1318 = vmin.xlane.f32.xlu0 %v1317_v32  ;;  %v7945_v38 = vpop.xlane.xlu1 %1329  ;;  %v1272_v4 = vsel %vm1271_vm11, %v1267_v16, inf }
 0x51d   : > { %vm1331_vm13 = vcmp.eq.f32.partialorder %v7710_v10, %v7945_v38  ;;  %v1342_v10 = vcvt.s32.f32 %v1340_v17 }
 0x51e   : > { %v1332_v5 = vsel %vm1331_vm13, %v1327_v14, inf  ;;  %v1387_v14 = vcvt.s32.f32 %v1385_v40 }
 0x520   : > { %v7952_v13 = vpop.xlane.xlu1 %1359 }
 0x521   : > { %vm1361_vm14 = vcmp.eq.f32.partialorder %v7723_v19, %v7952_v13  ;;  %v7957_v7 = vpop.permute.xlu0 %6500  ;;  %v10316_v19 = vld [vmem:[#allocation40_spill] sm:$0xff] }
 0x522   : > { %v1362_v31 = vsel %vm1361_vm14, %v1357_v20, inf }
 0x524   : > { %v7969_v16 = vpop.permute.xlu1 %6506 }
 0x536   : > { %1243 = vmin.xlane.f32.xlu1 %v1242_v34  ;;  %v1518_v34 = vadd.f32 %v7777_v12, %v10316_v19 }
 0x538   : > { %v1534_v63 = vadd.f32 1e-09, %v1518_v34 }
 0x53a   : > { %1273 = vmin.xlane.f32.xlu1 %v1272_v4  ;;  %v1372_v4 = vcvt.s32.f32 %v1370_v56 }
 0x53e   : > { %1303 = vmin.xlane.f32.xlu1 %v1302_v43 }
 0x542   : > { %1333 = vmin.xlane.f32.xlu1 %v1332_v5  ;;  %v1402_v5 = vcvt.s32.f32 %v1400_v47 }
 0x546   : > { %1363 = vmin.xlane.f32.xlu1 %v1362_v31 }
 0x54e   : > { %v7960_v32 = vpop.xlane.xlu0 %1344 }
 0x54f   : > { %vm1346_vm15 = vcmp.eq.f32.partialorder %v7801_v62, %v7960_v32  ;;  %v1533_v62 = vadd.f32 1e-09, %v1517_v45 }
 0x550   : > { %v1347_v60 = vsel %vm1346_vm15, %v1342_v10, inf }
 0x551   : > { %1348 = vmin.xlane.f32.xlu1 %v1347_v60  ;;  %6752 = vrcp.f32 %v1533_v62  ;;  %v341_v60 = vld [vmem:[%s7748_s18 + $0x58] sm:$0xff]  ;;  %v10320_v62 = vld [vmem:[#allocation42_spill] sm:$0xff] }
 0x552   : > { %v7972_v37 = vpop.xlane.xlu0 %1374  ;;  %6754 = vrcp.f32 %v1534_v63  ;;  %v10321_v63 = vld [vmem:[#allocation43_spill] sm:$0xff] }
 0x553   : > { %vm1376_vm2 = vcmp.eq.f32.partialorder %v7813_v35, %v7972_v37  ;;  %v1430_v35 = vand.u32 65535, %v7817_v52 }
 0x554   : > { %v1377_v44 = vsel %vm1376_vm2, %v1372_v4, inf }
 0x555   : > { %v7977_v43 = vpop.xlane.xlu1 %1389  ;;  %1378 = vmin.xlane.f32.xlu1 %v1377_v44  ;;  %v1432_v31 = vcvt.s32.f32 %v1430_v35 }
 0x556   : > { %vm1391_vm3 = vcmp.eq.f32.partialorder %v7824_v25, %v7977_v43  ;;  %v7981_v33 = vpop.xlane.xlu0 %1404 }
 0x557   : > { %v1392_v15 = vsel %vm1391_vm3, %v1387_v14, inf  ;;  %vm1406_vm4 = vcmp.eq.f32.partialorder %v7826_v50, %v7981_v33  ;;  %v1521_v14 = vadd.f32 %v7787_v2, %v10321_v63 }
 0x558   : > { %1393 = vmin.xlane.f32.xlu0 %v1392_v15  ;;  %v1407_v39 = vsel %vm1406_vm4, %v1402_v5, inf  ;;  %v10322_v5 = vld [vmem:[#allocation44_spill] sm:$0xff] }
 0x559   : > { %v1522_v35 = vadd.f32 %v7874_v48, %v10322_v5 }
 0x55a   : > { %v7986_v20 = vpop.xlane.xlu0 %1434 }
 0x55b   : > { %vm1436_vm5 = vcmp.eq.f32.partialorder %v7839_v57, %v7986_v20  ;;  %v7990_v17 = vpop.eup %6752  ;;  %v340_v57 = vld [vmem:[%s7748_s18 + $0x50] sm:$0xff] }
 0x55c   : > { %1408 = vmin.xlane.f32.xlu0 %v1407_v39  ;;  %v1437_v25 = vsel %vm1436_vm5, %v1432_v31, inf  ;;  %v7992_v50 = vpop.eup %6754  ;;  %v7996_v52 = vmul.f32 %v7990_v17, %v7764_v9  ;;  %v10319_v9 = vld [vmem:[#allocation41_spill] sm:$0xff]  ;;  %v1537_v39 = vadd.f32 1e-09, %v1521_v14  ;;  %v1538_v31 = vadd.f32 1e-09, %v1522_v35 }
 0x55d   : > { %v8000_v10 = vmul.f32 %v7992_v50, %v7777_v12  ;;  %v1519_v47 = vadd.f32 %v7772_v0, %v10319_v9  ;;  %v1520_v12 = vadd.f32 %v7866_v49, %v10320_v62 }
 0x55e   : > { %10317 = vst [vmem:[#allocation39_spill] sm:$0xff] %v7996_v52  ;;  %v1720_v56 = vmul.f32 5.0, %v7996_v52  ;;  %v1306_v52 = vcvt.f32.s32 %v7939_v61 }
 0x55f   : > { %10318 = vst [vmem:[#allocation40_spill] sm:$0xff] %v8000_v10  ;;  %v1721_v45 = vmul.f32 5.0, %v8000_v10  ;;  %v1535_v44 = vadd.f32 1e-09, %v1519_v47  ;;  %v1536_v15 = vadd.f32 1e-09, %v1520_v12 }
 0x560   : > { %1438 = vmin.xlane.f32.xlu0 %v1437_v25  ;;  %vm1736_vm6 = vcmp.lt.f32.partialorder %v340_v57, %v1720_v56  ;;  %v8016_v25 = vpop.permute.xlu1 %6511  ;;  %v1415_v56 = vand.u32 65535, %v7880_v51 }
 0x561   : > { %vm1737_vm7 = vcmp.lt.f32.partialorder %v341_v60, %v1721_v45  ;;  %v5422_v34 = vsel %vm1736_vm6, 1.0, %v10286_v53  ;;  %6756 = vrcp.f32 %v1535_v44  ;;  %v1445_v60 = vand.u32 65535, %v7885_v1 }
 0x562   : > { %v5423_v40 = vsel %vm1737_vm7, 1.0, %v10286_v53  ;;  %6758 = vrcp.f32 %v1536_v15  ;;  %v1417_v57 = vcvt.s32.f32 %v1415_v56 }
 0x563   : > { %v6525_v4 = vpack.i.bf16 %v5423_v40, %v5422_v34  ;;  %6760 = vrcp.f32 %v1537_v39  ;;  %v1447_v47 = vcvt.s32.f32 %v1445_v60  ;;  %v345_v60 = vld [vmem:[%s7748_s18 + $0x78] sm:$0xff] }
 0x564   : > { %6762 = vrcp.f32 %v1538_v31  ;;  %v343_v31 = vld [vmem:[%s7748_s18 + $0x68] sm:$0xff] }
 0x56b   : > { %v8024_v40 = vpop.eup %6756 }
 0x56c   : > { %v8028_v51 = vpop.eup %6758 }
 0x56d   : > { %v8032_v1 = vpop.eup %6760  ;;  %v8040_v44 = vmul.f32 %v8028_v51, %v7866_v49 }
 0x56e   : > { %10323 = vst [vmem:[#allocation41_spill] sm:$0xff] %v8032_v1  ;;  %v8042_v14 = vpop.eup %6762  ;;  %v8048_v35 = vmul.f32 %v8032_v1, %v7787_v2 }
 0x56f   : > { %10325 = vst [vmem:[#allocation44_spill] sm:$0xff] %v8040_v44  ;;  %v8052_v39 = vmul.f32 %v8042_v14, %v7874_v48 }
 0x570   : > { %10326 = vst [vmem:[#allocation95_spill] sm:$0xff] %v8048_v35  ;;  %v1724_v56 = vmul.f32 5.0, %v8048_v35  ;;  %v8064_v35 = vpop.permute.xlu0 %6516 }
 0x571   : > { %10327 = vst [vmem:[#allocation96_spill] sm:$0xff] %v8052_v39  ;;  %v1725_v49 = vmul.f32 5.0, %v8052_v39  ;;  %v1246_v39 = vcvt.f32.s32 %v7932_v41 }
 0x573   : > { %vm1741_vm13 = vcmp.lt.f32.partialorder %v345_v60, %v1725_v49  ;;  %v1261_v49 = vcvt.f32.s32 %v7916_v24  ;;  %v1276_v60 = vcvt.f32.s32 %v7934_v42  ;;  %v6503_v24 = vunpack.i.h.bf16 %v7957_v7 }
 0x575   : > { %v1277_v41 = vshll.u32 %v1276_v60, 16 }
 0x576   : > { %6526 = vperm.xlu0 %6498, %v6525_v4  }
 0x58a   : > { %v8019_v45 = vpop.xlane.xlu1 %1419 }
 0x58b   : > { %vm1421_vm8 = vcmp.eq.f32.partialorder %v7887_v29, %v8019_v45  ;;  %v8036_v29 = vmul.f32 %v8024_v40, %v7772_v0  ;;  %v342_v0 = vld [vmem:[%s7748_s18 + $0x60] sm:$0xff] }
 0x58c   : > { %v1422_v34 = vsel %vm1421_vm8, %v1417_v57, inf  ;;  %v344_v57 = vld [vmem:[%s7748_s18 + $0x70] sm:$0xff] }
 0x58d   : > { %1423 = vmin.xlane.f32.xlu1 %v1422_v34  ;;  %10324 = vst [vmem:[#allocation42_spill] sm:$0xff] %v8036_v29  ;;  %v1722_v15 = vmul.f32 5.0, %v8036_v29  ;;  %vm1740_vm12 = vcmp.lt.f32.partialorder %v344_v57, %v1724_v56 }
 0x58e   : > { %v8026_v4 = vpop.xlane.xlu1 %1449  ;;  %v5426_v48 = vsel %vm1740_vm12, 1.0, %v10286_v53 }
 0x58f   : > { %vm1451_vm9 = vcmp.eq.f32.partialorder %v7896_v23, %v8026_v4  ;;  %v1723_v23 = vmul.f32 5.0, %v8040_v44  ;;  %vm1738_vm10 = vcmp.lt.f32.partialorder %v342_v0, %v1722_v15  ;;  %v1231_v0 = vcvt.f32.s32 %v7907_v36 }
 0x590   : > { %v1452_v12 = vsel %vm1451_vm9, %v1447_v47, inf  ;;  %v5424_v34 = vsel %vm1738_vm10, 1.0, %v10286_v53  ;;  %v1262_v44 = vshll.u32 %v1261_v49, 16  ;;  %v1291_v36 = vcvt.f32.s32 %v7923_v28 }
 0x591   : > { %1453 = vmin.xlane.f32.xlu1 %v1452_v12  ;;  %vm1739_vm11 = vcmp.lt.f32.partialorder %v343_v31, %v1723_v23  ;;  %v5427_v12 = vsel %vm1741_vm13, 1.0, %v10286_v53  ;;  %v1232_v57 = vshll.u32 %v1231_v0, 16  ;;  %v1321_v28 = vcvt.f32.s32 %v7928_v27 }
 0x592   : > { %v5425_v47 = vsel %vm1739_vm11, 1.0, %v10286_v53  ;;  %v6535_v29 = vpack.i.bf16 %v5427_v12, %v5426_v48  ;;  %v8067_v31 = vpop.permute.xlu1 %6521  ;;  %v1292_v0 = vshll.u32 %v1291_v36, 16  ;;  %v1307_v49 = vshll.u32 %v1306_v52, 16 }
 0x593   : > { %v6530_v2 = vpack.i.bf16 %v5425_v47, %v5424_v34 }
 0x598   : > { %v1229_v15 = vpop.xlane.xlu0 %1228 }
 0x599   : > { %v1230_v56 = vcvt.f32.s32 %v1229_v15 }
 0x59b   : > { %v8072_v48 = vadd.s32 %v1232_v57, %v1230_v56  ;;  %v1336_v57 = vcvt.f32.s32 %v7945_v38 }
 0x59d   : > { %10328 = vst [vmem:[#allocation97_spill] sm:$0xff] %v8072_v48  ;;  %vm1459_vm14 = vcmp.eq.s32.totalorder %v7103_v46, %v8072_v48  ;;  %v1337_v36 = vshll.u32 %v1336_v57, 16  ;;  %v10369_v48 = vld [vmem:[#allocation72_spill] sm:$0xff] }
 0x59f   : > { %v1259_v23 = vpop.xlane.xlu0 %1258 }
 0x5a0   : > { %v1260_v34 = vcvt.f32.s32 %v1259_v23 }
 0x5a2   : > { %6531 = vperm.xlu1 %6504, %v6530_v2   ;;  %v8079_v15 = vadd.s32 %v1262_v44, %v1260_v34  ;;  %v6502_v34 = vunpack.i.l.bf16 %v7957_v7  ;;  %v1322_v7 = vshll.u32 %v1321_v28, 16 }
 0x5a4   : > { %10330 = vst [vmem:[#allocation99_spill] sm:$0xff] %v8079_v15  ;;  %vm1461_vm2 = vcmp.eq.s32.totalorder %v7103_v46, %v8079_v15 }
 0x5a5   : > { %v1289_v47 = vpop.xlane.xlu0 %1288  ;;  %v5398_v28 = vsel %vm1461_vm2, 1.0, %v10286_v53 }
 0x5a6   : > { %6536 = vperm.xlu1 %6504, %v6535_v29   ;;  %v1247_v29 = vshll.u32 %v1246_v39, 16  ;;  %v1290_v39 = vcvt.f32.s32 %v1289_v47  ;;  %v6509_v47 = vunpack.i.h.bf16 %v7969_v16 }
 0x5a9   : > { %v1319_v61 = vpop.xlane.xlu0 %1318 }
 0x5c3   : > { %v1244_v2 = vpop.xlane.xlu1 %1243 }
 0x5c4   : > { %v1245_v12 = vcvt.f32.s32 %v1244_v2  ;;  %v5396_v2 = vsel %vm1459_vm14, 1.0, %v10286_v53 }
 0x5c6   : > { %v8076_v10 = vadd.s32 %v1247_v29, %v1245_v12  ;;  %v8097_v29 = vadd.s32 %v1292_v0, %v1290_v39  ;;  %v1320_v12 = vcvt.f32.s32 %v1319_v61  ;;  %v1366_v39 = vcvt.f32.s32 %v7952_v13 }
 0x5c7   : > { %v1274_v42 = vpop.xlane.xlu1 %1273  ;;  %v6514_v0 = vunpack.i.h.bf16 %v8016_v25 }
 0x5c8   : > { %10329 = vst [vmem:[#allocation98_spill] sm:$0xff] %v8076_v10  ;;  %vm1460_vm15 = vcmp.eq.s32.totalorder %v7103_v46, %v8076_v10  ;;  %v1275_v23 = vcvt.f32.s32 %v1274_v42  ;;  %10333 = vst [vmem:[#allocation102_spill] sm:$0xff] %v8097_v29  ;;  %v8108_v42 = vmul.f32 %v6502_v34, %v5396_v2  ;;  %vm1463_vm4 = vcmp.eq.s32.totalorder %v7103_v46, %v8097_v29 }
 0x5c9   : > { %v5397_v56 = vsel %vm1460_vm15, 1.0, %v10286_v53  ;;  %v6513_v2 = vunpack.i.l.bf16 %v8016_v25 }
 0x5ca   : > { %v8088_v44 = vadd.s32 %v1277_v41, %v1275_v23  ;;  %v8090_v60 = vmul.f32 %v6503_v24, %v5397_v56  ;;  %10336 = vst [vmem:[#allocation105_spill] sm:$0xff] %v8108_v42  ;;  %v6508_v23 = vunpack.i.l.bf16 %v7969_v16  ;;  %v8119_v56 = vadd.s32 %v1322_v7, %v1320_v12 }
 0x5cb   : > { %v1304_v27 = vpop.xlane.xlu1 %1303 }
 0x5cc   : > { %10331 = vst [vmem:[#allocation100_spill] sm:$0xff] %v8088_v44  ;;  %10332 = vst [vmem:[#allocation101_spill] sm:$0xff] %v8090_v60  ;;  %vm1462_vm3 = vcmp.eq.s32.totalorder %v7103_v46, %v8088_v44  ;;  %v1305_v38 = vcvt.f32.s32 %v1304_v27  ;;  %1888 = vrot.lane.b32.xlu1 %v8090_v60, %s6774_s19  ;;  %v8132_v34 = vmul.f32 %v6508_v23, %v5398_v28  ;;  %v5400_v27 = vsel %vm1463_vm4, 1.0, %v10286_v53 }
 0x5cd   : > { %v5399_v52 = vsel %vm1462_vm3, 1.0, %v10286_v53  ;;  %10337 = vst [vmem:[#allocation106_spill] sm:$0xff] %v8119_v56  ;;  %vm1465_vm6 = vcmp.eq.s32.totalorder %v7103_v46, %v8119_v56  ;;  %v6524_v28 = vunpack.i.h.bf16 %v8067_v31 }
 0x5ce   : > { %v8104_v41 = vadd.s32 %v1307_v49, %v1305_v38  ;;  %v8106_v24 = vmul.f32 %v6509_v47, %v5399_v52  ;;  %10340 = vst [vmem:[#allocation109_spill] sm:$0xff] %v8132_v34  ;;  %v1367_v47 = vshll.u32 %v1366_v39, 16  ;;  %v6519_v38 = vunpack.i.h.bf16 %v8064_v35 }
 0x5cf   : > { %v1334_v61 = vpop.xlane.xlu1 %1333  ;;  %v8150_v39 = vmul.f32 %v6513_v2, %v5400_v27  ;;  %v5402_v23 = vsel %vm1465_vm6, 1.0, %v10286_v53 }
 0x5d0   : > { %10334 = vst [vmem:[#allocation103_spill] sm:$0xff] %v8104_v41  ;;  %10335 = vst [vmem:[#allocation104_spill] sm:$0xff] %v8106_v24  ;;  %vm1464_vm5 = vcmp.eq.s32.totalorder %v7103_v46, %v8104_v41  ;;  %v1335_v49 = vcvt.f32.s32 %v1334_v61  ;;  %1892 = vrot.lane.b32.xlu0 %v8106_v24, %s6774_s19  ;;  %1886 = vrot.lane.b32.xlu1 %v8108_v42, %s6774_s19 }
 0x5d1   : > { %v5401_v13 = vsel %vm1464_vm5, 1.0, %v10286_v53  ;;  %10343 = vst [vmem:[#allocation112_spill] sm:$0xff] %v8150_v39 }
 0x5d2   : > { %v8128_v16 = vadd.s32 %v1337_v36, %v1335_v49  ;;  %v8130_v57 = vmul.f32 %v6514_v0, %v5401_v13  ;;  %v6518_v0 = vunpack.i.l.bf16 %v8064_v35 }
 0x5d3   : > { %v1364_v12 = vpop.xlane.xlu1 %1363 }
 0x5d4   : > { %10338 = vst [vmem:[#allocation107_spill] sm:$0xff] %v8128_v16  ;;  %10339 = vst [vmem:[#allocation108_spill] sm:$0xff] %v8130_v57  ;;  %vm1466_vm7 = vcmp.eq.s32.totalorder %v7103_v46, %v8128_v16  ;;  %v1365_v7 = vcvt.f32.s32 %v1364_v12  ;;  %1896 = vrot.lane.b32.xlu0 %v8130_v57, %s6774_s19  ;;  %1890 = vrot.lane.b32.xlu1 %v8132_v34, %s6774_s19  ;;  %v8164_v13 = vmul.f32 %v6518_v0, %v5402_v23 }
 0x5d5   : > { %v5403_v25 = vsel %vm1466_vm7, 1.0, %v10286_v53  ;;  %v1381_v0 = vcvt.f32.s32 %v7972_v37 }
 0x5d6   : > { %v8146_v52 = vadd.s32 %v1367_v47, %v1365_v7  ;;  %v8148_v36 = vmul.f32 %v6519_v38, %v5403_v25  ;;  %10345 = vst [vmem:[#allocation114_spill] sm:$0xff] %v8164_v13  ;;  %v1351_v47 = vcvt.f32.s32 %v7960_v32  ;;  %v6523_v38 = vunpack.i.l.bf16 %v8067_v31 }
 0x5d7   : > { %v1382_v31 = vshll.u32 %v1381_v0, 16 }
 0x5d8   : > { %10341 = vst [vmem:[#allocation110_spill] sm:$0xff] %v8146_v52  ;;  %10342 = vst [vmem:[#allocation111_spill] sm:$0xff] %v8148_v36  ;;  %vm1468_vm8 = vcmp.eq.s32.totalorder %v7103_v46, %v8146_v52  ;;  %1900 = vrot.lane.b32.xlu0 %v8148_v36, %s6774_s19  ;;  %1894 = vrot.lane.b32.xlu1 %v8150_v39, %s6774_s19  ;;  %v1352_v2 = vshll.u32 %v1351_v47, 16 }
 0x5d9   : > { %v5405_v61 = vsel %vm1468_vm8, 1.0, %v10286_v53 }
 0x5da   : > { %v8162_v49 = vmul.f32 %v6524_v28, %v5405_v61  ;;  %v1396_v28 = vcvt.f32.s32 %v7977_v43 }
 0x5dc   : > { %10344 = vst [vmem:[#allocation113_spill] sm:$0xff] %v8162_v49  ;;  %1904 = vrot.lane.b32.xlu0 %v8162_v49, %s6774_s19  ;;  %1898 = vrot.lane.b32.xlu1 %v8164_v13, %s6774_s19  ;;  %v10375_v49 = vld [vmem:[#allocation6_spill] sm:$0xff] }
 0x5de   : > { %v1349_v35 = vpop.xlane.xlu1 %1348 }
 0x5df   : > { %v1350_v27 = vcvt.f32.s32 %v1349_v35 }
 0x5e1   : > { %v8171_v12 = vadd.s32 %v1352_v2, %v1350_v27  ;;  %v1397_v2 = vshll.u32 %v1396_v28, 16  ;;  %v1411_v28 = vcvt.f32.s32 %v7981_v33 }
 0x5e2   : > { %v1379_v23 = vpop.xlane.xlu1 %1378 }
 0x5e3   : > { %10346 = vst [vmem:[#allocation115_spill] sm:$0xff] %v8171_v12  ;;  %vm1467_vm9 = vcmp.eq.s32.totalorder %v7103_v46, %v8171_v12  ;;  %v1380_v47 = vcvt.f32.s32 %v1379_v23 }
 0x5e4   : > { %v5404_v7 = vsel %vm1467_vm9, 1.0, %v10286_v53 }
 0x5e5   : > { %v1394_v25 = vpop.xlane.xlu0 %1393  ;;  %v8177_v32 = vmul.f32 %v6523_v38, %v5404_v7  ;;  %v8183_v27 = vadd.s32 %v1382_v31, %v1380_v47  ;;  %v1426_v47 = vcvt.f32.s32 %v8019_v45  ;;  %v1412_v31 = vshll.u32 %v1411_v28, 16 }
 0x5e6   : > { %v1395_v35 = vcvt.f32.s32 %v1394_v25 }
 0x5e7   : > { %10347 = vst [vmem:[#allocation116_spill] sm:$0xff] %v8177_v32  ;;  %1902 = vrot.lane.b32.xlu1 %v8177_v32, %s6774_s19  ;;  %10348 = vst [vmem:[#allocation117_spill] sm:$0xff] %v8183_v27  ;;  %vm1469_vm10 = vcmp.eq.s32.totalorder %v7103_v46, %v8183_v27  ;;  %v10374_v32 = vld [vmem:[#allocation5_spill] sm:$0xff] }
 0x5e8   : > { %v8185_v12 = vadd.s32 %v1397_v2, %v1395_v35  ;;  %v5406_v43 = vsel %vm1469_vm10, 1.0, %v10286_v53 }
 0x5e9   : > { %v1409_v61 = vpop.xlane.xlu0 %1408 }
 0x5ea   : > { %10349 = vst [vmem:[#allocation118_spill] sm:$0xff] %v8185_v12  ;;  %vm1470_vm11 = vcmp.eq.s32.totalorder %v7103_v46, %v8185_v12  ;;  %v1410_v35 = vcvt.f32.s32 %v1409_v61  ;;  %v1427_v12 = vshll.u32 %v1426_v47, 16 }
 0x5eb   : > { %v5407_v25 = vsel %vm1470_vm11, 1.0, %v10286_v53 }
 0x5ed   : > { %v1439_v52 = vpop.xlane.xlu0 %1438 }
 0x5f5   : > { %v6527_v38 = vpop.permute.xlu0 %6526 }
 0x5f6   : > { %v6529_v37 = vunpack.i.h.bf16 %v6527_v38  ;;  %v6528_v7 = vunpack.i.l.bf16 %v6527_v38  ;;  %v1441_v38 = vcvt.f32.s32 %v7986_v20 }
 0x5f8   : > { %v8193_v23 = vmul.f32 %v6529_v37, %v5407_v25  ;;  %v8195_v0 = vmul.f32 %v6528_v7, %v5406_v43  ;;  %v1456_v37 = vcvt.f32.s32 %v8026_v4  ;;  %v8205_v43 = vadd.s32 %v1412_v31, %v1410_v35 }
 0x5f9   : > { %v1440_v25 = vcvt.f32.s32 %v1439_v52  ;;  %v1442_v41 = vshll.u32 %v1441_v38, 16  ;;  %v6580_v52 = vld [vmem:[%s9998_s0] sm:$0xff]  }
 0x5fa   : > { %10350 = vst [vmem:[#allocation119_spill] sm:$0xff] %v8193_v23  ;;  %10351 = vst [vmem:[#allocation120_spill] sm:$0xff] %v8195_v0  ;;  %1908 = vrot.lane.b32.xlu0 %v8193_v23, %s6774_s19  ;;  %1906 = vrot.lane.b32.xlu1 %v8195_v0, %s6774_s19  ;;  %v1457_v44 = vshll.u32 %v1456_v37, 16  ;;  %vm1471_vm12 = vcmp.eq.s32.totalorder %v7103_v46, %v8205_v43 }
 0x5fb   : > { %10352 = vst [vmem:[#allocation121_spill] sm:$0xff] %v8205_v43  ;;  %v8211_v45 = vadd.s32 %v1442_v41, %v1440_v25  ;;  %6078 = vmatprep.mubr.bf16.mxu0 %v6580_v52 }
 0x5fd   : > { %10354 = vst [vmem:[#allocation123_spill] sm:$0xff] %v8211_v45  ;;  %vm1473_vm14 = vcmp.eq.s32.totalorder %v7103_v46, %v8211_v45 }
 0x5fe   : > { %v5410_v38 = vsel %vm1473_vm14, 1.0, %v10286_v53 }
 0x61a   : > { %v1424_v2 = vpop.xlane.xlu1 %1423 }
 0x61b   : > { %v1425_v7 = vcvt.f32.s32 %v1424_v2 }
 0x61d   : > { %v8207_v27 = vadd.s32 %v1427_v12, %v1425_v7 }
 0x61e   : > { %v1454_v16 = vpop.xlane.xlu1 %1453 }
 0x61f   : > { %10353 = vst [vmem:[#allocation122_spill] sm:$0xff] %v8207_v27  ;;  %v1455_v33 = vcvt.f32.s32 %v1454_v16  ;;  %vm1472_vm13 = vcmp.eq.s32.totalorder %v7103_v46, %v8207_v27  ;;  %v5408_v16 = vsel %vm1471_vm12, 1.0, %v10286_v53 }
 0x620   : > { %v5409_v28 = vsel %vm1472_vm13, 1.0, %v10286_v53 }
 0x621   : > { %v8215_v20 = vadd.s32 %v1457_v44, %v1455_v33 }
 0x622   : > { %v6532_v4 = vpop.permute.xlu1 %6531 }
 0x623   : > { %10355 = vst [vmem:[#allocation124_spill] sm:$0xff] %v8215_v20  ;;  %v6534_v12 = vunpack.i.h.bf16 %v6532_v4  ;;  %v6533_v61 = vunpack.i.l.bf16 %v6532_v4  ;;  %vm1474_vm15 = vcmp.eq.s32.totalorder %v7103_v46, %v8215_v20 }
 0x624   : > { %v5411_v2 = vsel %vm1474_vm15, 1.0, %v10286_v53 }
 0x625   : > { %v8226_v44 = vmul.f32 %v6534_v12, %v5409_v28  ;;  %v8228_v41 = vmul.f32 %v6533_v61, %v5408_v16 }
 0x626   : > { %v6537_v47 = vpop.permute.xlu1 %6536 }
 0x627   : > { %10356 = vst [vmem:[#allocation125_spill] sm:$0xff] %v8226_v44  ;;  %10357 = vst [vmem:[#allocation126_spill] sm:$0xff] %v8228_v41  ;;  %v6539_v35 = vunpack.i.h.bf16 %v6537_v47  ;;  %v6538_v31 = vunpack.i.l.bf16 %v6537_v47  ;;  %1912 = vrot.lane.b32.xlu0 %v8226_v44, %s6774_s19  ;;  %1910 = vrot.lane.b32.xlu1 %v8228_v41, %s6774_s19 }
 0x629   : > { %v8236_v37 = vmul.f32 %v6539_v35, %v5411_v2  ;;  %v8238_v7 = vmul.f32 %v6538_v31, %v5410_v38 }
 0x62b   : > { %10358 = vst [vmem:[#allocation127_spill] sm:$0xff] %v8236_v37  ;;  %10359 = vst [vmem:[#allocation128_spill] sm:$0xff] %v8238_v7  ;;  %1916 = vrot.lane.b32.xlu0 %v8236_v37, %s6774_s19  ;;  %1914 = vrot.lane.b32.xlu1 %v8238_v7, %s6774_s19 }
 0x63e   : > { %v8244_v25 = vpop.permute.xlu1 %1888 }
 0x63f   : > { %v1935_v52 = vsel %vm560_vm1, %v7398_v3, %v8244_v25 }
 0x642   : > { %v8246_v33 = vpop.permute.xlu0 %1892  ;;  %v8248_v4 = vpop.permute.xlu1 %1886 }
 0x643   : > { %v1934_v12 = vsel %vm560_vm1, %v7386_v11, %v8248_v4  ;;  %v1937_v47 = vsel %vm560_vm1, %v7427_v22, %v8246_v33 }
 0x644   : > { %v1950_v61 = vpack.c.bf16 %v1935_v52, %v1934_v12 }
 0x646   : > { %v8256_v28 = vpop.permute.xlu0 %1896  ;;  %6062 = vmatprep.subr.bf16.mxu0 %v1950_v61  ;;  %v8258_v16 = vpop.permute.xlu1 %1890 }
 0x647   : > { %v1936_v35 = vsel %vm560_vm1, %v7412_v55, %v8258_v16  ;;  %6063 = vmatpush3.bf16.msra.mxu0 %v1950_v61  ;;  %v1939_v38 = vsel %vm560_vm1, %v7464_v8, %v8256_v28 }
 0x648   : > { %v1951_v31 = vpack.c.bf16 %v1937_v47, %v1936_v35 }
 0x64a   : > { %6064 = vmatprep.subr.bf16.mxu0 %v1951_v31  ;;  %v8266_v2 = vpop.permute.xlu1 %1894  ;;  %v8274_v12 = vpop.permute.xlu0 %1900 }
 0x64b   : > { %v1938_v52 = vsel %vm560_vm1, %v7447_v21, %v8266_v2  ;;  %6065 = vmatpush3.bf16.msra.mxu0 %v1951_v31  ;;  %v1941_v61 = vsel %vm560_vm1, %v7474_v26, %v8274_v12 }
 0x64c   : > { %v1952_v20 = vpack.c.bf16 %v1939_v38, %v1938_v52 }
 0x64e   : > { %6066 = vmatprep.subr.bf16.mxu0 %v1952_v20  ;;  %v8276_v45 = vpop.permute.xlu1 %1898  ;;  %v8284_v27 = vpop.permute.xlu0 %1904 }
 0x64f   : > { %v1940_v47 = vsel %vm560_vm1, %v7469_v6, %v8276_v45  ;;  %6067 = vmatpush3.bf16.msra.mxu0 %v1952_v20  ;;  %10360 = vst [vmem:[#allocation129_spill] sm:$0xff] %v8284_v27  ;;  %v1943_v38 = vsel %vm560_vm1, %v7515_v59, %v8284_v27 }
 0x650   : > { %v1953_v35 = vpack.c.bf16 %v1941_v61, %v1940_v47  ;;  %v10364_v61 = vld [vmem:[#allocation69_spill] sm:$0xff] }
 0x652   : > { %6068 = vmatprep.subr.bf16.mxu0 %v1953_v35 }
 0x653   : > { %6069 = vmatpush3.bf16.msra.mxu0 %v1953_v35  ;;  %v10365_v35 = vld [vmem:[#allocation68_spill] sm:$0xff] }
 0x659   : > { %v8286_v31 = vpop.permute.xlu1 %1902 }
 0x65a   : > { %10361 = vst [vmem:[#allocation130_spill] sm:$0xff] %v8286_v31  ;;  %v1942_v52 = vsel %vm560_vm1, %v7508_v54, %v8286_v31 }
 0x65b   : > { %v1954_v43 = vpack.c.bf16 %v1943_v38, %v1942_v52 }
 0x65d   : > { %6070 = vmatprep.subr.bf16.mxu0 %v1954_v43 }
 0x65e   : > { %6071 = vmatpush3.bf16.msra.mxu0 %v1954_v43  ;;  %v10368_v43 = vld [vmem:[#allocation74_spill] sm:$0xff] }
 0x66c   : > { %v8294_v56 = vpop.permute.xlu0 %1908  ;;  %v8296_v20 = vpop.permute.xlu1 %1906 }
 0x66d   : > { %10362 = vst [vmem:[#allocation131_spill] sm:$0xff] %v8294_v56  ;;  %10363 = vst [vmem:[#allocation132_spill] sm:$0xff] %v8296_v20  ;;  %v1945_v47 = vsel %vm560_vm1, %v10364_v61, %v8294_v56  ;;  %v1944_v10 = vsel %vm560_vm1, %v10365_v35, %v8296_v20 }
 0x66e   : > { %v1955_v29 = vpack.c.bf16 %v1945_v47, %v1944_v10  ;;  %v10372_v10 = vld [vmem:[#allocation76_spill] sm:$0xff]  ;;  %v10373_v47 = vld [vmem:[#allocation75_spill] sm:$0xff] }
 0x670   : > { %6072 = vmatprep.subr.bf16.mxu0 %v1955_v29 }
 0x671   : > { %6073 = vmatpush3.bf16.msra.mxu0 %v1955_v29 }
 0x699   : > { %v8304_v15 = vpop.permute.xlu0 %1912  ;;  %v8306_v38 = vpop.permute.xlu1 %1910 }
 0x69a   : > { %10366 = vst [vmem:[#allocation133_spill] sm:$0xff] %v8304_v15  ;;  %10367 = vst [vmem:[#allocation134_spill] sm:$0xff] %v8306_v38  ;;  %v1947_v52 = vsel %vm560_vm1, %v10368_v43, %v8304_v15  ;;  %v1946_v7 = vsel %vm560_vm1, %v10369_v48, %v8306_v38 }
 0x69b   : > { %v1956_v37 = vpack.c.bf16 %v1947_v52, %v1946_v7  ;;  %v6581_v7 = vld [vmem:[%s9998_s0 + $0x8] sm:$0xff]   ;;  %v6582_v52 = vld [vmem:[%s9998_s0 + $0x10] sm:$0xff]  }
 0x69d   : > { %v8314_v41 = vpop.permute.xlu0 %1916  ;;  %6074 = vmatprep.subr.bf16.mxu0 %v1956_v37  ;;  %v8316_v44 = vpop.permute.xlu1 %1914 }
 0x69e   : > { %10370 = vst [vmem:[#allocation74_spill] sm:$0xff] %v8314_v41  ;;  %10371 = vst [vmem:[#allocation72_spill] sm:$0xff] %v8316_v44  ;;  %v1949_v29 = vsel %vm560_vm1, %v10372_v10, %v8314_v41  ;;  %v1948_v0 = vsel %vm560_vm1, %v10373_v47, %v8316_v44  ;;  %6075 = vmatpush3.bf16.msra.mxu0 %v1956_v37  ;;  %v10376_v37 = vld [vmem:[#allocation7_spill] sm:$0xff] }
 0x69f   : > { %v1957_v23 = vpack.c.bf16 %v1949_v29, %v1948_v0  ;;  %v6583_v0 = vld [vmem:[%s9998_s0 + $0x18] sm:$0xff]  }
 0x6a0   : > { %v10377_v29 = vld [vmem:[#allocation8_spill] sm:$0xff] }
 0x6a1   : > { %6076 = vmatprep.subr.bf16.mxu0 %v1957_v23 }
 0x6a2   : > { %6077 = vmatpush3.bf16.msra.mxu0 %v1957_v23  ;;  %v6584_v23 = vld [vmem:[%s9998_s0 + $0x20] sm:$0xff]  }
 0x6a3   : > { %6094 = vmatprep.subr.bf16.mxu0 %v10374_v32 }
 0x6a5   : > { %6079 = vmatmul.mubr.bf16.vlgmr.msra.gmra.mrb[16].mxu0 %v6581_v7  ;;  %v6586_v7 = vld [vmem:[%s9998_s0 + $0x30] sm:$0xff]  }
 0x6a6   : > { %6082 = vmatprep.mubr.bf16.mxu0 %v6582_v52  ;;  %6095 = vmatpush3.bf16.msra.mxu0 %v10374_v32  ;;  %v6585_v32 = vld [vmem:[%s9998_s0 + $0x28] sm:$0xff]   ;;  %v10378_v52 = vld [vmem:[#allocation9_spill] sm:$0xff] }
 0x6a7   : > { %6096 = vmatprep.subr.bf16.mxu0 %v10375_v49 }
 0x6aa   : > { %6097 = vmatpush3.bf16.msra.mxu0 %v10375_v49  ;;  %v10379_v49 = vld [vmem:[#allocation10_spill] sm:$0xff] }
 0x6ab   : > { %6098 = vmatprep.subr.bf16.mxu0 %v10376_v37 }
 0x6ad   : > { %6083 = vmatmul.mubr.bf16.gmra.mrb[20].mxu0 %v6583_v0  ;;  %v6587_v0 = vld [vmem:[%s9998_s0 + $0x38] sm:$0xff]  }
 0x6ae   : > { %6086 = vmatprep.mubr.bf16.mxu0 %v6584_v23  ;;  %6099 = vmatpush3.bf16.msra.mxu0 %v10376_v37  ;;  %v10380_v23 = vld [vmem:[#allocation11_spill] sm:$0xff]  ;;  %v10381_v37 = vld [vmem:[#allocation12_spill] sm:$0xff] }
 0x6af   : > { %6100 = vmatprep.subr.bf16.mxu0 %v10377_v29 }
 0x6b2   : > { %6101 = vmatpush3.bf16.msra.mxu0 %v10377_v29 }
 0x6b3   : > { %6102 = vmatprep.subr.bf16.mxu0 %v10378_v52 }
 0x6b5   : > { %6087 = vmatmul.mubr.bf16.gmra.mrb[24].mxu0 %v6585_v32 }
 0x6b6   : > { %6090 = vmatprep.mubr.bf16.mxu0 %v6586_v7  ;;  %6103 = vmatpush3.bf16.msra.mxu0 %v10378_v52 }
 0x6b7   : > { %6104 = vmatprep.subr.bf16.mxu0 %v10379_v49 }
 0x6ba   : > { %6105 = vmatpush3.bf16.msra.mxu0 %v10379_v49 }
 0x6bb   : > { %6106 = vmatprep.subr.bf16.mxu0 %v10380_v23 }
 0x6bd   : > { %6091 = vmatmul.mubr.bf16.gmra.mrb[28].mxu0 %v6587_v0 }
 0x6be   : > { %6107 = vmatpush3.bf16.msra.mxu0 %v10380_v23 }
 0x6bf   : > { %6108 = vmatprep.subr.bf16.mxu0 %v10381_v37 }
 0x6c2   : > { %6109 = vmatpush3.bf16.msra.mxu0 %v10381_v37 }
 0x778   : > { %v8361_v29 = vpop.f32.mrb[16].mxu0 }
 0x779   : > { %v2105_v32 = vmul.f32 %v8361_v29, %v7412_v55  ;;  %v8365_v7 = vpop.f32.mrb[17].mxu0 }
 0x77a   : > { %v2103_v52 = vmul.f32 %v7386_v11, %v8365_v7  ;;  %v8369_v49 = vpop.f32.mrb[18].mxu0 }
 0x77b   : > { %vm2121_vm2 = vcmp.lt.f32.partialorder %v2105_v32, 20.0  ;;  %v2106_v0 = vmul.f32 %v8369_v49, %v7427_v22  ;;  %v8373_v23 = vpop.f32.mrb[19].mxu0  ;;  %v2470_v37 = vsel %vm560_vm1, %v2105_v32, 0.0 }
 0x77c   : > { %vm2119_vm3 = vcmp.lt.f32.partialorder %v2103_v52, 20.0  ;;  %v2104_v13 = vmul.f32 %v7398_v3, %v8373_v23  ;;  %2471 = vadd.xlane.f32.xlu1 %v2470_v37  ;;  %v2464_v36 = vsel %vm560_vm1, %v2103_v52, 0.0  ;;  %v5438_v39 = vsel %vm2121_vm2, 1.0, %v10286_v53 }
 0x77d   : > { %vm2122_vm4 = vcmp.lt.f32.partialorder %v2106_v0, 20.0  ;;  %2465 = vadd.xlane.f32.xlu0 %v2464_v36  ;;  %v5436_v57 = vsel %vm2119_vm3, 1.0, %v10286_v53  ;;  %v2169_v42 = vmul.f32 %v5438_v39, %v7412_v55  ;;  %v2473_v52 = vsel %vm560_vm1, %v2106_v0, 0.0 }
 0x77e   : > { %vm2120_vm5 = vcmp.lt.f32.partialorder %v2104_v13, 20.0  ;;  %v2467_v34 = vsel %vm560_vm1, %v2104_v13, 0.0  ;;  %v5439_v24 = vsel %vm2122_vm4, 1.0, %v10286_v53  ;;  %v2167_v32 = vmul.f32 %v5436_v57, %v7386_v11 }
 0x77f   : > { %v5437_v60 = vsel %vm2120_vm5, 1.0, %v10286_v53  ;;  %v2170_v36 = vmul.f32 %v5439_v24, %v7427_v22  ;;  %v2186_v0 = vsel %vm560_vm1, %v2169_v42, 0.0 }
 0x780   : > { %2468 = vadd.xlane.f32.xlu1 %v2467_v34  ;;  %v8386_v37 = vpop.f32.mrb[20].mxu0  ;;  %v2168_v1 = vmul.f32 %v5437_v60, %v7398_v3  ;;  %v2183_v34 = vsel %vm560_vm1, %v2167_v32, 0.0 }
 0x781   : > { %v2109_v13 = vmul.f32 %v8386_v37, %v7469_v6  ;;  %2474 = vadd.xlane.f32.xlu0 %v2473_v52  ;;  %v8393_v63 = vpop.f32.mrb[21].mxu0  ;;  %v2188_v11 = vsel %vm560_vm1, %v2170_v36, 0.0 }
 0x782   : > { %v2107_v57 = vmul.f32 %v7447_v21, %v8393_v63  ;;  %v8397_v39 = vpop.f32.mrb[22].mxu0  ;;  %v2184_v55 = vsel %vm560_vm1, %v2168_v1, 0.0 }
 0x783   : > { %vm2125_vm6 = vcmp.lt.f32.partialorder %v2109_v13, 20.0  ;;  %v2110_v24 = vmul.f32 %v8397_v39, %v7474_v26  ;;  %v8403_v60 = vpop.f32.mrb[23].mxu0  ;;  %v2185_v52 = vadd.f32 %v2184_v55, %v2183_v34 }
 0x784   : > { %vm2123_vm7 = vcmp.lt.f32.partialorder %v2107_v57, 20.0  ;;  %v2108_v22 = vmul.f32 %v7464_v8, %v8403_v60  ;;  %2388 = vadd.xlane.f32.xlu1 %v2186_v0  ;;  %v5442_v1 = vsel %vm2125_vm6, 1.0, %v10286_v53 }
 0x785   : > { %vm2126_vm8 = vcmp.lt.f32.partialorder %v2110_v24, 20.0  ;;  %2390 = vadd.xlane.f32.xlu0 %v2188_v11  ;;  %v2187_v32 = vadd.f32 %v2186_v0, %v2185_v52  ;;  %v5440_v3 = vsel %vm2123_vm7, 1.0, %v10286_v53  ;;  %v2173_v52 = vmul.f32 %v5442_v1, %v7469_v6 }
 0x786   : > { %vm2124_vm9 = vcmp.lt.f32.partialorder %v2108_v22, 20.0  ;;  %v2171_v41 = vmul.f32 %v5440_v3, %v7447_v21  ;;  %v5443_v38 = vsel %vm2126_vm8, 1.0, %v10286_v53 }
 0x787   : > { %v2189_v44 = vadd.f32 %v2188_v11, %v2187_v32  ;;  %v5441_v15 = vsel %vm2124_vm9, 1.0, %v10286_v53  ;;  %v2482_v32 = vsel %vm560_vm1, %v2109_v13, 0.0 }
 0x788   : > { %2384 = vadd.xlane.f32.xlu1 %v2183_v34  ;;  %v8412_v42 = vpop.f32.mrb[24].mxu0  ;;  %v2190_v56 = vsel %vm560_vm1, %v2171_v41, 0.0  ;;  %v2172_v11 = vmul.f32 %v5441_v15, %v7464_v8  ;;  %v2174_v41 = vmul.f32 %v5443_v38, %v7474_v26  ;;  %v2194_v8 = vsel %vm560_vm1, %v2173_v52, 0.0 }
 0x789   : > { %v8418_v36 = vmul.f32 %v8412_v42, %v10365_v35  ;;  %2386 = vadd.xlane.f32.xlu0 %v2184_v55  ;;  %v8420_v0 = vpop.f32.mrb[25].mxu0  ;;  %v2191_v21 = vadd.f32 %v2190_v56, %v2189_v44  ;;  %v2485_v44 = vsel %vm560_vm1, %v2110_v24, 0.0  ;;  %v2476_v26 = vsel %vm560_vm1, %v2107_v57, 0.0 }
 0x78a   : > { %v8427_v3 = vmul.f32 %v7508_v54, %v8420_v0  ;;  %v8429_v34 = vpop.f32.mrb[26].mxu0  ;;  %v2192_v15 = vsel %vm560_vm1, %v2172_v11, 0.0  ;;  %v2479_v52 = vsel %vm560_vm1, %v2108_v22, 0.0 }
 0x78b   : > { %10382 = vst [vmem:[#allocation76_spill] sm:$0xff] %v8429_v34  ;;  %vm2129_vm10 = vcmp.lt.f32.partialorder %v8418_v36, 20.0  ;;  %v8435_v55 = vmul.f32 %v8429_v34, %v10364_v61  ;;  %v8437_v1 = vpop.f32.mrb[27].mxu0  ;;  %v2193_v13 = vadd.f32 %v2192_v15, %v2191_v21 }
 0x78c   : > { %vm2127_vm11 = vcmp.lt.f32.partialorder %v8427_v3, 20.0  ;;  %v8444_v6 = vmul.f32 %v7515_v59, %v8437_v1  ;;  %2483 = vadd.xlane.f32.xlu1 %v2482_v32  ;;  %v5446_v11 = vsel %vm2129_vm10, 1.0, %v10286_v53  ;;  %v2196_v32 = vsel %vm560_vm1, %v2174_v41, 0.0 }
 0x78d   : > { %vm2130_vm12 = vcmp.lt.f32.partialorder %v8435_v55, 20.0  ;;  %2486 = vadd.xlane.f32.xlu0 %v2485_v44  ;;  %v5444_v20 = vsel %vm2127_vm11, 1.0, %v10286_v53  ;;  %v2195_v38 = vadd.f32 %v2194_v8, %v2193_v13 }
 0x78e   : > { %vm2128_vm13 = vcmp.lt.f32.partialorder %v8444_v6, 20.0  ;;  %v2175_v21 = vmul.f32 %v5444_v20, %v7508_v54  ;;  %v5447_v31 = vsel %vm2130_vm12, 1.0, %v10286_v53  ;;  %v2177_v20 = vmul.f32 %v5446_v11, %v10365_v35 }
 0x78f   : > { %v5445_v24 = vsel %vm2128_vm13, 1.0, %v10286_v53  ;;  %v2197_v13 = vadd.f32 %v2196_v32, %v2195_v38 }
 0x790   : > { %2477 = vadd.xlane.f32.xlu1 %v2476_v26  ;;  %v8458_v44 = vpop.f32.mrb[28].mxu0  ;;  %v2176_v27 = vmul.f32 %v5445_v24, %v7515_v59  ;;  %v2198_v41 = vsel %vm560_vm1, %v2175_v21, 0.0 }
 0x791   : > { %10383 = vst [vmem:[#allocation75_spill] sm:$0xff] %v8458_v44  ;;  %v2117_v34 = vmul.f32 %v8458_v44, %v10373_v47  ;;  %2480 = vadd.xlane.f32.xlu0 %v2479_v52  ;;  %v8465_v57 = vpop.f32.mrb[29].mxu0  ;;  %v2199_v22 = vadd.f32 %v2198_v41, %v2197_v13  ;;  %v2178_v52 = vmul.f32 %v5447_v31, %v10364_v61  ;;  %v2202_v13 = vsel %vm560_vm1, %v2177_v20, 0.0 }
 0x792   : > { %10384 = vst [vmem:[#allocation5_spill] sm:$0xff] %v8465_v57  ;;  %v2115_v26 = vmul.f32 %v10369_v48, %v8465_v57  ;;  %v8471_v54 = vpop.f32.mrb[30].mxu0  ;;  %v2200_v38 = vsel %vm560_vm1, %v2176_v27, 0.0 }
 0x793   : > { %10385 = vst [vmem:[#allocation6_spill] sm:$0xff] %v8471_v54  ;;  %vm2133_vm14 = vcmp.lt.f32.partialorder %v2117_v34, 20.0  ;;  %v2118_v24 = vmul.f32 %v8471_v54, %v10372_v10  ;;  %v8476_v59 = vpop.f32.mrb[31].mxu0  ;;  %v2201_v21 = vadd.f32 %v2200_v38, %v2199_v22  ;;  %v2204_v44 = vsel %vm560_vm1, %v2178_v52, 0.0 }
 0x794   : > { %10386 = vst [vmem:[#allocation7_spill] sm:$0xff] %v8476_v59  ;;  %vm2131_vm15 = vcmp.lt.f32.partialorder %v2115_v26, 20.0  ;;  %v2116_v11 = vmul.f32 %v10368_v43, %v8476_v59  ;;  %2396 = vadd.xlane.f32.xlu1 %v2194_v8  ;;  %v5450_v27 = vsel %vm2133_vm14, 1.0, %v10286_v53  ;;  %v2494_v52 = vsel %vm560_vm1, %v8418_v36, 0.0 }
 0x795   : > { %vm2134_vm2 = vcmp.lt.f32.partialorder %v2118_v24, 20.0  ;;  %2398 = vadd.xlane.f32.xlu0 %v2196_v32  ;;  %v2203_v35 = vadd.f32 %v2202_v13, %v2201_v21  ;;  %v5448_v54 = vsel %vm2131_vm15, 1.0, %v10286_v53  ;;  %v2181_v20 = vmul.f32 %v5450_v27, %v10373_v47 }
 0x796   : > { %vm2132_vm3 = vcmp.lt.f32.partialorder %v2116_v11, 20.0  ;;  %v2179_v31 = vmul.f32 %v5448_v54, %v10369_v48  ;;  %v5451_v32 = vsel %vm2134_vm2, 1.0, %v10286_v53  ;;  %v2491_v36 = vsel %vm560_vm1, %v8444_v6, 0.0 }
 0x797   : > { %v5449_v61 = vsel %vm2132_vm3, 1.0, %v10286_v53  ;;  %v2205_v57 = vadd.f32 %v2204_v44, %v2203_v35  ;;  %v2182_v54 = vmul.f32 %v5451_v32, %v10372_v10  ;;  %v2210_v35 = vsel %vm560_vm1, %v2181_v20, 0.0 }
 0x798   : > { %2392 = vadd.xlane.f32.xlu1 %v2190_v56  ;;  %v2180_v8 = vmul.f32 %v5449_v61, %v10368_v43  ;;  %v2206_v22 = vsel %vm560_vm1, %v2179_v31, 0.0  ;;  %v2497_v56 = vsel %vm560_vm1, %v8435_v55, 0.0  ;;  %v2506_v55 = vsel %vm560_vm1, %v2117_v34, 0.0 }
 0x799   : > { %2394 = vadd.xlane.f32.xlu0 %v2192_v15  ;;  %v2207_v21 = vadd.f32 %v2206_v22, %v2205_v57  ;;  %v2488_v15 = vsel %vm560_vm1, %v8427_v3, 0.0  ;;  %v2212_v57 = vsel %vm560_vm1, %v2182_v54, 0.0  ;;  %v2500_v3 = vsel %vm560_vm1, %v2115_v26, 0.0 }
 0x79a   : > { %v2208_v59 = vsel %vm560_vm1, %v2180_v8, 0.0  ;;  %v2509_v8 = vsel %vm560_vm1, %v2118_v24, 0.0  ;;  %v2503_v20 = vsel %vm560_vm1, %v2116_v11, 0.0  ;;  %v8510_v11 = vadd.s32 128, %v7103_v46 }
 0x79b   : > { %v2209_v61 = vadd.f32 %v2208_v59, %v2207_v21 }
 0x79c   : > { %2495 = vadd.xlane.f32.xlu1 %v2494_v52  ;;  %v10387_v52 = vld [vmem:[#allocation49_spill] sm:$0xff] }
 0x79d   : > { %2498 = vadd.xlane.f32.xlu0 %v2497_v56  ;;  %v2211_v27 = vadd.f32 %v2210_v35, %v2209_v61  ;;  %v2658_v54 = vmul.u32 32, %v10387_v52 }
 0x79f   : > { %v2213_v31 = vadd.f32 %v2212_v57, %v2211_v27 }
 0x7a0   : > { %2489 = vadd.xlane.f32.xlu1 %v2488_v15 }
 0x7a1   : > { %2492 = vadd.xlane.f32.xlu0 %v2491_v36  ;;  %v2214_v32 = vrot.slane %v2213_v31, 4 }
 0x7a3   : > { %v2215_v6 = vadd.f32 %v2214_v32, %v2213_v31  ;;  %v10390_v32 = vld [vmem:[#allocation31_spill] sm:$0xff] }
 0x7a4   : > { %2404 = vadd.xlane.f32.xlu1 %v2202_v13 }
 0x7a5   : > { %2406 = vadd.xlane.f32.xlu0 %v2204_v44  ;;  %v2216_v13 = vrot.slane %v2215_v6, 2 }
 0x7a7   : > { %v2217_v44 = vadd.f32 %v2216_v13, %v2215_v6 }
 0x7a8   : > { %2400 = vadd.xlane.f32.xlu1 %v2198_v41 }
 0x7a9   : > { %2402 = vadd.xlane.f32.xlu0 %v2200_v38  ;;  %v2218_v41 = vrot.slane %v2217_v44, 1 }
 0x7ab   : > { %v2219_v38 = vadd.f32 %v2218_v41, %v2217_v44  ;;  %v10392_v44 = vld [vmem:[#allocation32_spill] sm:$0xff] }
 0x7ac   : > { %2507 = vadd.xlane.f32.xlu1 %v2506_v55  ;;  %v10393_v41 = vld [vmem:[#allocation80_spill] sm:$0xff] }
 0x7ad   : > { %2510 = vadd.xlane.f32.xlu0 %v2509_v8 }
 0x7b0   : > { %2501 = vadd.xlane.f32.xlu1 %v2500_v3 }
 0x7b1   : > { %2504 = vadd.xlane.f32.xlu0 %v2503_v20  ;;  %v10391_v20 = vld [vmem:[#allocation79_spill] sm:$0xff] }
 0x7b2   : > { %v1557_v6 = vmul.f32 %v10391_v20, %v10390_v32 }
 0x7b4   : > { %2408 = vadd.xlane.f32.xlu1 %v2206_v22  ;;  %v10388_v22 = vld [vmem:[#allocation45_spill] sm:$0xff] }
 0x7b5   : > { %2410 = vadd.xlane.f32.xlu0 %v2208_v59  ;;  %v2656_v59 = vmul.u32 32, %v10388_v22  ;;  %v10395_v22 = vld [vmem:[#allocation29_spill] sm:$0xff] }
 0x7b9   : > { %2414 = vadd.xlane.f32.xlu0 %v2212_v57 }
 0x7c5   : > { %2221 = vrot.lane.b32.xlu1 %v2219_v38, %s6774_s19  ;;  %v1558_v38 = vmul.f32 %v10393_v41, %v10392_v44 }
 0x7e9   : > { %2412 = vadd.xlane.f32.xlu1 %v2210_v35  ;;  %v10389_v35 = vld [vmem:[#allocation47_spill] sm:$0xff] }
 0x7ea   : > { %v2657_v8 = vmul.u32 32, %v10389_v35 }
 0x809   : > { %v2472_v34 = vpop.xlane.xlu1 %2471 }
 0x80a   : > { %v6426_v24 = vtrunc.f32 %v2472_v34  ;;  %v2466_v21 = vpop.xlane.xlu0 %2465 }
 0x80b   : > { %v6422_v26 = vtrunc.f32 %v2466_v21 }
 0x80c   : > { %v6427_v56 = vcvt.f32.s32 %v6426_v24  ;;  %v10394_v24 = vld [vmem:[#allocation50_spill] sm:$0xff] }
 0x80d   : > { %v6423_v61 = vcvt.f32.s32 %v6422_v26  ;;  %v2469_v27 = vpop.xlane.xlu1 %2468  ;;  %v2659_v21 = vmul.u32 32, %v10394_v24 }
 0x80e   : > { %v2690_v15 = vadd.s32 %v6427_v56, %v2658_v54  ;;  %v6424_v57 = vtrunc.f32 %v2469_v27  ;;  %v2475_v36 = vpop.xlane.xlu0 %2474  ;;  %v10397_v27 = vld [vmem:[#allocation30_spill] sm:$0xff] }
 0x80f   : > { %v2688_v31 = vadd.s32 %v6423_v61, %v2656_v59  ;;  %v6428_v55 = vtrunc.f32 %v2475_v36  ;;  %v10396_v59 = vld [vmem:[#allocation77_spill] sm:$0xff] }
 0x810   : > { %v6425_v3 = vcvt.f32.s32 %v6424_v57  ;;  %vm2764_vm4 = vcmp.eq.s32.totalorder %v7103_v46, %v2690_v15  ;;  %vm3110_vm5 = vcmp.eq.s32.totalorder %v8510_v11, %v2690_v15  ;;  %v1555_v61 = vmul.f32 %v10396_v59, %v10395_v22  ;;  %v10398_v15 = vld [vmem:[#allocation78_spill] sm:$0xff] }
 0x811   : > { %v8518_v13 = vpop.xlane.xlu1 %2388  ;;  %vm2762_vm6 = vcmp.eq.s32.totalorder %v7103_v46, %v2688_v31  ;;  %v6429_v26 = vcvt.f32.s32 %v6428_v55  ;;  %v1556_v57 = vmul.f32 %v10398_v15, %v10397_v27  ;;  %v8530_v36 = vsel %vm2764_vm4, 1.0, %v10286_v53 }
 0x812   : > { %v2689_v34 = vadd.s32 %v6425_v3, %v2657_v8  ;;  %v2391_v52 = vpop.xlane.xlu0 %2390  ;;  %v2626_v54 = vmul.f32 %v8518_v13, %v1557_v6  ;;  %v8533_v35 = vsel %vm3110_vm5, 1.0, %v10286_v53  ;;  %vm3108_vm7 = vcmp.eq.s32.totalorder %v8510_v11, %v2688_v31 }
 0x813   : > { %v2627_v56 = vmul.f32 %v2391_v52, %v1558_v38  ;;  %v2691_v8 = vadd.s32 %v6429_v26, %v2659_v21  ;;  %v8537_v55 = vsel %vm2762_vm6, 1.0, %v10286_v53  ;;  %v8555_v44 = vsel %vm3108_vm7, 1.0, %v10286_v53 }
 0x814   : > { %10399 = vst [vmem:[#allocation8_spill] sm:$0xff] %v8537_v55  ;;  %vm2763_vm8 = vcmp.eq.s32.totalorder %v7103_v46, %v2689_v34  ;;  %v8543_v32 = vmul.f32 %v8533_v35, %v2626_v54  ;;  %v8546_v20 = vmul.f32 %v8530_v36, %v2626_v54  ;;  %vm3109_vm9 = vcmp.eq.s32.totalorder %v8510_v11, %v2689_v34 }
 0x815   : > { %v8540_v3 = vpop.xlane.xlu1 %2384  ;;  %vm2765_vm10 = vcmp.eq.s32.totalorder %v7103_v46, %v2691_v8  ;;  %vm3111_vm11 = vcmp.eq.s32.totalorder %v8510_v11, %v2691_v8  ;;  %10404 = vst [vmem:[#allocation49_spill] sm:$0xff] %v8555_v44  ;;  %v8571_v59 = vsel %vm2763_vm8, 1.0, %v10286_v53 }
 0x816   : > { %10400 = vst [vmem:[#allocation9_spill] sm:$0xff] %v8540_v3  ;;  %10401 = vst [vmem:[#allocation10_spill] sm:$0xff] %v8543_v32  ;;  %v2624_v31 = vmul.f32 %v8540_v3, %v1555_v61  ;;  %v8552_v6 = vpop.xlane.xlu0 %2386  ;;  %v5471_v41 = vsel %vm2765_vm10, 1.0, %v10286_v53  ;;  %v5503_v38 = vsel %vm3111_vm11, 1.0, %v10286_v53  ;;  %v8574_v61 = vsel %vm3109_vm9, 1.0, %v10286_v53 }
 0x817   : > { %10402 = vst [vmem:[#allocation11_spill] sm:$0xff] %v8546_v20  ;;  %10403 = vst [vmem:[#allocation12_spill] sm:$0xff] %v8552_v6  ;;  %v2625_v24 = vmul.f32 %v8552_v6, %v1556_v57  ;;  %v8560_v21 = vmul.f32 %v5471_v41, %v2627_v56  ;;  %v8562_v26 = vmul.f32 %v5471_v41, %v2391_v52  ;;  %v10415_v20 = vld [vmem:[#allocation56_spill] sm:$0xff] }
 0x818   : > { %v8564_v54 = vmul.f32 %v5503_v38, %v2627_v56  ;;  %v8566_v22 = vmul.f32 %v5503_v38, %v2391_v52  ;;  %10409 = vst [vmem:[#allocation32_spill] sm:$0xff] %v8574_v61  ;;  %v8577_v27 = vmul.f32 %v8537_v55, %v2624_v31  ;;  %v8580_v57 = vmul.f32 %v8555_v44, %v2624_v31  ;;  %v10414_v38 = vld [vmem:[#allocation55_spill] sm:$0xff]  ;;  %v10416_v44 = vld [vmem:[#allocation52_spill] sm:$0xff] }
 0x819   : > { %10405 = vst [vmem:[#allocation45_spill] sm:$0xff] %v8560_v21  ;;  %10406 = vst [vmem:[#allocation47_spill] sm:$0xff] %v8562_v26  ;;  %v2484_v15 = vpop.xlane.xlu1 %2483  ;;  %v8583_v52 = vmul.f32 %v8574_v61, %v2625_v24  ;;  %v8586_v41 = vmul.f32 %v8571_v59, %v2625_v24  ;;  %v2662_v21 = vmul.u32 32, %v10414_v38  ;;  %v2663_v32 = vmul.u32 32, %v10415_v20 }
 0x81a   : > { %10407 = vst [vmem:[#allocation31_spill] sm:$0xff] %v8564_v54  ;;  %10408 = vst [vmem:[#allocation79_spill] sm:$0xff] %v8566_v22  ;;  %v6434_v8 = vtrunc.f32 %v2484_v15  ;;  %v2487_v56 = vpop.xlane.xlu0 %2486  ;;  %v2660_v55 = vmul.u32 32, %v10416_v44 }
 0x81b   : > { %10410 = vst [vmem:[#allocation80_spill] sm:$0xff] %v8577_v27  ;;  %10411 = vst [vmem:[#allocation50_spill] sm:$0xff] %v8580_v57  ;;  %v6436_v34 = vtrunc.f32 %v2487_v56 }
 0x81c   : > { %10412 = vst [vmem:[#allocation29_spill] sm:$0xff] %v8583_v52  ;;  %10413 = vst [vmem:[#allocation77_spill] sm:$0xff] %v8586_v41  ;;  %v6435_v54 = vcvt.f32.s32 %v6434_v8  ;;  %v10417_v52 = vld [vmem:[#allocation54_spill] sm:$0xff]  ;;  %v10418_v41 = vld [vmem:[#allocation35_spill] sm:$0xff] }
 0x81d   : > { %v6437_v22 = vcvt.f32.s32 %v6436_v34  ;;  %v2478_v27 = vpop.xlane.xlu1 %2477  ;;  %v2661_v3 = vmul.u32 32, %v10417_v52  ;;  %v1561_v56 = vmul.f32 %v7846_v30, %v10418_v41  ;;  %v10419_v8 = vld [vmem:[#allocation36_spill] sm:$0xff] }
 0x81e   : > { %v2694_v26 = vadd.s32 %v6435_v54, %v2662_v21  ;;  %v6430_v6 = vtrunc.f32 %v2478_v27  ;;  %v2481_v31 = vpop.xlane.xlu0 %2480  ;;  %v10420_v21 = vld [vmem:[#allocation89_spill] sm:$0xff] }
 0x81f   : > { %v2695_v57 = vadd.s32 %v6437_v22, %v2663_v32  ;;  %v6432_v15 = vtrunc.f32 %v2481_v31  ;;  %v1562_v54 = vmul.f32 %v10420_v21, %v10419_v8  ;;  %v10422_v32 = vld [vmem:[#allocation33_spill] sm:$0xff] }
 0x820   : > { %v6431_v61 = vcvt.f32.s32 %v6430_v6  ;;  %vm2768_vm12 = vcmp.eq.s32.totalorder %v7103_v46, %v2694_v26  ;;  %v10423_v22 = vld [vmem:[#allocation85_spill] sm:$0xff]  ;;  %vm3114_vm13 = vcmp.eq.s32.totalorder %v8510_v11, %v2694_v26  ;;  %v10424_v6 = vld [vmem:[#allocation34_spill] sm:$0xff] }
 0x821   : > { %v6433_v24 = vcvt.f32.s32 %v6432_v15  ;;  %v8594_v38 = vpop.xlane.xlu1 %2396  ;;  %v1559_v44 = vmul.f32 %v10423_v22, %v10422_v32  ;;  %vm2769_vm14 = vcmp.eq.s32.totalorder %v7103_v46, %v2695_v57  ;;  %vm3115_vm15 = vcmp.eq.s32.totalorder %v8510_v11, %v2695_v57 }
 0x822   : > { %v2692_v20 = vadd.s32 %v6431_v61, %v2660_v55  ;;  %v8599_v27 = vpop.xlane.xlu0 %2398  ;;  %v2630_v55 = vmul.f32 %v8594_v38, %v1561_v56  ;;  %v10425_v61 = vld [vmem:[#allocation86_spill] sm:$0xff]  ;;  %v8614_v26 = vsel %vm2768_vm12, 1.0, %v10286_v53  ;;  %v8623_v34 = vsel %vm2769_vm14, 1.0, %v10286_v53 }
 0x823   : > { %10421 = vst [vmem:[#allocation30_spill] sm:$0xff] %v8599_v27  ;;  %v2693_v30 = vadd.s32 %v6433_v24, %v2661_v3  ;;  %v1560_v52 = vmul.f32 %v10425_v61, %v10424_v6  ;;  %v2631_v41 = vmul.f32 %v8599_v27, %v1562_v54  ;;  %v8620_v3 = vsel %vm3114_vm13, 1.0, %v10286_v53 }
 0x824   : > { %vm2766_vm2 = vcmp.eq.s32.totalorder %v7103_v46, %v2692_v20  ;;  %vm3112_vm3 = vcmp.eq.s32.totalorder %v8510_v11, %v2692_v20  ;;  %10427 = vst [vmem:[#allocation55_spill] sm:$0xff] %v8620_v3  ;;  %v8626_v31 = vsel %vm3115_vm15, 1.0, %v10286_v53 }
 0x825   : > { %vm2767_vm4 = vcmp.eq.s32.totalorder %v7103_v46, %v2693_v30  ;;  %vm3113_vm5 = vcmp.eq.s32.totalorder %v8510_v11, %v2693_v30  ;;  %v8617_v57 = vpop.xlane.xlu1 %2392  ;;  %10428 = vst [vmem:[#allocation56_spill] sm:$0xff] %v8626_v31  ;;  %v8632_v56 = vsel %vm2766_vm2, 1.0, %v10286_v53  ;;  %v8635_v20 = vsel %vm3112_vm3, 1.0, %v10286_v53 }
 0x826   : > { %10426 = vst [vmem:[#allocation78_spill] sm:$0xff] %v8617_v57  ;;  %v2628_v15 = vmul.f32 %v8617_v57, %v1559_v44  ;;  %v8629_v24 = vpop.xlane.xlu0 %2394  ;;  %10430 = vst [vmem:[#allocation54_spill] sm:$0xff] %v8632_v56  ;;  %v8638_v8 = vsel %vm2767_vm4, 1.0, %v10286_v53  ;;  %v8642_v54 = vsel %vm3113_vm5, 1.0, %v10286_v53  ;;  %v8651_v44 = vmul.f32 %v8620_v3, %v2630_v55 }
 0x827   : > { %10429 = vst [vmem:[#allocation52_spill] sm:$0xff] %v8629_v24  ;;  %10431 = vst [vmem:[#allocation35_spill] sm:$0xff] %v8635_v20  ;;  %v2629_v21 = vmul.f32 %v8629_v24, %v1560_v52  ;;  %v8660_v52 = vmul.f32 %v8614_v26, %v2630_v55  ;;  %v8663_v24 = vmul.f32 %v8626_v31, %v2631_v41  ;;  %v10444_v31 = vld [vmem:[#allocation58_spill] sm:$0xff] }
 0x828   : > { %10432 = vst [vmem:[#allocation36_spill] sm:$0xff] %v8638_v8  ;;  %10433 = vst [vmem:[#allocation89_spill] sm:$0xff] %v8642_v54  ;;  %v8645_v32 = vmul.f32 %v8635_v20, %v2628_v15  ;;  %v8648_v22 = vmul.f32 %v8632_v56, %v2628_v15  ;;  %v8666_v15 = vmul.f32 %v8623_v34, %v2631_v41  ;;  %v10445_v41 = vld [vmem:[#allocation61_spill] sm:$0xff] }
 0x829   : > { %10436 = vst [vmem:[#allocation34_spill] sm:$0xff] %v8651_v44  ;;  %v2496_v30 = vpop.xlane.xlu1 %2495  ;;  %v8654_v6 = vmul.f32 %v8642_v54, %v2629_v21  ;;  %v8657_v61 = vmul.f32 %v8638_v8, %v2629_v21  ;;  %10439 = vst [vmem:[#allocation136_spill] sm:$0xff] %v8660_v52  ;;  %v10442_v44 = vld [vmem:[#allocation63_spill] sm:$0xff]  ;;  %v10443_v54 = vld [vmem:[#allocation64_spill] sm:$0xff] }
 0x82a   : > { %10434 = vst [vmem:[#allocation33_spill] sm:$0xff] %v8645_v32  ;;  %10435 = vst [vmem:[#allocation85_spill] sm:$0xff] %v8648_v22  ;;  %v6442_v32 = vtrunc.f32 %v2496_v30  ;;  %v2499_v20 = vpop.xlane.xlu0 %2498  ;;  %v2666_v56 = vmul.u32 32, %v10442_v44  ;;  %v10448_v44 = vld [vmem:[#allocation92_spill] sm:$0xff] }
 0x82b   : > { %10437 = vst [vmem:[#allocation86_spill] sm:$0xff] %v8654_v6  ;;  %10438 = vst [vmem:[#allocation135_spill] sm:$0xff] %v8657_v61  ;;  %v6444_v22 = vtrunc.f32 %v2499_v20  ;;  %v2667_v6 = vmul.u32 32, %v10443_v54  ;;  %v1565_v54 = vmul.f32 %v7990_v17, %v10315_v58 }
 0x82c   : > { %10440 = vst [vmem:[#allocation137_spill] sm:$0xff] %v8663_v24  ;;  %10441 = vst [vmem:[#allocation138_spill] sm:$0xff] %v8666_v15  ;;  %v6443_v57 = vcvt.f32.s32 %v6442_v32  ;;  %v2664_v24 = vmul.u32 32, %v10444_v31  ;;  %v2665_v15 = vmul.u32 32, %v10445_v41  ;;  %v10446_v31 = vld [vmem:[#allocation37_spill] sm:$0xff] }
 0x82d   : > { %v6445_v27 = vcvt.f32.s32 %v6444_v22  ;;  %v2490_v21 = vpop.xlane.xlu1 %2489  ;;  %v1563_v22 = vmul.f32 %v7891_v18, %v10446_v31 }
 0x82e   : > { %v2698_v61 = vadd.s32 %v6443_v57, %v2666_v56  ;;  %v6438_v8 = vtrunc.f32 %v2490_v21  ;;  %v2493_v55 = vpop.xlane.xlu0 %2492 }
 0x82f   : > { %v2699_v52 = vadd.s32 %v6445_v27, %v2667_v6  ;;  %v6440_v3 = vtrunc.f32 %v2493_v55  ;;  %v1566_v27 = vmul.f32 %v7992_v50, %v10316_v19 }
 0x830   : > { %vm2772_vm6 = vcmp.eq.s32.totalorder %v7103_v46, %v2698_v61  ;;  %v6439_v30 = vcvt.f32.s32 %v6438_v8  ;;  %vm3118_vm7 = vcmp.eq.s32.totalorder %v8510_v11, %v2698_v61  ;;  %v10447_v8 = vld [vmem:[#allocation38_spill] sm:$0xff] }
 0x831   : > { %v6441_v20 = vcvt.f32.s32 %v6440_v3  ;;  %v8676_v32 = vpop.xlane.xlu1 %2404  ;;  %v1564_v6 = vmul.f32 %v10448_v44, %v10447_v8  ;;  %vm2773_vm8 = vcmp.eq.s32.totalorder %v7103_v46, %v2699_v52  ;;  %vm3119_vm9 = vcmp.eq.s32.totalorder %v8510_v11, %v2699_v52 }
 0x832   : > { %v2696_v57 = vadd.s32 %v6439_v30, %v2664_v24  ;;  %v8680_v56 = vpop.xlane.xlu0 %2406  ;;  %v8689_v58 = vsel %vm2772_vm6, 1.0, %v10286_v53  ;;  %v8692_v17 = vsel %vm3118_vm7, 1.0, %v10286_v53  ;;  %v2634_v19 = vmul.f32 %v8676_v32, %v1565_v54 }
 0x833   : > { %v2697_v3 = vadd.s32 %v6441_v20, %v2665_v15  ;;  %v2635_v50 = vmul.f32 %v8680_v56, %v1566_v27  ;;  %v8702_v61 = vsel %vm2773_vm8, 1.0, %v10286_v53  ;;  %v8712_v41 = vsel %vm3119_vm9, 1.0, %v10286_v53 }
 0x834   : > { %vm2770_vm10 = vcmp.eq.s32.totalorder %v7103_v46, %v2696_v57  ;;  %vm3116_vm13 = vcmp.eq.s32.totalorder %v8510_v11, %v2696_v57  ;;  %10451 = vst [vmem:[#allocation58_spill] sm:$0xff] %v8712_v41  ;;  %v8728_v8 = vmul.f32 %v8692_v17, %v2634_v19 }
 0x835   : > { %vm2771_vm11 = vcmp.eq.s32.totalorder %v7103_v46, %v2697_v3  ;;  %vm3117_vm12 = vcmp.eq.s32.totalorder %v8510_v11, %v2697_v3  ;;  %v5476_v18 = vsel %vm2770_vm10, 1.0, %v10286_v53  ;;  %v2401_v24 = vpop.xlane.xlu1 %2400  ;;  %v5508_v15 = vsel %vm3116_vm13, 1.0, %v10286_v53 }
 0x836   : > { %v2632_v21 = vmul.f32 %v2401_v24, %v1563_v22  ;;  %v8705_v55 = vmul.f32 %v5476_v18, %v2401_v24  ;;  %v8707_v30 = vpop.xlane.xlu0 %2402  ;;  %v8714_v20 = vmul.f32 %v5508_v15, %v2401_v24  ;;  %v8717_v54 = vsel %vm2771_vm11, 1.0, %v10286_v53  ;;  %10457 = vst [vmem:[#allocation140_spill] sm:$0xff] %v8728_v8  ;;  %v10463_v8 = vld [vmem:[#allocation71_spill] sm:$0xff] }
 0x837   : > { %10450 = vst [vmem:[#allocation64_spill] sm:$0xff] %v8707_v30  ;;  %10453 = vst [vmem:[#allocation37_spill] sm:$0xff] %v8717_v54  ;;  %v2633_v57 = vmul.f32 %v8707_v30, %v1564_v6  ;;  %v8725_v22 = vsel %vm3117_vm12, 1.0, %v10286_v53  ;;  %v8737_v24 = vmul.f32 %v8689_v58, %v2634_v19  ;;  %v8740_v6 = vmul.f32 %v8712_v41, %v2635_v50 }
 0x838   : > { %10449 = vst [vmem:[#allocation63_spill] sm:$0xff] %v8705_v55  ;;  %10452 = vst [vmem:[#allocation61_spill] sm:$0xff] %v8714_v20  ;;  %v8720_v27 = vmul.f32 %v5476_v18, %v2632_v21  ;;  %v8722_v31 = vmul.f32 %v5508_v15, %v2632_v21  ;;  %v8743_v21 = vmul.f32 %v8702_v61, %v2635_v50  ;;  %v10464_v55 = vld [vmem:[#allocation73_spill] sm:$0xff] }
 0x839   : > { %10456 = vst [vmem:[#allocation139_spill] sm:$0xff] %v8725_v22  ;;  %v2508_v52 = vpop.xlane.xlu1 %2507  ;;  %v8731_v44 = vmul.f32 %v8725_v22, %v2633_v57  ;;  %v8734_v3 = vmul.f32 %v8717_v54, %v2633_v57  ;;  %10460 = vst [vmem:[#allocation143_spill] sm:$0xff] %v8737_v24  ;;  %v1567_v50 = vmul.f32 %v8024_v40, %v10319_v9 }
 0x83a   : > { %10454 = vst [vmem:[#allocation38_spill] sm:$0xff] %v8720_v27  ;;  %10455 = vst [vmem:[#allocation92_spill] sm:$0xff] %v8722_v31  ;;  %v6450_v18 = vtrunc.f32 %v2508_v52  ;;  %v2511_v15 = vpop.xlane.xlu0 %2510  ;;  %v2670_v31 = vmul.u32 32, %v10463_v8  ;;  %v10466_v8 = vld [vmem:[#allocation70_spill] sm:$0xff] }
 0x83b   : > { %10458 = vst [vmem:[#allocation141_spill] sm:$0xff] %v8731_v44  ;;  %10459 = vst [vmem:[#allocation142_spill] sm:$0xff] %v8734_v3  ;;  %v6452_v27 = vtrunc.f32 %v2511_v15  ;;  %v2671_v44 = vmul.u32 32, %v10464_v55 }
 0x83c   : > { %10461 = vst [vmem:[#allocation144_spill] sm:$0xff] %v8740_v6  ;;  %10462 = vst [vmem:[#allocation145_spill] sm:$0xff] %v8743_v21  ;;  %v6451_v20 = vcvt.f32.s32 %v6450_v18  ;;  %v10465_v6 = vld [vmem:[#allocation65_spill] sm:$0xff]  ;;  %v2669_v18 = vmul.u32 32, %v10466_v8 }
 0x83d   : > { %v6453_v22 = vcvt.f32.s32 %v6452_v27  ;;  %v2502_v57 = vpop.xlane.xlu1 %2501  ;;  %v2668_v52 = vmul.u32 32, %v10465_v6 }
 0x83e   : > { %v8747_v3 = vadd.s32 %v6451_v20, %v2670_v31  ;;  %v6446_v19 = vtrunc.f32 %v2502_v57  ;;  %v2505_v24 = vpop.xlane.xlu0 %2504  ;;  %v1568_v20 = vmul.f32 %v8028_v51, %v10320_v62 }
 0x83f   : > { %v2703_v54 = vadd.s32 %v6453_v22, %v2671_v44  ;;  %v6448_v30 = vtrunc.f32 %v2505_v24  ;;  %v1570_v24 = vmul.f32 %v8042_v14, %v10322_v5 }
 0x840   : > { %v6447_v41 = vcvt.f32.s32 %v6446_v19 }
 0x841   : > { %vm2777_vm14 = vcmp.eq.s32.totalorder %v7103_v46, %v2703_v54  ;;  %v6449_v15 = vcvt.f32.s32 %v6448_v30  ;;  %v2409_v55 = vpop.xlane.xlu1 %2408  ;;  %vm3123_vm15 = vcmp.eq.s32.totalorder %v8510_v11, %v2703_v54 }
 0x842   : > { %v2700_v27 = vadd.s32 %v6447_v41, %v2668_v52  ;;  %v2636_v31 = vmul.f32 %v2409_v55, %v1567_v50  ;;  %v2411_v57 = vpop.xlane.xlu0 %2410  ;;  %v8762_v9 = vsel %vm2777_vm14, 1.0, %v10286_v53  ;;  %v8783_v50 = vsel %vm3123_vm15, 1.0, %v10286_v53 }
 0x843   : > { %v2701_v22 = vadd.s32 %v6449_v15, %v2669_v18  ;;  %v2637_v44 = vmul.f32 %v2411_v57, %v1568_v20 }
 0x844   : > { %vm2774_vm2 = vcmp.eq.s32.totalorder %v7103_v46, %v2700_v27  ;;  %vm3120_vm3 = vcmp.eq.s32.totalorder %v8510_v11, %v2700_v27 }
 0x845   : > { %vm2775_vm4 = vcmp.eq.s32.totalorder %v7103_v46, %v2701_v22  ;;  %vm3121_vm5 = vcmp.eq.s32.totalorder %v8510_v11, %v2701_v22  ;;  %v5480_v62 = vsel %vm2774_vm2, 1.0, %v10286_v53  ;;  %v5512_v40 = vsel %vm3120_vm3, 1.0, %v10286_v53  ;;  %v2222_v41 = vpop.permute.xlu1 %2221 }
 0x846   : > { %v8768_v51 = vmul.f32 %v5480_v62, %v2636_v31  ;;  %v8770_v5 = vmul.f32 %v5480_v62, %v2409_v55  ;;  %v8772_v14 = vmul.f32 %v5512_v40, %v2636_v31  ;;  %v8774_v30 = vmul.f32 %v5512_v40, %v2409_v55  ;;  %v8776_v6 = vpop.xlane.xlu0 %2414 }
 0x847   : > { %v5481_v19 = vsel %vm2775_vm4, 1.0, %v10286_v53  ;;  %v5513_v52 = vsel %vm3121_vm5, 1.0, %v10286_v53  ;;  %v2639_v8 = vmul.f32 %v8776_v6, %v1570_v24  ;;  %v2225_v54 = vadd.f32 %v2222_v41, %v8373_v23 }
 0x848   : > { %10467 = vst [vmem:[#allocation71_spill] sm:$0xff] %v8768_v51  ;;  %10468 = vst [vmem:[#allocation73_spill] sm:$0xff] %v8770_v5  ;;  %v8786_v18 = vmul.f32 %v5481_v19, %v2637_v44  ;;  %v8788_v15 = vmul.f32 %v5481_v19, %v2411_v57  ;;  %v8790_v55 = vmul.f32 %v5513_v52, %v2637_v44  ;;  %v10578_v5 = vld [vmem:[#allocation82_spill] sm:$0xff] }
 0x849   : > { %10469 = vst [vmem:[#allocation65_spill] sm:$0xff] %v8772_v14  ;;  %10470 = vst [vmem:[#allocation70_spill] sm:$0xff] %v8774_v30  ;;  %v8792_v20 = vmul.f32 %v5513_v52, %v2411_v57  ;;  %v8795_v27 = vmul.f32 %v8762_v9, %v2639_v8  ;;  %v8798_v31 = vmul.f32 %v8783_v50, %v2639_v8 }
 0x84a   : > { %10471 = vst [vmem:[#allocation146_spill] sm:$0xff] %v8786_v18  ;;  %10472 = vst [vmem:[#allocation147_spill] sm:$0xff] %v8788_v15  ;;  %v2224_v22 = vadd.f32 %v2222_v41, %v8365_v7  ;;  %v2227_v24 = vadd.f32 %v8369_v49, %v2222_v41  ;;  %v2226_v62 = vadd.f32 %v8361_v29, %v2222_v41  ;;  %v10488_v18 = vld [vmem:[#allocation72_spill] sm:$0xff] }
 0x84b   : > { %10473 = vst [vmem:[#allocation148_spill] sm:$0xff] %v8790_v55  ;;  %10474 = vst [vmem:[#allocation149_spill] sm:$0xff] %v8792_v20  ;;  %v2229_v40 = vadd.f32 %v2222_v41, %v8403_v60  ;;  %v2241_v44 = vmul.f32 %v2225_v54, %v8244_v25  ;;  %v2228_v57 = vadd.f32 %v2222_v41, %v8393_v63  ;;  %v10479_v54 = vld [vmem:[#allocation129_spill] sm:$0xff]  ;;  %v10550_v55 = vld [vmem:[#allocation52_spill] sm:$0xff] }
 0x84c   : > { %10475 = vst [vmem:[#allocation150_spill] sm:$0xff] %v8795_v27  ;;  %10476 = vst [vmem:[#allocation151_spill] sm:$0xff] %v8798_v31  ;;  %v2230_v19 = vadd.f32 %v8386_v37, %v2222_v41  ;;  %v2231_v52 = vadd.f32 %v8397_v39, %v2222_v41  ;;  %v2240_v8 = vmul.f32 %v2224_v22, %v8248_v4  ;;  %v10485_v27 = vld [vmem:[#allocation131_spill] sm:$0xff]  ;;  %v10486_v31 = vld [vmem:[#allocation133_spill] sm:$0xff] }
 0x84d   : > { %v2243_v23 = vmul.f32 %v2227_v24, %v8246_v33  ;;  %v2242_v7 = vmul.f32 %v2226_v62, %v8258_v16  ;;  %v2245_v49 = vmul.f32 %v2229_v40, %v8256_v28  ;;  %2530 = vrot.lane.b32.xlu1 %v2241_v44, %s6775_s16  ;;  %v2244_v29 = vmul.f32 %v2228_v57, %v8266_v2  ;;  %v10477_v16 = vld [vmem:[#allocation76_spill] sm:$0xff]  ;;  %v10478_v28 = vld [vmem:[#allocation7_spill] sm:$0xff]  ;;  %v10480_v24 = vld [vmem:[#allocation5_spill] sm:$0xff] }
 0x84e   : > { %v2246_v25 = vmul.f32 %v2230_v19, %v8276_v45  ;;  %v2247_v63 = vmul.f32 %v2231_v52, %v8274_v12  ;;  %v2233_v37 = vadd.f32 %v2222_v41, %v8437_v1  ;;  %2528 = vrot.lane.b32.xlu0 %v2240_v8, %s6775_s16  ;;  %v2232_v4 = vadd.f32 %v2222_v41, %v8420_v0  ;;  %v10481_v62 = vld [vmem:[#allocation75_spill] sm:$0xff]  ;;  %v10482_v40 = vld [vmem:[#allocation6_spill] sm:$0xff]  ;;  %v10484_v19 = vld [vmem:[#allocation132_spill] sm:$0xff] }
 0x84f   : > { %v2234_v33 = vadd.f32 %v8412_v42, %v2222_v41  ;;  %v2235_v39 = vadd.f32 %v10477_v16, %v2222_v41  ;;  %v2237_v60 = vadd.f32 %v2222_v41, %v10478_v28  ;;  %v2236_v2 = vadd.f32 %v2222_v41, %v10480_v24  ;;  %v10483_v57 = vld [vmem:[#allocation130_spill] sm:$0xff] }
 0x850   : > { %v2249_v22 = vmul.f32 %v2233_v37, %v10479_v54  ;;  %v2238_v45 = vadd.f32 %v10481_v62, %v2222_v41  ;;  %v2239_v12 = vadd.f32 %v10482_v40, %v2222_v41  ;;  %v2248_v1 = vmul.f32 %v2232_v4, %v10483_v57  ;;  %v10487_v16 = vld [vmem:[#allocation134_spill] sm:$0xff] }
 0x851   : > { %v2250_v52 = vmul.f32 %v2234_v33, %v10484_v19  ;;  %v2251_v0 = vmul.f32 %v2235_v39, %v10485_v27  ;;  %v2253_v42 = vmul.f32 %v2237_v60, %v10486_v31  ;;  %2534 = vrot.lane.b32.xlu1 %v2243_v23, %s6775_s16  ;;  %v2252_v28 = vmul.f32 %v2236_v2, %v10487_v16  ;;  %v10489_v54 = vld [vmem:[#allocation74_spill] sm:$0xff] }
 0x852   : > { %v2254_v37 = vmul.f32 %v2238_v45, %v10488_v18  ;;  %v2255_v24 = vmul.f32 %v2239_v12, %v10489_v54  ;;  %vm2258_vm6 = vcmp.lt.f32.partialorder %v2242_v7, 20.0  ;;  %2532 = vrot.lane.b32.xlu0 %v2242_v7, %s6775_s16  ;;  %vm2259_vm7 = vcmp.lt.f32.partialorder %v2243_v23, 20.0 }
 0x853   : > { %v5454_v41 = vsel %vm2258_vm6, 1.0, %v10286_v53  ;;  %vm2256_vm8 = vcmp.lt.f32.partialorder %v2240_v8, 20.0  ;;  %vm2257_vm9 = vcmp.lt.f32.partialorder %v2241_v44, 20.0  ;;  %v5455_v27 = vsel %vm2259_vm7, 1.0, %v10286_v53 }
 0x854   : > { %v5452_v31 = vsel %vm2256_vm8, 1.0, %v10286_v53  ;;  %v5453_v4 = vsel %vm2257_vm9, 1.0, %v10286_v53  ;;  %vm2262_vm10 = vcmp.lt.f32.partialorder %v2246_v25, 20.0  ;;  %v6545_v33 = vpack.i.bf16 %v5455_v27, %v5454_v41 }
 0x855   : > { %v6540_v39 = vpack.i.bf16 %v5453_v4, %v5452_v31  ;;  %vm2263_vm11 = vcmp.lt.f32.partialorder %v2247_v63, 20.0  ;;  %v5458_v18 = vsel %vm2262_vm10, 1.0, %v10286_v53  ;;  %2538 = vrot.lane.b32.xlu1 %v2245_v49, %s6775_s16  ;;  %vm2260_vm12 = vcmp.lt.f32.partialorder %v2244_v29, 20.0 }
 0x856   : > { %v5459_v23 = vsel %vm2263_vm11, 1.0, %v10286_v53  ;;  %vm2261_vm13 = vcmp.lt.f32.partialorder %v2245_v49, 20.0  ;;  %vm2266_vm14 = vcmp.lt.f32.partialorder %v2250_v52, 20.0  ;;  %2536 = vrot.lane.b32.xlu0 %v2244_v29, %s6775_s16  ;;  %v5456_v8 = vsel %vm2260_vm12, 1.0, %v10286_v53 }
 0x857   : > { %v6555_v44 = vpack.i.bf16 %v5459_v23, %v5458_v18  ;;  %v5457_v7 = vsel %vm2261_vm13, 1.0, %v10286_v53  ;;  %vm2267_vm15 = vcmp.lt.f32.partialorder %v2251_v0, 20.0  ;;  %v5462_v2 = vsel %vm2266_vm14, 1.0, %v10286_v53 }
 0x858   : > { %v6550_v60 = vpack.i.bf16 %v5457_v7, %v5456_v8  ;;  %v5463_v62 = vsel %vm2267_vm15, 1.0, %v10286_v53  ;;  %vm2264_vm2 = vcmp.lt.f32.partialorder %v2248_v1, 20.0  ;;  %vm2265_vm3 = vcmp.lt.f32.partialorder %v2249_v22, 20.0 }
 0x859   : > { %v6565_v45 = vpack.i.bf16 %v5463_v62, %v5462_v2  ;;  %v5460_v40 = vsel %vm2264_vm2, 1.0, %v10286_v53  ;;  %vm2270_vm4 = vcmp.lt.f32.partialorder %v2254_v37, 20.0  ;;  %2540 = vrot.lane.b32.xlu1 %v2246_v25, %s6775_s16  ;;  %v5461_v49 = vsel %vm2265_vm3, 1.0, %v10286_v53  ;;  %v10490_v25 = vld [vmem:[#allocation43_spill] sm:$0xff] }
 0x85a   : > { %vm2271_vm5 = vcmp.lt.f32.partialorder %v2255_v24, 20.0  ;;  %v5466_v29 = vsel %vm2270_vm4, 1.0, %v10286_v53  ;;  %vm2268_vm6 = vcmp.lt.f32.partialorder %v2252_v28, 20.0  ;;  %2542 = vrot.lane.b32.xlu0 %v2247_v63, %s6775_s16  ;;  %v6560_v12 = vpack.i.bf16 %v5461_v49, %v5460_v40  ;;  %v10491_v63 = vld [vmem:[#allocation41_spill] sm:$0xff] }
 0x85b   : > { %v5467_v57 = vsel %vm2271_vm5, 1.0, %v10286_v53  ;;  %vm2269_vm7 = vcmp.lt.f32.partialorder %v2253_v42, 20.0  ;;  %v5464_v19 = vsel %vm2268_vm6, 1.0, %v10286_v53  ;;  %vm2776_vm8 = vcmp.eq.s32.totalorder %v7103_v46, %v8747_v3 }
 0x85c   : > { %v6575_v16 = vpack.i.bf16 %v5467_v57, %v5466_v29  ;;  %v5465_v54 = vsel %vm2269_vm7, 1.0, %v10286_v53  ;;  %vm3122_vm9 = vcmp.eq.s32.totalorder %v8510_v11, %v8747_v3  ;;  %v9053_v14 = vmul.f32 %v8692_v17, %v8676_v32 }
 0x85d   : > { %v6570_v41 = vpack.i.bf16 %v5465_v54, %v5464_v19  ;;  %2546 = vrot.lane.b32.xlu1 %v2249_v22, %s6775_s16  ;;  %v1569_v22 = vmul.f32 %v10491_v63, %v10490_v25 }
 0x85e   : > { %2544 = vrot.lane.b32.xlu0 %v2248_v1, %s6775_s16  ;;  %10554 = vst [vmem:[#allocation75_spill] sm:$0xff] %v9053_v14 }
 0x861   : > { %2548 = vrot.lane.b32.xlu1 %v2250_v52, %s6775_s16 }
 0x862   : > { %2550 = vrot.lane.b32.xlu0 %v2251_v0, %s6775_s16  ;;  %v8880_v0 = vsel %vm2776_vm8, 1.0, %v10286_v53 }
 0x865   : > { %2554 = vrot.lane.b32.xlu1 %v2253_v42, %s6775_s16  ;;  %v8883_v42 = vsel %vm3122_vm9, 1.0, %v10286_v53 }
 0x866   : > { %2552 = vrot.lane.b32.xlu0 %v2252_v28, %s6775_s16 }
 0x869   : > { %2556 = vrot.lane.b32.xlu1 %v2254_v37, %s6775_s16 }
 0x86a   : > { %2558 = vrot.lane.b32.xlu0 %v2255_v24, %s6775_s16 }
 0x86d   : > { %6546 = vrot.lane.b32.xlu1 %v6545_v33, %s6775_s16 }
 0x86e   : > { %6541 = vrot.lane.b32.xlu0 %v6540_v39, %s6775_s16 }
 0x871   : > { %6556 = vrot.lane.b32.xlu1 %v6555_v44, %s6775_s16 }
 0x872   : > { %6551 = vrot.lane.b32.xlu0 %v6550_v60, %s6775_s16 }
 0x875   : > { %6566 = vrot.lane.b32.xlu1 %v6565_v45, %s6775_s16 }
 0x876   : > { %6561 = vrot.lane.b32.xlu0 %v6560_v12, %s6775_s16  ;;  %v8876_v1 = vpop.xlane.xlu1 %2412 }
 0x877   : > { %v2638_v52 = vmul.f32 %v8876_v1, %v1569_v22 }
 0x879   : > { %6576 = vrot.lane.b32.xlu1 %v6575_v16, %s6775_s16  ;;  %v8887_v3 = vmul.f32 %v8880_v0, %v2638_v52  ;;  %v8890_v28 = vmul.f32 %v8883_v42, %v2638_v52 }
 0x87a   : > { %6571 = vrot.lane.b32.xlu0 %v6570_v41, %s6775_s16 }
 0x87b   : > { %10492 = vst [vmem:[#allocation76_spill] sm:$0xff] %v8887_v3  ;;  %10493 = vst [vmem:[#allocation7_spill] sm:$0xff] %v8890_v28  ;;  %v10548_v3 = vld [vmem:[#allocation54_spill] sm:$0xff] }
 0x8bf   : > { %v2531_v37 = vpop.permute.xlu1 %2530 }
 0x8c0   : > { %v2529_v24 = vpop.permute.xlu0 %2528  ;;  %v2579_v33 = vsel %vm560_vm1, %v2531_v37, 0.0 }
 0x8c1   : > { %v2576_v27 = vsel %vm560_vm1, %v2529_v24, 0.0 }
 0x8c2   : > { %2577 = vadd.xlane.f32.xlu0 %v2576_v27 }
 0x8c3   : > { %v2535_v31 = vpop.permute.xlu1 %2534 }
 0x8c4   : > { %v2533_v4 = vpop.permute.xlu0 %2532  ;;  %v2585_v44 = vsel %vm560_vm1, %v2535_v31, 0.0 }
 0x8c5   : > { %v2582_v39 = vsel %vm560_vm1, %v2533_v4, 0.0 }
 0x8c6   : > { %2583 = vadd.xlane.f32.xlu1 %v2582_v39  ;;  %2580 = vadd.xlane.f32.xlu0 %v2579_v33 }
 0x8c7   : > { %v2539_v18 = vpop.permute.xlu1 %2538 }
 0x8c8   : > { %v2537_v23 = vpop.permute.xlu0 %2536  ;;  %v2591_v62 = vsel %vm560_vm1, %v2539_v18, 0.0 }
 0x8c9   : > { %v2588_v8 = vsel %vm560_vm1, %v2537_v23, 0.0 }
 0x8ca   : > { %2589 = vadd.xlane.f32.xlu1 %v2588_v8  ;;  %2586 = vadd.xlane.f32.xlu0 %v2585_v44  ;;  %v10494_v44 = vld [vmem:[#allocation101_spill] sm:$0xff] }
 0x8cb   : > { %v2541_v7 = vpop.permute.xlu1 %2540 }
 0x8cc   : > { %v2543_v60 = vpop.permute.xlu0 %2542  ;;  %v2594_v2 = vsel %vm560_vm1, %v2541_v7, 0.0  ;;  %v10495_v7 = vld [vmem:[#allocation105_spill] sm:$0xff] }
 0x8cd   : > { %v2597_v49 = vsel %vm560_vm1, %v2543_v60, 0.0 }
 0x8ce   : > { %2592 = vadd.xlane.f32.xlu0 %v2591_v62  ;;  %2595 = vadd.xlane.f32.xlu1 %v2594_v2  ;;  %v10496_v62 = vld [vmem:[#allocation104_spill] sm:$0xff] }
 0x8cf   : > { %v2547_v45 = vpop.permute.xlu1 %2546 }
 0x8d0   : > { %v2545_v40 = vpop.permute.xlu0 %2544  ;;  %v2603_v16 = vsel %vm560_vm1, %v2547_v45, 0.0 }
 0x8d1   : > { %v2600_v29 = vsel %vm560_vm1, %v2545_v40, 0.0  ;;  %v10497_v40 = vld [vmem:[#allocation109_spill] sm:$0xff] }
 0x8d2   : > { %2598 = vadd.xlane.f32.xlu0 %v2597_v49  ;;  %2601 = vadd.xlane.f32.xlu1 %v2600_v29 }
 0x8d3   : > { %v2549_v12 = vpop.permute.xlu1 %2548 }
 0x8d4   : > { %v2551_v57 = vpop.permute.xlu0 %2550  ;;  %v2606_v19 = vsel %vm560_vm1, %v2549_v12, 0.0 }
 0x8d5   : > { %v2609_v25 = vsel %vm560_vm1, %v2551_v57, 0.0 }
 0x8d6   : > { %2604 = vadd.xlane.f32.xlu0 %v2603_v16  ;;  %2607 = vadd.xlane.f32.xlu1 %v2606_v19 }
 0x8d7   : > { %v2555_v54 = vpop.permute.xlu1 %2554 }
 0x8d8   : > { %v2553_v41 = vpop.permute.xlu0 %2552  ;;  %v2615_v24 = vsel %vm560_vm1, %v2555_v54, 0.0 }
 0x8d9   : > { %v2612_v63 = vsel %vm560_vm1, %v2553_v41, 0.0 }
 0x8da   : > { %2610 = vadd.xlane.f32.xlu0 %v2609_v25  ;;  %2613 = vadd.xlane.f32.xlu1 %v2612_v63 }
 0x8db   : > { %v2557_v22 = vpop.permute.xlu1 %2556 }
 0x8dc   : > { %v2559_v52 = vpop.permute.xlu0 %2558  ;;  %v2618_v37 = vsel %vm560_vm1, %v2557_v22, 0.0  ;;  %v10498_v22 = vld [vmem:[#allocation108_spill] sm:$0xff] }
 0x8dd   : > { %v2621_v39 = vsel %vm560_vm1, %v2559_v52, 0.0 }
 0x8de   : > { %2616 = vadd.xlane.f32.xlu0 %v2615_v24  ;;  %2619 = vadd.xlane.f32.xlu1 %v2618_v37  ;;  %v10499_v37 = vld [vmem:[#allocation112_spill] sm:$0xff] }
 0x8df   : > { %v6547_v27 = vpop.permute.xlu1 %6546 }
 0x8e0   : > { %v6542_v31 = vpop.permute.xlu0 %6541  ;;  %v6549_v4 = vunpack.i.h.bf16 %v6547_v27  ;;  %v6548_v33 = vunpack.i.l.bf16 %v6547_v27 }
 0x8e1   : > { %v6544_v18 = vunpack.i.h.bf16 %v6542_v31  ;;  %v6543_v23 = vunpack.i.l.bf16 %v6542_v31  ;;  %v10500_v31 = vld [vmem:[#allocation111_spill] sm:$0xff] }
 0x8e2   : > { %2622 = vadd.xlane.f32.xlu0 %v2621_v39  ;;  %v2371_v45 = vmul.f32 %v6549_v4, %v10496_v62  ;;  %v2370_v49 = vmul.f32 %v6548_v33, %v10497_v40  ;;  %v10501_v33 = vld [vmem:[#allocation114_spill] sm:$0xff]  ;;  %v10502_v40 = vld [vmem:[#allocation113_spill] sm:$0xff] }
 0x8e3   : > { %v2369_v8 = vmul.f32 %v6544_v18, %v10494_v44  ;;  %v2368_v60 = vmul.f32 %v6543_v23, %v10495_v7  ;;  %v6557_v57 = vpop.permute.xlu1 %6556 }
 0x8e4   : > { %v6552_v2 = vpop.permute.xlu0 %6551  ;;  %v6559_v54 = vunpack.i.h.bf16 %v6557_v57  ;;  %v6558_v41 = vunpack.i.l.bf16 %v6557_v57  ;;  %v2425_v25 = vsel %vm560_vm1, %v2371_v45, 0.0  ;;  %v2422_v63 = vsel %vm560_vm1, %v2370_v49, 0.0 }
 0x8e5   : > { %v6554_v29 = vunpack.i.h.bf16 %v6552_v2  ;;  %v6553_v12 = vunpack.i.l.bf16 %v6552_v2  ;;  %v2419_v19 = vsel %vm560_vm1, %v2369_v8, 0.0  ;;  %v2416_v16 = vsel %vm560_vm1, %v2368_v60, 0.0 }
 0x8e6   : > { %2420 = vadd.xlane.f32.xlu0 %v2419_v19  ;;  %2417 = vadd.xlane.f32.xlu1 %v2416_v16  ;;  %v2375_v4 = vmul.f32 %v6559_v54, %v10500_v31  ;;  %v2374_v39 = vmul.f32 %v6558_v41, %v10501_v33  ;;  %v10504_v19 = vld [vmem:[#allocation119_spill] sm:$0xff]  ;;  %v10505_v54 = vld [vmem:[#allocation120_spill] sm:$0xff]  ;;  %v10506_v33 = vld [vmem:[#allocation125_spill] sm:$0xff] }
 0x8e7   : > { %v2373_v52 = vmul.f32 %v6554_v29, %v10498_v22  ;;  %v2372_v24 = vmul.f32 %v6553_v12, %v10499_v37  ;;  %v6567_v44 = vpop.permute.xlu1 %6566  ;;  %v10503_v29 = vld [vmem:[#allocation116_spill] sm:$0xff] }
 0x8e8   : > { %v6562_v27 = vpop.permute.xlu0 %6561  ;;  %v6569_v60 = vunpack.i.h.bf16 %v6567_v44  ;;  %v6568_v2 = vunpack.i.l.bf16 %v6567_v44  ;;  %v2437_v62 = vsel %vm560_vm1, %v2375_v4, 0.0  ;;  %v2434_v45 = vsel %vm560_vm1, %v2374_v39, 0.0 }
 0x8e9   : > { %v6564_v18 = vunpack.i.h.bf16 %v6562_v27  ;;  %v6563_v23 = vunpack.i.l.bf16 %v6562_v27  ;;  %v2431_v8 = vsel %vm560_vm1, %v2373_v52, 0.0  ;;  %v2428_v7 = vsel %vm560_vm1, %v2372_v24, 0.0 }
 0x8ea   : > { %2426 = vadd.xlane.f32.xlu0 %v2425_v25  ;;  %2423 = vadd.xlane.f32.xlu1 %v2422_v63  ;;  %v2379_v16 = vmul.f32 %v6569_v60, %v10504_v19  ;;  %v2378_v41 = vmul.f32 %v6568_v2, %v10505_v54  ;;  %v10509_v2 = vld [vmem:[#allocation128_spill] sm:$0xff] }
 0x8eb   : > { %v2377_v49 = vmul.f32 %v6564_v18, %v10502_v40  ;;  %v2376_v12 = vmul.f32 %v6563_v23, %v10503_v29  ;;  %v6577_v22 = vpop.permute.xlu1 %6576  ;;  %v10507_v18 = vld [vmem:[#allocation126_spill] sm:$0xff] }
 0x8ec   : > { %v6572_v57 = vpop.permute.xlu0 %6571  ;;  %v6579_v24 = vunpack.i.h.bf16 %v6577_v22  ;;  %v6578_v27 = vunpack.i.l.bf16 %v6577_v22  ;;  %v2449_v31 = vsel %vm560_vm1, %v2379_v16, 0.0  ;;  %v2446_v4 = vsel %vm560_vm1, %v2378_v41, 0.0  ;;  %v10512_v16 = vld [vmem:[#allocation51_spill] sm:$0xff] }
 0x8ed   : > { %v6574_v25 = vunpack.i.h.bf16 %v6572_v57  ;;  %v6573_v63 = vunpack.i.l.bf16 %v6572_v57  ;;  %v2443_v52 = vsel %vm560_vm1, %v2377_v49, 0.0  ;;  %v2440_v37 = vsel %vm560_vm1, %v2376_v12, 0.0  ;;  %v10511_v12 = vld [vmem:[#allocation46_spill] sm:$0xff] }
 0x8ee   : > { %2432 = vadd.xlane.f32.xlu0 %v2431_v8  ;;  %2429 = vadd.xlane.f32.xlu1 %v2428_v7  ;;  %v10508_v7 = vld [vmem:[#allocation127_spill] sm:$0xff]  ;;  %v1587_v57 = vsel %vm560_vm1, %v10511_v12, 0.0  ;;  %v1590_v54 = vsel %vm560_vm1, %v10512_v16, 0.0 }
 0x8ef   : > { %v2381_v39 = vmul.f32 %v6574_v25, %v10506_v33  ;;  %v2380_v23 = vmul.f32 %v6573_v63, %v10507_v18  ;;  %v2383_v60 = vmul.f32 %v6579_v24, %v10508_v7  ;;  %v10513_v25 = vld [vmem:[#allocation53_spill] sm:$0xff]  ;;  %v10516_v33 = vld [vmem:[#allocation60_spill] sm:$0xff]  ;;  %v10518_v7 = vld [vmem:[#allocation66_spill] sm:$0xff] }
 0x8f0   : > { %v1592_v63 = vsel %vm560_vm1, %v10513_v25, 0.0  ;;  %v1612_v25 = vsel %vm560_vm1, %v10368_v43, 0.0  ;;  %v10525_v43 = vld [vmem:[#allocation98_spill] sm:$0xff] }
 0x8f1   : > { %v2455_v44 = vsel %vm560_vm1, %v2381_v39, 0.0  ;;  %v2452_v8 = vsel %vm560_vm1, %v2380_v23, 0.0  ;;  %v2461_v49 = vsel %vm560_vm1, %v2383_v60, 0.0  ;;  %v1598_v39 = vsel %vm560_vm1, %v10516_v33, 0.0  ;;  %v10517_v23 = vld [vmem:[#allocation62_spill] sm:$0xff] }
 0x8f2   : > { %2438 = vadd.xlane.f32.xlu0 %v2437_v62  ;;  %2435 = vadd.xlane.f32.xlu1 %v2434_v45  ;;  %v2382_v62 = vmul.f32 %v6578_v27, %v10509_v2  ;;  %v10510_v45 = vld [vmem:[#allocation48_spill] sm:$0xff]  ;;  %v10515_v27 = vld [vmem:[#allocation59_spill] sm:$0xff]  ;;  %v1602_v60 = vsel %vm560_vm1, %v10518_v7, 0.0  ;;  %v2705_v7 = vmul.u32 32, %v10525_v43 }
 0x8f3   : > { %v1588_v40 = vsel %vm560_vm1, %v10510_v45, 0.0  ;;  %v10537_v43 = vld [vmem:[#allocation123_spill] sm:$0xff] }
 0x8f4   : > { %v2458_v29 = vsel %vm560_vm1, %v2382_v62, 0.0  ;;  %v1589_v19 = vadd.f32 %v1588_v40, %v1587_v57  ;;  %v10519_v62 = vld [vmem:[#allocation67_spill] sm:$0xff]  ;;  %v10521_v57 = vld [vmem:[#allocation69_spill] sm:$0xff] }
 0x8f5   : > { %v1604_v45 = vsel %vm560_vm1, %v10519_v62, 0.0 }
 0x8f6   : > { %2444 = vadd.xlane.f32.xlu0 %v2443_v52  ;;  %2441 = vadd.xlane.f32.xlu1 %v2440_v37  ;;  %v1591_v41 = vadd.f32 %v1590_v54, %v1589_v19  ;;  %v10514_v52 = vld [vmem:[#allocation57_spill] sm:$0xff]  ;;  %v1608_v19 = vsel %vm560_vm1, %v10521_v57, 0.0  ;;  %v1610_v54 = vsel %vm560_vm1, %v10369_v48, 0.0  ;;  %v10523_v48 = vld [vmem:[#allocation99_spill] sm:$0xff]  ;;  %v10530_v57 = vld [vmem:[#allocation110_spill] sm:$0xff] }
 0x8f7   : > { %v1594_v37 = vsel %vm560_vm1, %v10514_v52, 0.0 }
 0x8f8   : > { %v1593_v22 = vadd.f32 %v1592_v63, %v1591_v41 }
 0x8fa   : > { %2450 = vadd.xlane.f32.xlu0 %v2449_v31  ;;  %2447 = vadd.xlane.f32.xlu1 %v2446_v4  ;;  %v1595_v24 = vadd.f32 %v1594_v37, %v1593_v22  ;;  %v1596_v31 = vsel %vm560_vm1, %v10515_v27, 0.0  ;;  %v1614_v22 = vsel %vm560_vm1, %v10373_v47, 0.0  ;;  %v1616_v37 = vsel %vm560_vm1, %v10372_v10, 0.0  ;;  %v10528_v10 = vld [vmem:[#allocation103_spill] sm:$0xff] }
 0x8fc   : > { %v1597_v4 = vadd.f32 %v1596_v31, %v1595_v24 }
 0x8fe   : > { %2456 = vadd.xlane.f32.xlu0 %v2455_v44  ;;  %2453 = vadd.xlane.f32.xlu1 %v2452_v8  ;;  %v1599_v18 = vadd.f32 %v1598_v39, %v1597_v4  ;;  %v1600_v44 = vsel %vm560_vm1, %v10517_v23, 0.0  ;;  %v10522_v39 = vld [vmem:[#allocation97_spill] sm:$0xff]  ;;  %v2706_v23 = vmul.u32 32, %v10523_v48 }
 0x8ff   : > { %v10541_v48 = vld [vmem:[#allocation49_spill] sm:$0xff] }
 0x900   : > { %v1601_v8 = vadd.f32 %v1600_v44, %v1599_v18  ;;  %v2704_v18 = vmul.u32 32, %v10522_v39  ;;  %v10524_v44 = vld [vmem:[#allocation102_spill] sm:$0xff] }
 0x901   : > { %v10536_v39 = vld [vmem:[#allocation122_spill] sm:$0xff] }
 0x902   : > { %2462 = vadd.xlane.f32.xlu0 %v2461_v49  ;;  %2459 = vadd.xlane.f32.xlu1 %v2458_v29  ;;  %v1603_v2 = vadd.f32 %v1602_v60, %v1601_v8  ;;  %v10520_v49 = vld [vmem:[#allocation68_spill] sm:$0xff]  ;;  %v10526_v60 = vld [vmem:[#allocation106_spill] sm:$0xff] }
 0x903   : > { %v1606_v29 = vsel %vm560_vm1, %v10520_v49, 0.0  ;;  %v10542_v49 = vld [vmem:[#allocation12_spill] sm:$0xff] }
 0x904   : > { %v1605_v40 = vadd.f32 %v1604_v45, %v1603_v2  ;;  %v10527_v45 = vld [vmem:[#allocation100_spill] sm:$0xff] }
 0x906   : > { %v1607_v12 = vadd.f32 %v1606_v29, %v1605_v40  ;;  %v2707_v40 = vmul.u32 32, %v10527_v45  ;;  %v10529_v29 = vld [vmem:[#allocation107_spill] sm:$0xff] }
 0x908   : > { %v1609_v16 = vadd.f32 %v1608_v19, %v1607_v12  ;;  %v8992_v19 = vmul.f32 %v8530_v36, %v8518_v13  ;;  %v10538_v12 = vld [vmem:[#allocation124_spill] sm:$0xff]  ;;  %v9009_v36 = vmul.f32 %v8571_v59, %v10542_v49 }
 0x909   : > { %v10546_v59 = vld [vmem:[#allocation56_spill] sm:$0xff] }
 0x90a   : > { %v1611_v41 = vadd.f32 %v1610_v54, %v1609_v16  ;;  %v10531_v54 = vld [vmem:[#allocation115_spill] sm:$0xff] }
 0x90c   : > { %v1613_v63 = vadd.f32 %v1612_v25, %v1611_v41  ;;  %v10532_v25 = vld [vmem:[#allocation117_spill] sm:$0xff] }
 0x90e   : > { %v1615_v52 = vadd.f32 %v1614_v22, %v1613_v63  ;;  %v10533_v22 = vld [vmem:[#allocation118_spill] sm:$0xff] }
 0x910   : > { %v1617_v24 = vadd.f32 %v1616_v37, %v1615_v52  ;;  %v10534_v37 = vld [vmem:[#allocation121_spill] sm:$0xff]  ;;  %v8997_v52 = vmul.f32 %v8533_v35, %v8518_v13  ;;  %v9017_v13 = vmul.f32 %v8614_v26, %v8594_v38 }
 0x912   : > { %v1618_v27 = vrot.slane %v1617_v24, 4 }
 0x914   : > { %v1619_v31 = vadd.f32 %v1618_v27, %v1617_v24 }
 0x916   : > { %v1620_v4 = vrot.slane %v1619_v31, 2 }
 0x918   : > { %v1621_v33 = vadd.f32 %v1620_v4, %v1619_v31 }
 0x91a   : > { %v1622_v47 = vrot.slane %v1621_v33, 1 }
 0x91c   : > { %v8986_v27 = vadd.f32 %v1622_v47, %v1621_v33  ;;  %v10539_v33 = vld [vmem:[#allocation9_spill] sm:$0xff]  ;;  %v10540_v47 = vld [vmem:[#allocation8_spill] sm:$0xff] }
 0x91d   : > { %v9001_v24 = vmul.f32 %v10540_v47, %v10539_v33  ;;  %v9005_v2 = vmul.f32 %v10541_v48, %v10539_v33  ;;  %v10544_v47 = vld [vmem:[#allocation55_spill] sm:$0xff]  ;;  %v10545_v48 = vld [vmem:[#allocation30_spill] sm:$0xff] }
 0x91e   : > { %10535 = vst [vmem:[#allocation129_spill] sm:$0xff] %v8986_v27  ;;  %v9021_v63 = vmul.f32 %v10544_v47, %v8594_v38  ;;  %v9029_v33 = vmul.f32 %v10546_v59, %v10545_v48  ;;  %v10547_v27 = vld [vmem:[#allocation78_spill] sm:$0xff] }
 0x91f   : > { %v9033_v26 = vmul.f32 %v10548_v3, %v10547_v27 }
 0x94f   : > { %v2578_v62 = vpop.xlane.xlu0 %2577 }
 0x950   : > { %v6454_v16 = vtrunc.f32 %v2578_v62 }
 0x952   : > { %v6455_v45 = vcvt.f32.s32 %v6454_v16  ;;  %v9025_v16 = vmul.f32 %v8623_v34, %v10545_v48  ;;  %v10551_v34 = vld [vmem:[#allocation36_spill] sm:$0xff]  ;;  %v10552_v48 = vld [vmem:[#allocation89_spill] sm:$0xff] }
 0x953   : > { %v2581_v31 = vpop.xlane.xlu0 %2580  ;;  %v2584_v4 = vpop.xlane.xlu1 %2583  ;;  %v9041_v51 = vmul.f32 %v10551_v34, %v10550_v55  ;;  %v9045_v59 = vmul.f32 %v10552_v48, %v10550_v55  ;;  %v10556_v55 = vld [vmem:[#allocation64_spill] sm:$0xff]  ;;  %v10557_v34 = vld [vmem:[#allocation37_spill] sm:$0xff] }
 0x954   : > { %v6456_v62 = vtrunc.f32 %v2581_v31  ;;  %v6458_v41 = vtrunc.f32 %v2584_v4  ;;  %v10543_v31 = vld [vmem:[#allocation32_spill] sm:$0xff]  ;;  %v2736_v3 = vadd.s32 %v6455_v45, %v2704_v18  ;;  %v9065_v48 = vmul.f32 %v10557_v34, %v10556_v55 }
 0x955   : > { %v9013_v4 = vmul.f32 %v10543_v31, %v10542_v49 }
 0x956   : > { %v6457_v35 = vcvt.f32.s32 %v6456_v62  ;;  %v6459_v8 = vcvt.f32.s32 %v6458_v41  ;;  %v10549_v62 = vld [vmem:[#allocation35_spill] sm:$0xff]  ;;  %v9049_v41 = vmul.f32 %v8689_v58, %v8676_v32  ;;  %vm2810_vm10 = vcmp.eq.s32.totalorder %v7103_v46, %v2736_v3 }
 0x957   : > { %v2587_v49 = vpop.xlane.xlu0 %2586  ;;  %v2590_v31 = vpop.xlane.xlu1 %2589  ;;  %v9037_v28 = vmul.f32 %v10549_v62, %v10547_v27  ;;  %v9057_v27 = vmul.f32 %v8702_v61, %v8680_v56  ;;  %v10558_v32 = vld [vmem:[#allocation139_spill] sm:$0xff]  ;;  %v9073_v61 = vmul.f32 %v8762_v9, %v8776_v6  ;;  %vm3156_vm11 = vcmp.eq.s32.totalorder %v8510_v11, %v2736_v3 }
 0x958   : > { %v6460_v38 = vtrunc.f32 %v2587_v49  ;;  %v6462_v47 = vtrunc.f32 %v2590_v31  ;;  %10553 = vst [vmem:[#allocation5_spill] sm:$0xff] %v9049_v41  ;;  %v10555_v49 = vld [vmem:[#allocation58_spill] sm:$0xff]  ;;  %v2737_v62 = vadd.s32 %v6457_v35, %v2705_v7  ;;  %v2738_v58 = vadd.s32 %v6459_v8, %v2706_v23 }
 0x959   : > { %v9061_v31 = vmul.f32 %v10555_v49, %v8680_v56  ;;  %v9069_v17 = vmul.f32 %v10558_v32, %v10556_v55  ;;  %10559 = vst [vmem:[#allocation6_spill] sm:$0xff] %v9073_v61  ;;  %v9077_v7 = vmul.f32 %v8783_v50, %v8776_v6  ;;  %v10561_v8 = vmul.u32 32, %v10524_v44 }
 0x95a   : > { %v6461_v21 = vcvt.f32.s32 %v6460_v38  ;;  %v6463_v18 = vcvt.f32.s32 %v6462_v47  ;;  %vm2811_vm12 = vcmp.eq.s32.totalorder %v7103_v46, %v2737_v62  ;;  %vm3157_vm13 = vcmp.eq.s32.totalorder %v8510_v11, %v2737_v62 }
 0x95b   : > { %v2593_v45 = vpop.xlane.xlu0 %2592  ;;  %v2596_v30 = vpop.xlane.xlu1 %2595  ;;  %10560 = vst [vmem:[#allocation130_spill] sm:$0xff] %v9077_v7  ;;  %v9091_v6 = vmul.f32 %v8883_v42, %v8876_v1  ;;  %vm2812_vm14 = vcmp.eq.s32.totalorder %v7103_v46, %v2738_v58  ;;  %vm3158_vm15 = vcmp.eq.s32.totalorder %v8510_v11, %v2738_v58  ;;  %v9098_v44 = vsel %vm2810_vm10, 1.0, %v10286_v53 }
 0x95c   : > { %v6464_v56 = vtrunc.f32 %v2593_v45  ;;  %v6466_v49 = vtrunc.f32 %v2596_v30  ;;  %v2739_v23 = vadd.s32 %v6461_v21, %v2707_v40  ;;  %v2740_v35 = vadd.s32 %v6463_v18, %v10561_v8 }
 0x95d   : > { %v9087_v30 = vmul.f32 %v8880_v0, %v8876_v1  ;;  %10563 = vst [vmem:[#allocation131_spill] sm:$0xff] %v9091_v6  ;;  %v9102_v0 = vsel %vm2811_vm12, 1.0, %v10286_v53  ;;  %v9105_v1 = vsel %vm3157_vm13, 1.0, %v10286_v53  ;;  %v9110_v42 = vsel %vm3156_vm11, 1.0, %v10286_v53 }
 0x95e   : > { %v6465_v9 = vcvt.f32.s32 %v6464_v56  ;;  %v6467_v50 = vcvt.f32.s32 %v6466_v49  ;;  %vm2813_vm2 = vcmp.eq.s32.totalorder %v7103_v46, %v2739_v23  ;;  %vm3159_vm3 = vcmp.eq.s32.totalorder %v8510_v11, %v2739_v23 }
 0x95f   : > { %10562 = vst [vmem:[#allocation132_spill] sm:$0xff] %v9087_v30  ;;  %v2599_v21 = vpop.xlane.xlu0 %2598  ;;  %v2602_v40 = vpop.xlane.xlu1 %2601  ;;  %vm2814_vm4 = vcmp.eq.s32.totalorder %v7103_v46, %v2740_v35  ;;  %v10564_v62 = vmul.u32 32, %v10528_v10  ;;  %v9117_v34 = vsel %vm2812_vm14, 1.0, %v10286_v53  ;;  %v10565_v18 = vmul.u32 32, %v10526_v60 }
 0x960   : > { %v6468_v38 = vtrunc.f32 %v2599_v21  ;;  %v6470_v47 = vtrunc.f32 %v2602_v40  ;;  %v9124_v3 = vsel %vm3158_vm15, 1.0, %v10286_v53  ;;  %vm3160_vm5 = vcmp.eq.s32.totalorder %v8510_v11, %v2740_v35 }
 0x961   : > { %v2741_v55 = vadd.s32 %v6465_v9, %v10564_v62  ;;  %v2742_v45 = vadd.s32 %v6467_v50, %v10565_v18  ;;  %v9130_v9 = vsel %vm2813_vm2, 1.0, %v10286_v53  ;;  %v10566_v60 = vmul.u32 32, %v10529_v29 }
 0x962   : > { %v6469_v32 = vcvt.f32.s32 %v6468_v38  ;;  %v6471_v56 = vcvt.f32.s32 %v6470_v47  ;;  %v10567_v40 = vmul.u32 32, %v10531_v54  ;;  %v9139_v58 = vsel %vm3159_vm3, 1.0, %v10286_v53 }
 0x963   : > { %v2605_v49 = vpop.xlane.xlu0 %2604  ;;  %v2608_v8 = vpop.xlane.xlu1 %2607  ;;  %v9144_v47 = vsel %vm2814_vm4, 1.0, %v10286_v53  ;;  %vm2815_vm6 = vcmp.eq.s32.totalorder %v7103_v46, %v2741_v55  ;;  %vm3161_vm7 = vcmp.eq.s32.totalorder %v8510_v11, %v2741_v55  ;;  %vm2816_vm8 = vcmp.eq.s32.totalorder %v7103_v46, %v2742_v45 }
 0x964   : > { %v6472_v21 = vtrunc.f32 %v2605_v49  ;;  %v6474_v10 = vtrunc.f32 %v2608_v8  ;;  %v2743_v50 = vadd.s32 %v6469_v32, %v10566_v60  ;;  %v2744_v38 = vadd.s32 %v6471_v56, %v10567_v40 }
 0x965   : > { %vm3162_vm9 = vcmp.eq.s32.totalorder %v8510_v11, %v2742_v45  ;;  %v9154_v18 = vsel %vm3160_vm5, 1.0, %v10286_v53  ;;  %v10568_v32 = vmul.u32 32, %v10530_v57  ;;  %v9165_v60 = vsel %vm2815_vm6, 1.0, %v10286_v53 }
 0x966   : > { %v6473_v62 = vcvt.f32.s32 %v6472_v21  ;;  %v6475_v29 = vcvt.f32.s32 %v6474_v10  ;;  %vm2817_vm10 = vcmp.eq.s32.totalorder %v7103_v46, %v2743_v50  ;;  %vm3163_vm11 = vcmp.eq.s32.totalorder %v8510_v11, %v2743_v50 }
 0x967   : > { %v2611_v54 = vpop.xlane.xlu0 %2610  ;;  %v2614_v23 = vpop.xlane.xlu1 %2613  ;;  %vm2818_vm12 = vcmp.eq.s32.totalorder %v7103_v46, %v2744_v38  ;;  %v10569_v21 = vmul.u32 32, %v10532_v25  ;;  %v9170_v35 = vsel %vm3161_vm7, 1.0, %v10286_v53  ;;  %vm3164_vm13 = vcmp.eq.s32.totalorder %v8510_v11, %v2744_v38 }
 0x968   : > { %v2745_v56 = vadd.s32 %v6473_v62, %v10568_v32  ;;  %v6476_v49 = vtrunc.f32 %v2611_v54  ;;  %v6478_v8 = vtrunc.f32 %v2614_v23  ;;  %v9174_v57 = vsel %vm2817_vm10, 1.0, %v10286_v53 }
 0x969   : > { %v2746_v10 = vadd.s32 %v6475_v29, %v10569_v21  ;;  %v9179_v25 = vsel %vm2816_vm8, 1.0, %v10286_v53  ;;  %v9184_v40 = vsel %vm3162_vm9, 1.0, %v10286_v53  ;;  %v9190_v23 = vsel %vm3163_vm11, 1.0, %v10286_v53 }
 0x96a   : > { %vm2819_vm14 = vcmp.eq.s32.totalorder %v7103_v46, %v2745_v56  ;;  %v6477_v55 = vcvt.f32.s32 %v6476_v49  ;;  %v6479_v62 = vcvt.f32.s32 %v6478_v8  ;;  %vm3165_vm15 = vcmp.eq.s32.totalorder %v8510_v11, %v2745_v56 }
 0x96b   : > { %v2617_v29 = vpop.xlane.xlu0 %2616  ;;  %v2620_v54 = vpop.xlane.xlu1 %2619  ;;  %v9196_v45 = vsel %vm2818_vm12, 1.0, %v10286_v53  ;;  %vm2820_vm2 = vcmp.eq.s32.totalorder %v7103_v46, %v2746_v10  ;;  %v10570_v49 = vmul.u32 32, %v10533_v22  ;;  %v10571_v6 = vmul.u32 32, %v10534_v37 }
 0x96c   : > { %v6480_v32 = vtrunc.f32 %v2617_v29  ;;  %v6482_v21 = vtrunc.f32 %v2620_v54  ;;  %v9206_v50 = vsel %vm3164_vm13, 1.0, %v10286_v53  ;;  %vm3166_vm3 = vcmp.eq.s32.totalorder %v8510_v11, %v2746_v10 }
 0x96d   : > { %v2747_v8 = vadd.s32 %v6477_v55, %v10570_v49  ;;  %v2748_v30 = vadd.s32 %v6479_v62, %v10571_v6  ;;  %v9212_v7 = vsel %vm2819_vm14, 1.0, %v10286_v53  ;;  %v9220_v37 = vsel %vm3165_vm15, 1.0, %v10286_v53 }
 0x96e   : > { %v6481_v29 = vcvt.f32.s32 %v6480_v32  ;;  %v6483_v54 = vcvt.f32.s32 %v6482_v21  ;;  %v10572_v6 = vmul.u32 32, %v10536_v39  ;;  %v10573_v55 = vmul.u32 32, %v10537_v43 }
 0x96f   : > { %vm2821_vm4 = vcmp.eq.s32.totalorder %v7103_v46, %v2747_v8  ;;  %vm3167_vm5 = vcmp.eq.s32.totalorder %v8510_v11, %v2747_v8  ;;  %vm2822_vm6 = vcmp.eq.s32.totalorder %v7103_v46, %v2748_v30  ;;  %v2623_v22 = vpop.xlane.xlu0 %2622  ;;  %vm3168_vm7 = vcmp.eq.s32.totalorder %v8510_v11, %v2748_v30 }
 0x970   : > { %v2749_v38 = vadd.s32 %v6481_v29, %v10572_v6  ;;  %v2750_v62 = vadd.s32 %v6483_v54, %v10573_v55  ;;  %v6484_v32 = vtrunc.f32 %v2623_v22  ;;  %v9228_v21 = vsel %vm2821_vm4, 1.0, %v10286_v53  ;;  %v10577_v6 = vld [vmem:[#allocation81_spill] sm:$0xff] }
 0x971   : > { %v9231_v49 = vsel %vm3167_vm5, 1.0, %v10286_v53  ;;  %v9236_v56 = vsel %vm2820_vm2, 1.0, %v10286_v53  ;;  %v9241_v39 = vsel %vm3166_vm3, 1.0, %v10286_v53  ;;  %v9247_v43 = vsel %vm2822_vm6, 1.0, %v10286_v53 }
 0x972   : > { %vm2823_vm8 = vcmp.eq.s32.totalorder %v7103_v46, %v2749_v38  ;;  %vm3169_vm9 = vcmp.eq.s32.totalorder %v8510_v11, %v2749_v38  ;;  %vm2824_vm10 = vcmp.eq.s32.totalorder %v7103_v46, %v2750_v62  ;;  %10574 = vst [vmem:[#allocation133_spill] sm:$0xff] %v9247_v43  ;;  %vm3170_vm11 = vcmp.eq.s32.totalorder %v8510_v11, %v2750_v62 }
 0x973   : > { %v6485_v8 = vcvt.f32.s32 %v6484_v32  ;;  %v2421_v29 = vpop.xlane.xlu0 %2420  ;;  %v2418_v54 = vpop.xlane.xlu1 %2417  ;;  %v9251_v22 = vsel %vm2823_vm8, 1.0, %v10286_v53  ;;  %v9256_v10 = vsel %vm3168_vm7, 1.0, %v10286_v53  ;;  %v9265_v43 = vsel %vm3169_vm9, 1.0, %v10286_v53 }
 0x974   : > { %10575 = vst [vmem:[#allocation134_spill] sm:$0xff] %v9251_v22  ;;  %10576 = vst [vmem:[#allocation72_spill] sm:$0xff] %v9256_v10  ;;  %v2641_v38 = vmul.f32 %v2421_v29, %v10577_v6  ;;  %v2939_v55 = vmul.f32 %v9102_v0, %v2421_v29  ;;  %v3285_v61 = vmul.f32 %v9105_v1, %v2421_v29  ;;  %v9268_v22 = vsel %vm2824_vm10, 1.0, %v10286_v53 }
 0x975   : > { %v2640_v20 = vmul.f32 %v2418_v54, %v10578_v5  ;;  %v2938_v32 = vmul.f32 %v9098_v44, %v2418_v54  ;;  %v3284_v15 = vmul.f32 %v9110_v42, %v2418_v54  ;;  %10579 = vst [vmem:[#allocation74_spill] sm:$0xff] %v9265_v43  ;;  %10580 = vst [vmem:[#allocation43_spill] sm:$0xff] %v9268_v22  ;;  %v10582_v29 = vmul.u32 32, %v10538_v12  ;;  %v10583_v12 = vld [vmem:[#allocation84_spill] sm:$0xff] }
 0x976   : > { %v9271_v30 = vmul.f32 %v9102_v0, %v2641_v38  ;;  %v2955_v6 = vadd.f32 %v2939_v55, %v9009_v36  ;;  %v9275_v10 = vmul.f32 %v9105_v1, %v2641_v38  ;;  %v3301_v5 = vadd.f32 %v3285_v61, %v9013_v4 }
 0x977   : > { %v9280_v14 = vadd.s32 %v6485_v8, %v10582_v29  ;;  %v9283_v54 = vmul.f32 %v9098_v44, %v2640_v20  ;;  %v2954_v43 = vadd.f32 %v2938_v32, %v9001_v24  ;;  %v2427_v22 = vpop.xlane.xlu0 %2426  ;;  %v2424_v41 = vpop.xlane.xlu1 %2423  ;;  %v9289_v36 = vsel %vm3170_vm11, 1.0, %v10286_v53  ;;  %v10584_v8 = vld [vmem:[#allocation83_spill] sm:$0xff] }
 0x978   : > { %10581 = vst [vmem:[#allocation41_spill] sm:$0xff] %v9271_v30  ;;  %v9292_v0 = vmul.f32 %v9110_v42, %v2640_v20  ;;  %v3300_v4 = vadd.f32 %v3284_v15, %v9005_v2  ;;  %v2643_v61 = vmul.f32 %v2427_v22, %v10583_v12  ;;  %v2941_v1 = vmul.f32 %v9130_v9, %v2427_v22  ;;  %v10585_v32 = vld [vmem:[#allocation47_spill] sm:$0xff] }
 0x979   : > { %v3287_v44 = vmul.f32 %v9139_v58, %v2427_v22  ;;  %v2642_v24 = vmul.f32 %v2424_v41, %v10584_v8  ;;  %v2940_v38 = vmul.f32 %v9117_v34, %v2424_v41  ;;  %v3286_v55 = vmul.f32 %v9124_v3, %v2424_v41  ;;  %v10586_v2 = vld [vmem:[#allocation79_spill] sm:$0xff] }
 0x97a   : > { %v9302_v62 = vmul.f32 %v9130_v9, %v2643_v61  ;;  %v2957_v20 = vadd.f32 %v2941_v1, %v10585_v32  ;;  %v9306_v42 = vmul.f32 %v9139_v58, %v2643_v61  ;;  %v3316_v15 = vpack.c.bf16 %v3301_v5, %v3300_v4  ;;  %v10587_v32 = vld [vmem:[#allocation88_spill] sm:$0xff]  ;;  %v10588_v61 = vld [vmem:[#allocation87_spill] sm:$0xff] }
 0x97b   : > { %v3303_v29 = vadd.f32 %v3287_v44, %v10586_v2  ;;  %v9310_v12 = vmul.f32 %v9117_v34, %v2642_v24  ;;  %v2956_v22 = vadd.f32 %v2940_v38, %v8992_v19  ;;  %v9314_v8 = vmul.f32 %v9124_v3, %v2642_v24  ;;  %v2433_v41 = vpop.xlane.xlu0 %2432  ;;  %v2430_v30 = vpop.xlane.xlu1 %2429 }
 0x97c   : > { %v3302_v9 = vadd.f32 %v3286_v55, %v8997_v52  ;;  %3324 = vxpose.xlu0.c.b16.start [1/8] %v3316_v15, 128  ;;  %v2970_v1 = vpack.c.bf16 %v2955_v6, %v2954_v43  ;;  %v2645_v58 = vmul.f32 %v2433_v41, %v10587_v32  ;;  %v2943_v5 = vmul.f32 %v9165_v60, %v2433_v41 }
 0x97d   : > { %v3289_v4 = vmul.f32 %v9170_v35, %v2433_v41  ;;  %v2644_v34 = vmul.f32 %v2430_v30, %v10588_v61  ;;  %v2942_v44 = vmul.f32 %v9144_v47, %v2430_v30  ;;  %v3288_v19 = vmul.f32 %v9154_v18, %v2430_v30  ;;  %v10589_v41 = vld [vmem:[#allocation91_spill] sm:$0xff] }
 0x97e   : > { %2978 = vxpose.xlu1.c.b16.start [1/8] %v2970_v1, 128  ;;  %v9324_v3 = vmul.f32 %v9165_v60, %v2645_v58  ;;  %v2959_v52 = vadd.f32 %v2943_v5, %v9041_v51  ;;  %v9328_v43 = vmul.f32 %v9170_v35, %v2645_v58  ;;  %v3317_v6 = vpack.c.bf16 %v3303_v29, %v3302_v9  ;;  %v10590_v9 = vld [vmem:[#allocation90_spill] sm:$0xff] }
 0x97f   : > { %v3305_v24 = vadd.f32 %v3289_v4, %v9045_v59  ;;  %v9332_v38 = vmul.f32 %v9144_v47, %v2644_v34  ;;  %v2958_v55 = vadd.f32 %v2942_v44, %v9033_v26  ;;  %v9336_v15 = vmul.f32 %v9154_v18, %v2644_v34  ;;  %v2439_v30 = vpop.xlane.xlu0 %2438  ;;  %v2436_v2 = vpop.xlane.xlu1 %2435  ;;  %v10591_v44 = vld [vmem:[#allocation94_spill] sm:$0xff] }
 0x980   : > { %v3304_v60 = vadd.f32 %v3288_v19, %v9037_v28  ;;  %3325 = vxpose.xlu0.c.b16.cont [2/8] %v3317_v6, 128  ;;  %v2971_v51 = vpack.c.bf16 %v2957_v20, %v2956_v22  ;;  %v2647_v35 = vmul.f32 %v2439_v30, %v10589_v41  ;;  %v2945_v29 = vmul.f32 %v9174_v57, %v2439_v30 }
 0x981   : > { %v3291_v59 = vmul.f32 %v9190_v23, %v2439_v30  ;;  %v2646_v47 = vmul.f32 %v2436_v2, %v10590_v9  ;;  %v2944_v1 = vmul.f32 %v9179_v25, %v2436_v2  ;;  %v3290_v26 = vmul.f32 %v9184_v40, %v2436_v2  ;;  %v10595_v9 = vld [vmem:[#allocation40_spill] sm:$0xff] }
 0x982   : > { %2979 = vxpose.xlu1.c.b16.cont [2/8] %v2971_v51, 128  ;;  %v9346_v18 = vmul.f32 %v9174_v57, %v2647_v35  ;;  %v2961_v28 = vadd.f32 %v2945_v29, %v9025_v16  ;;  %v9350_v20 = vmul.f32 %v9190_v23, %v2647_v35  ;;  %v3318_v22 = vpack.c.bf16 %v3305_v24, %v3304_v60  ;;  %v10593_v60 = vld [vmem:[#allocation63_spill] sm:$0xff] }
 0x983   : > { %v3307_v32 = vadd.f32 %v3291_v59, %v9029_v33  ;;  %v9354_v58 = vmul.f32 %v9179_v25, %v2646_v47  ;;  %v2960_v5 = vadd.f32 %v2944_v1, %v9017_v13  ;;  %v9358_v4 = vmul.f32 %v9184_v40, %v2646_v47  ;;  %v2445_v61 = vpop.xlane.xlu0 %2444  ;;  %v2442_v34 = vpop.xlane.xlu1 %2441  ;;  %v10592_v33 = vld [vmem:[#allocation93_spill] sm:$0xff]  ;;  %v10596_v1 = vld [vmem:[#allocation39_spill] sm:$0xff] }
 0x984   : > { %v3306_v57 = vadd.f32 %v3290_v26, %v9021_v63  ;;  %3326 = vxpose.xlu0.c.b16.cont [3/8] %v3318_v22, 128  ;;  %v2972_v16 = vpack.c.bf16 %v2959_v52, %v2958_v55  ;;  %v2649_v23 = vmul.f32 %v2445_v61, %v10591_v44  ;;  %v2947_v19 = vmul.f32 %v9212_v7, %v2445_v61 }
 0x985   : > { %vm2825_vm12 = vcmp.eq.s32.totalorder %v7103_v46, %v9280_v14  ;;  %vm3171_vm13 = vcmp.eq.s32.totalorder %v8510_v11, %v9280_v14  ;;  %v3293_v13 = vmul.f32 %v9220_v37, %v2445_v61  ;;  %v2648_v25 = vmul.f32 %v2442_v34, %v10592_v33  ;;  %v10599_v33 = vld [vmem:[#allocation44_spill] sm:$0xff] }
 0x986   : > { %v2946_v40 = vmul.f32 %v9196_v45, %v2442_v34  ;;  %v3292_v63 = vmul.f32 %v9206_v50, %v2442_v34  ;;  %2980 = vxpose.xlu1.c.b16.cont [3/8] %v2972_v16, 128  ;;  %v9372_v52 = vmul.f32 %v9212_v7, %v2649_v23  ;;  %v2963_v6 = vadd.f32 %v2947_v19, %v9065_v48  ;;  %v10594_v7 = vld [vmem:[#allocation61_spill] sm:$0xff]  ;;  %v10614_v14 = vld [vmem:[#allocation132_spill] sm:$0xff] }
 0x987   : > { %v9376_v24 = vmul.f32 %v9220_v37, %v2649_v23  ;;  %v3319_v55 = vpack.c.bf16 %v3307_v32, %v3306_v57  ;;  %v3309_v30 = vadd.f32 %v3293_v13, %v9069_v17  ;;  %v9380_v2 = vmul.f32 %v9196_v45, %v2648_v25  ;;  %v2451_v35 = vpop.xlane.xlu0 %2450  ;;  %v2448_v29 = vpop.xlane.xlu1 %2447  ;;  %v10597_v57 = vld [vmem:[#allocation5_spill] sm:$0xff] }
 0x988   : > { %v2962_v51 = vadd.f32 %v2946_v40, %v10593_v60  ;;  %v9384_v41 = vmul.f32 %v9206_v50, %v2648_v25  ;;  %v3308_v59 = vadd.f32 %v3292_v63, %v10594_v7  ;;  %v2973_v48 = vpack.c.bf16 %v2961_v28, %v2960_v5  ;;  %v10600_v25 = vld [vmem:[#allocation134_spill] sm:$0xff]  ;;  %v10605_v7 = vld [vmem:[#allocation147_spill] sm:$0xff] }
 0x989   : > { %3327 = vxpose.xlu0.c.b16.cont [4/8] %v3319_v55, 128  ;;  %v2651_v37 = vmul.f32 %v2451_v35, %v10595_v9  ;;  %v2949_v47 = vmul.f32 %v9228_v21, %v2451_v35  ;;  %v3295_v17 = vmul.f32 %v9231_v49, %v2451_v35  ;;  %v2650_v45 = vmul.f32 %v2448_v29, %v10596_v1  ;;  %v10601_v63 = vld [vmem:[#allocation74_spill] sm:$0xff]  ;;  %v10604_v35 = vld [vmem:[#allocation72_spill] sm:$0xff] }
 0x98a   : > { %v2948_v26 = vmul.f32 %v9236_v56, %v2448_v29  ;;  %v3294_v22 = vmul.f32 %v9241_v39, %v2448_v29  ;;  %2981 = vxpose.xlu1.c.b16.cont [4/8] %v2973_v48, 128  ;;  %v3320_v5 = vpack.c.bf16 %v3309_v30, %v3308_v59  ;;  %v10602_v55 = vld [vmem:[#allocation42_spill] sm:$0xff]  ;;  %v10603_v30 = vld [vmem:[#allocation133_spill] sm:$0xff] }
 0x98b   : > { %v9394_v50 = vmul.f32 %v9228_v21, %v2651_v37  ;;  %v2965_v32 = vadd.f32 %v2949_v47, %v9057_v27  ;;  %v9398_v28 = vmul.f32 %v9231_v49, %v2651_v37  ;;  %v3311_v61 = vadd.f32 %v3295_v17, %v9061_v31  ;;  %v2457_v23 = vpop.xlane.xlu0 %2456  ;;  %v2454_v19 = vpop.xlane.xlu1 %2453  ;;  %v10598_v21 = vld [vmem:[#allocation75_spill] sm:$0xff]  ;;  %v10606_v48 = vld [vmem:[#allocation149_spill] sm:$0xff] }
 0x98c   : > { %v9402_v34 = vmul.f32 %v9236_v56, %v2650_v45  ;;  %v2964_v16 = vadd.f32 %v2948_v26, %v10597_v57  ;;  %v9406_v44 = vmul.f32 %v9241_v39, %v2650_v45  ;;  %v3310_v13 = vadd.f32 %v3294_v22, %v10598_v21  ;;  %v10607_v47 = vld [vmem:[#allocation73_spill] sm:$0xff]  ;;  %v10608_v22 = vld [vmem:[#allocation70_spill] sm:$0xff] }
 0x98d   : > { %3328 = vxpose.xlu0.c.b16.cont [5/8] %v3320_v5, 128  ;;  %v2974_v27 = vpack.c.bf16 %v2963_v6, %v2962_v51  ;;  %v2653_v49 = vmul.f32 %v2457_v23, %v10599_v33  ;;  %v2951_v40 = vmul.f32 %v10600_v25, %v2457_v23  ;;  %v3297_v31 = vmul.f32 %v10601_v63, %v2457_v23  ;;  %v10610_v33 = vld [vmem:[#allocation95_spill] sm:$0xff] }
 0x98e   : > { %v2652_v56 = vmul.f32 %v2454_v19, %v10602_v55  ;;  %v2950_v60 = vmul.f32 %v10603_v30, %v2454_v19  ;;  %v3296_v29 = vmul.f32 %v10604_v35, %v2454_v19  ;;  %v3321_v51 = vpack.c.bf16 %v3311_v61, %v3310_v13  ;;  %v10609_v19 = vld [vmem:[#allocation96_spill] sm:$0xff] }
 0x98f   : > { %2982 = vxpose.xlu1.c.b16.cont [5/8] %v2974_v27, 128  ;;  %v9416_v39 = vmul.f32 %v10600_v25, %v2653_v49  ;;  %v2967_v59 = vadd.f32 %v2951_v40, %v10605_v7  ;;  %v3233_v6 = vmul.f32 %v10601_v63, %v2653_v49  ;;  %v3313_v9 = vadd.f32 %v3297_v31, %v10606_v48  ;;  %v2463_v45 = vpop.xlane.xlu0 %2462  ;;  %v2460_v26 = vpop.xlane.xlu1 %2459  ;;  %v10611_v25 = vld [vmem:[#allocation43_spill] sm:$0xff]  ;;  %v10612_v31 = vld [vmem:[#allocation6_spill] sm:$0xff] }
 0x990   : > { %v2886_v37 = vmul.f32 %v10603_v30, %v2652_v56  ;;  %v2966_v17 = vadd.f32 %v2950_v60, %v10607_v47  ;;  %v3232_v1 = vmul.f32 %v10604_v35, %v2652_v56  ;;  %v3312_v5 = vadd.f32 %v3296_v29, %v10608_v22  ;;  %v10613_v30 = vld [vmem:[#allocation130_spill] sm:$0xff]  ;;  %v10615_v29 = vld [vmem:[#allocation131_spill] sm:$0xff]  ;;  %v10618_v47 = vld [vmem:[#allocation29_spill] sm:$0xff] }
 0x991   : > { %3329 = vxpose.xlu0.c.b16.cont [6/8] %v3321_v51, 128  ;;  %v2975_v57 = vpack.c.bf16 %v2965_v32, %v2964_v16  ;;  %v5499_v23 = vsel %vm2825_vm12, 1.0, %v10286_v53  ;;  %v5531_v61 = vsel %vm3171_vm13, 1.0, %v10286_v53  ;;  %v2655_v21 = vmul.f32 %v2463_v45, %v10609_v19  ;;  %v10616_v51 = vld [vmem:[#allocation50_spill] sm:$0xff] }
 0x992   : > { %v2953_v13 = vmul.f32 %v5499_v23, %v2463_v45  ;;  %v3299_v27 = vmul.f32 %v5531_v61, %v2463_v45  ;;  %v2654_v49 = vmul.f32 %v2460_v26, %v10610_v33  ;;  %v2952_v40 = vmul.f32 %v10611_v25, %v2460_v26  ;;  %v10619_v45 = vld [vmem:[#allocation77_spill] sm:$0xff] }
 0x993   : > { %2983 = vxpose.xlu1.c.b16.cont [6/8] %v2975_v57, 128  ;;  %v3298_v32 = vmul.f32 %v9289_v36, %v2460_v26  ;;  %v3322_v16 = vpack.c.bf16 %v3313_v9, %v3312_v5  ;;  %v2976_v63 = vpack.c.bf16 %v2967_v59, %v2966_v17  ;;  %v2889_v46 = vmul.f32 %v5499_v23, %v2655_v21  ;;  %v10617_v59 = vld [vmem:[#allocation80_spill] sm:$0xff]  ;;  %v10620_v26 = vld [vmem:[#allocation41_spill] sm:$0xff]  ;;  %v10621_v57 = vld [vmem:[#allocation10_spill] sm:$0xff] }
 0x994   : > { %v2969_v55 = vadd.f32 %v2953_v13, %v10612_v31  ;;  %v3235_v56 = vmul.f32 %v5531_v61, %v2655_v21  ;;  %v3315_v11 = vadd.f32 %v3299_v27, %v10613_v30  ;;  %v2888_v53 = vmul.f32 %v10611_v25, %v2654_v49  ;;  %v10625_v13 = vld [vmem:[#allocation33_spill] sm:$0xff]  ;;  %v10628_v25 = vld [vmem:[#allocation135_spill] sm:$0xff]  ;;  %v10633_v31 = vld [vmem:[#allocation92_spill] sm:$0xff] }
 0x995   : > { %v2968_v60 = vadd.f32 %v2952_v40, %v10614_v14  ;;  %v3234_v35 = vmul.f32 %v9289_v36, %v2654_v49  ;;  %v3314_v7 = vadd.f32 %v3298_v32, %v10615_v29  ;;  %3330 = vxpose.xlu0.c.b16.cont [7/8] %v3322_v16, 128  ;;  %v9445_v48 = vadd.f32 %v9292_v0, %v10616_v51  ;;  %v10622_v0 = vld [vmem:[#allocation11_spill] sm:$0xff]  ;;  %v10626_v33 = vld [vmem:[#allocation85_spill] sm:$0xff]  ;;  %v10627_v49 = vld [vmem:[#allocation86_spill] sm:$0xff] }
 0x996   : > { %v9449_v9 = vadd.f32 %v9283_v54, %v10617_v59  ;;  %v9453_v17 = vadd.f32 %v9275_v10, %v10618_v47  ;;  %v9457_v22 = vadd.f32 %v10620_v26, %v10619_v45  ;;  %v9461_v23 = vadd.f32 %v9314_v8, %v10621_v57  ;;  %v10623_v54 = vld [vmem:[#allocation31_spill] sm:$0xff]  ;;  %v10624_v10 = vld [vmem:[#allocation45_spill] sm:$0xff]  ;;  %v10629_v40 = vld [vmem:[#allocation34_spill] sm:$0xff] }
 0x997   : > { %2984 = vxpose.xlu1.c.b16.cont [7/8] %v2976_v63, 128  ;;  %v3323_v36 = vpack.c.bf16 %v3315_v11, %v3314_v7  ;;  %v2977_v5 = vpack.c.bf16 %v2969_v55, %v2968_v60  ;;  %v9465_v61 = vadd.f32 %v9310_v12, %v10622_v0  ;;  %v9469_v19 = vadd.f32 %v9306_v42, %v10623_v54  ;;  %v10630_v32 = vld [vmem:[#allocation136_spill] sm:$0xff]  ;;  %v10631_v16 = vld [vmem:[#allocation137_spill] sm:$0xff]  ;;  %v10632_v63 = vld [vmem:[#allocation138_spill] sm:$0xff] }
 0x998   : > { %v9473_v21 = vadd.f32 %v9302_v62, %v10624_v10  ;;  %v9477_v27 = vadd.f32 %v9336_v15, %v10625_v13  ;;  %v9481_v8 = vadd.f32 %v9332_v38, %v10626_v33  ;;  %v9485_v12 = vadd.f32 %v9328_v43, %v10627_v49  ;;  %v10634_v55 = vld [vmem:[#allocation38_spill] sm:$0xff]  ;;  %v10635_v30 = vld [vmem:[#allocation141_spill] sm:$0xff]  ;;  %v10637_v14 = vld [vmem:[#allocation140_spill] sm:$0xff] }
 0x999   : > { %3331 = vxpose.xlu0.c.b16.end [8/8] %v3323_v36, 128  ;;  %v9489_v42 = vadd.f32 %v9324_v3, %v10628_v25  ;;  %v9493_v62 = vadd.f32 %v9358_v4, %v10629_v40  ;;  %v9497_v15 = vadd.f32 %v9354_v58, %v10630_v32  ;;  %v9501_v38 = vadd.f32 %v9350_v20, %v10631_v16  ;;  %v10636_v11 = vld [vmem:[#allocation142_spill] sm:$0xff]  ;;  %v10638_v60 = vld [vmem:[#allocation143_spill] sm:$0xff]  ;;  %v10639_v29 = vld [vmem:[#allocation144_spill] sm:$0xff] }
 0x99a   : > { %v9505_v43 = vadd.f32 %v9346_v18, %v10632_v63  ;;  %v9509_v3 = vadd.f32 %v9384_v41, %v10633_v31  ;;  %v9513_v4 = vadd.f32 %v9380_v2, %v10634_v55  ;;  %v9517_v58 = vadd.f32 %v9376_v24, %v10635_v30  ;;  %v10640_v7 = vld [vmem:[#allocation145_spill] sm:$0xff]  ;;  %v10644_v26 = vld [vmem:[#allocation146_spill] sm:$0xff]  ;;  %v10645_v36 = vld [vmem:[#allocation7_spill] sm:$0xff] }
 0x99b   : > { %2985 = vxpose.xlu1.c.b16.end [8/8] %v2977_v5, 128  ;;  %v9521_v20 = vadd.f32 %v9372_v52, %v10636_v11  ;;  %v9525_v18 = vadd.f32 %v9406_v44, %v10637_v14  ;;  %v9529_v41 = vadd.f32 %v9402_v34, %v10638_v60  ;;  %v9533_v2 = vadd.f32 %v9398_v28, %v10639_v29  ;;  %v10641_v51 = vld [vmem:[#allocation65_spill] sm:$0xff]  ;;  %v10642_v52 = vld [vmem:[#allocation71_spill] sm:$0xff]  ;;  %v10643_v44 = vld [vmem:[#allocation148_spill] sm:$0xff] }
 0x99c   : > { %v9537_v24 = vadd.f32 %v9394_v50, %v10640_v7  ;;  %v9540_v59 = vadd.f32 %v3232_v1, %v10641_v51  ;;  %v9543_v47 = vadd.f32 %v2886_v37, %v10642_v52  ;;  %v9546_v45 = vadd.f32 %v3233_v6, %v10643_v44  ;;  %v10646_v5 = vld [vmem:[#allocation76_spill] sm:$0xff]  ;;  %v10647_v50 = vld [vmem:[#allocation151_spill] sm:$0xff]  ;;  %v10648_v1 = vld [vmem:[#allocation150_spill] sm:$0xff] }
 0x99d   : > { %v9550_v34 = vadd.f32 %v9416_v39, %v10644_v26  ;;  %v9553_v28 = vadd.f32 %v3234_v35, %v10645_v36  ;;  %v9556_v57 = vadd.f32 %v2888_v53, %v10646_v5  ;;  %v9559_v0 = vadd.f32 %v3235_v56, %v10647_v50  ;;  %v10649_v37 = vld [vmem:[#allocation14_spill] sm:$0xff]  ;;  %v10650_v10 = vld [vmem:[#allocation129_spill] sm:$0xff]  ;;  %v10652_v49 = vld [vmem:[#allocation16_spill] sm:$0xff] }
 0x99e   : > { %v9562_v54 = vadd.f32 %v2889_v46, %v10648_v1  ;;  %v1625_v6 = vmul.f32 %v10650_v10, %v10649_v37  ;;  %v10651_v13 = vld [vmem:[#allocation13_spill] sm:$0xff]  ;;  %v1627_v35 = vmul.f32 %v10650_v10, %v10652_v49  ;;  %v10653_v25 = vld [vmem:[#allocation15_spill] sm:$0xff]  ;;  %v10654_v40 = vld [vmem:[#allocation18_spill] sm:$0xff] }
 0x99f   : > { %v1624_v33 = vmul.f32 %v10650_v10, %v10651_v13  ;;  %v1626_v56 = vmul.f32 %v10650_v10, %v10653_v25  ;;  %v1629_v32 = vmul.f32 %v10650_v10, %v10654_v40  ;;  %v10655_v63 = vld [vmem:[#allocation17_spill] sm:$0xff]  ;;  %v10656_v30 = vld [vmem:[#allocation20_spill] sm:$0xff]  ;;  %v10657_v60 = vld [vmem:[#allocation19_spill] sm:$0xff] }
 0x9a0   : > { %v1643_v39 = vsel %vm560_vm1, %v1625_v6, 0.0  ;;  %v1649_v46 = vsel %vm560_vm1, %v1627_v35, 0.0  ;;  %v1628_v31 = vmul.f32 %v10650_v10, %v10655_v63  ;;  %v1631_v11 = vmul.f32 %v10650_v10, %v10656_v30  ;;  %v10658_v51 = vld [vmem:[#allocation22_spill] sm:$0xff]  ;;  %v10659_v26 = vld [vmem:[#allocation21_spill] sm:$0xff]  ;;  %v10660_v50 = vld [vmem:[#allocation24_spill] sm:$0xff] }
 0x9a1   : > { %v1640_v53 = vsel %vm560_vm1, %v1624_v33, 0.0  ;;  %v1646_v16 = vsel %vm560_vm1, %v1626_v56, 0.0  ;;  %v1655_v55 = vsel %vm560_vm1, %v1629_v32, 0.0  ;;  %v1630_v29 = vmul.f32 %v10650_v10, %v10657_v60  ;;  %v10661_v6 = vld [vmem:[#allocation23_spill] sm:$0xff] }
 0x9a2   : > { %v1652_v14 = vsel %vm560_vm1, %v1628_v31, 0.0  ;;  %v1661_v7 = vsel %vm560_vm1, %v1631_v11, 0.0  ;;  %v1633_v52 = vmul.f32 %v10650_v10, %v10658_v51  ;;  %v1632_v36 = vmul.f32 %v10650_v10, %v10659_v26  ;;  %v6588_v11 = vld [vmem:[%s10002_s4] sm:$0xff]  }
 0x9a3   : > { %v1658_v44 = vsel %vm560_vm1, %v1630_v29, 0.0  ;;  %v1635_v1 = vmul.f32 %v10650_v10, %v10660_v50  ;;  %v1634_v13 = vmul.f32 %v10650_v10, %v10661_v6  ;;  %6158 = vmatprep.subr.bf16.mxu0 %v6588_v11 }
 0x9a4   : > { %v1667_v5 = vsel %vm560_vm1, %v1633_v52, 0.0  ;;  %v1664_v37 = vsel %vm560_vm1, %v1632_v36, 0.0 }
 0x9a5   : > { %v1673_v33 = vsel %vm560_vm1, %v1635_v1, 0.0  ;;  %v1670_v35 = vsel %vm560_vm1, %v1634_v13, 0.0 }
 0x9a6   : > { %1644 = vadd.xlane.f32.xlu0 %v1643_v39  ;;  %v10662_v39 = vld [vmem:[#allocation26_spill] sm:$0xff] }
 0x9a7   : > { %v1637_v49 = vmul.f32 %v10650_v10, %v10662_v39 }
 0x9a8   : > { %1641 = vadd.xlane.f32.xlu1 %v1640_v53  ;;  %v10663_v53 = vld [vmem:[#allocation25_spill] sm:$0xff] }
 0x9a9   : > { %v1636_v25 = vmul.f32 %v10650_v10, %v10663_v53  ;;  %v1679_v56 = vsel %vm560_vm1, %v1637_v49, 0.0 }
 0x9aa   : > { %1650 = vadd.xlane.f32.xlu0 %v1649_v46  ;;  %v10664_v46 = vld [vmem:[#allocation28_spill] sm:$0xff] }
 0x9ab   : > { %v1639_v40 = vmul.f32 %v10650_v10, %v10664_v46  ;;  %v1676_v32 = vsel %vm560_vm1, %v1636_v25, 0.0 }
 0x9ac   : > { %1647 = vadd.xlane.f32.xlu1 %v1646_v16  ;;  %v10665_v16 = vld [vmem:[#allocation27_spill] sm:$0xff] }
 0x9ad   : > { %v1638_v63 = vmul.f32 %v10650_v10, %v10665_v16  ;;  %v1685_v31 = vsel %vm560_vm1, %v1639_v40, 0.0  ;;  %v6589_v10 = vld [vmem:[%s10002_s4 + $0x8] sm:$0xff]  }
 0x9ae   : > { %1656 = vadd.xlane.f32.xlu0 %v1655_v55 }
 0x9af   : > { %v1682_v55 = vsel %vm560_vm1, %v1638_v63, 0.0  ;;  %vm2752_vm1 = vcmask 0  }
 0x9b0   : > { %1653 = vadd.xlane.f32.xlu1 %v1652_v14 }
 0x9b2   : > { %1662 = vadd.xlane.f32.xlu0 %v1661_v7 }
 0x9b4   : > { %1659 = vadd.xlane.f32.xlu1 %v1658_v44 }
 0x9b6   : > { %1668 = vadd.xlane.f32.xlu0 %v1667_v5 }
 0x9b8   : > { %1665 = vadd.xlane.f32.xlu1 %v1664_v37 }
 0x9ba   : > { %1674 = vadd.xlane.f32.xlu0 %v1673_v33 }
 0x9bc   : > { %1671 = vadd.xlane.f32.xlu1 %v1670_v35 }
 0x9be   : > { %1680 = vadd.xlane.f32.xlu0 %v1679_v56 }
 0x9c0   : > { %1677 = vadd.xlane.f32.xlu1 %v1676_v32 }
 0x9c2   : > { %1686 = vadd.xlane.f32.xlu0 %v1685_v31 }
 0x9c4   : > { %1683 = vadd.xlane.f32.xlu1 %v1682_v55 }
 0x9e3   : > { %v3332_v30 = vpop.trf.xlu0 }
 0x9e4   : > { %6142 = vmatprep.mubr.bf16.mxu1 %v3332_v30 }
 0x9e5   : > { %v2986_v14 = vpop.trf.xlu1 }
 0x9e6   : > { %6110 = vmatprep.mubr.bf16.mxu0 %v2986_v14 }
 0x9e7   : > { %v3333_v60 = vpop.trf.xlu0 }
 0x9e8   : > { %6143 = vmatmul.mubr.bf16.vlgmr.msra.gmra.mrb[0].mxu1 %v3333_v60 }
 0x9e9   : > { %v2987_v29 = vpop.trf.xlu1 }
 0x9ea   : > { %6111 = vmatmul.mubr.bf16.vlgmr.msra.gmra.mrb[32].mxu0 %v2987_v29 }
 0x9eb   : > { %v3334_v7 = vpop.trf.xlu0  ;;  %6159 = vmatpush3.bf16.msra.mxu0 %v6588_v11 }
 0x9ec   : > { %6160 = vmatprep.subr.bf16.mxu0 %v6589_v10  ;;  %6146 = vmatprep.mubr.bf16.mxu1 %v3334_v7 }
 0x9ed   : > { %v2988_v51 = vpop.trf.xlu1 }
 0x9ee   : > { %6114 = vmatprep.mubr.bf16.mxu0 %v2988_v51 }
 0x9ef   : > { %v3335_v52 = vpop.trf.xlu0  ;;  %6161 = vmatpush3.bf16.msra.mxu0 %v6589_v10 }
 0x9f0   : > { %6147 = vmatmul.mubr.bf16.gmra.mrb[4].mxu1 %v3335_v52 }
 0x9f1   : > { %v2989_v44 = vpop.trf.xlu1 }
 0x9f2   : > { %6115 = vmatmul.mubr.bf16.gmra.mrb[36].mxu0 %v2989_v44  ;;  %v6590_v44 = vld [vmem:[%s10002_s4 + $0x10] sm:$0xff]  }
 0x9f3   : > { %v3336_v26 = vpop.trf.xlu0  ;;  %6186 = vmatprep.subr.bf16.mxu0 %v6590_v44 }
 0x9f4   : > { %6150 = vmatprep.mubr.bf16.mxu1 %v3336_v26 }
 0x9f5   : > { %v2990_v36 = vpop.trf.xlu1 }
 0x9f6   : > { %6118 = vmatprep.mubr.bf16.mxu0 %v2990_v36 }
 0x9f7   : > { %v3337_v5 = vpop.trf.xlu0 }
 0x9f8   : > { %6151 = vmatmul.mubr.bf16.gmra.mrb[8].mxu1 %v3337_v5 }
 0x9f9   : > { %v2991_v50 = vpop.trf.xlu1 }
 0x9fa   : > { %6119 = vmatmul.mubr.bf16.gmra.mrb[40].mxu0 %v2991_v50 }
 0x9fb   : > { %v3338_v1 = vpop.trf.xlu0 }
 0x9fc   : > { %6154 = vmatprep.mubr.bf16.mxu1 %v3338_v1 }
 0x9fd   : > { %v2992_v37 = vpop.trf.xlu1 }
 0x9fe   : > { %6122 = vmatprep.mubr.bf16.mxu0 %v2992_v37 }
 0x9ff   : > { %v3339_v6 = vpop.trf.xlu0 }
 0xa00   : > { %6155 = vmatmul.mubr.bf16.gmra.mrb[12].mxu1 %v3339_v6 }
 0xa01   : > { %v2993_v13 = vpop.trf.xlu1 }
 0xa02   : > { %6123 = vmatmul.mubr.bf16.gmra.mrb[44].mxu0 %v2993_v13 }
 0xa33   : > { %v1645_v33 = vpop.xlane.xlu0 %1644 }
 0xa35   : > { %v1642_v39 = vpop.xlane.xlu1 %1641 }
 0xa36   : > { %v1688_v35 = vadd.f32 %v1645_v33, %v1642_v39  ;;  %v6592_v33 = vld [vmem:[%s10003_s5] sm:$0xff]   ;;  %v6593_v39 = vld [vmem:[%s10003_s5 + $0x8] sm:$0xff]  }
 0xa37   : > { %v1651_v49 = vpop.xlane.xlu0 %1650  ;;  %6166 = vmatprep.subr.bf16.mxu1 %v6592_v33 }
 0xa38   : > { %6167 = vmatpush3.bf16.msra.mxu1 %v6592_v33 }
 0xa39   : > { %v1648_v53 = vpop.xlane.xlu1 %1647  ;;  %6168 = vmatprep.subr.bf16.mxu1 %v6593_v39 }
 0xa3a   : > { %v1689_v25 = vadd.f32 %v1688_v35, %v1648_v53  ;;  %v6594_v53 = vld [vmem:[%s10003_s5 + $0x10] sm:$0xff]  }
 0xa3b   : > { %v1657_v56 = vpop.xlane.xlu0 %1656 }
 0xa3c   : > { %v1690_v46 = vadd.f32 %v1689_v25, %v1651_v49  ;;  %6169 = vmatpush3.bf16.msra.mxu1 %v6593_v39 }
 0xa3d   : > { %v1654_v40 = vpop.xlane.xlu1 %1653  ;;  %6170 = vmatprep.subr.bf16.mxu1 %v6594_v53 }
 0xa3e   : > { %v1691_v32 = vadd.f32 %v1690_v46, %v1654_v40  ;;  %v6596_v46 = vld [vmem:[%s10003_s5 + $0x18] sm:$0xff]  }
 0xa3f   : > { %v1663_v16 = vpop.xlane.xlu0 %1662 }
 0xa40   : > { %v1692_v63 = vadd.f32 %v1691_v32, %v1657_v56  ;;  %6171 = vmatpush3.bf16.msra.mxu1 %v6594_v53 }
 0xa41   : > { %v1660_v31 = vpop.xlane.xlu1 %1659  ;;  %6172 = vmatprep.subr.bf16.mxu1 %v6596_v46 }
 0xa42   : > { %v1693_v55 = vadd.f32 %v1692_v63, %v1660_v31  ;;  %v6600_v31 = vld [vmem:[%s10003_s5 + $0x28] sm:$0xff]  }
 0xa43   : > { %v1669_v30 = vpop.xlane.xlu0 %1668 }
 0xa44   : > { %v1694_v11 = vadd.f32 %v1693_v55, %v1663_v16  ;;  %v6598_v16 = vld [vmem:[%s10003_s5 + $0x20] sm:$0xff]   ;;  %6173 = vmatpush3.bf16.msra.mxu1 %v6596_v46 }
 0xa45   : > { %v1666_v14 = vpop.xlane.xlu1 %1665  ;;  %6174 = vmatprep.subr.bf16.mxu1 %v6598_v16 }
 0xa46   : > { %v1695_v60 = vadd.f32 %v1694_v11, %v1666_v14 }
 0xa47   : > { %v1675_v10 = vpop.xlane.xlu0 %1674 }
 0xa48   : > { %v1696_v29 = vadd.f32 %v1695_v60, %v1669_v30  ;;  %6175 = vmatpush3.bf16.msra.mxu1 %v6598_v16 }
 0xa49   : > { %v1672_v7 = vpop.xlane.xlu1 %1671  ;;  %6176 = vmatprep.subr.bf16.mxu1 %v6600_v31 }
 0xa4a   : > { %v1697_v51 = vadd.f32 %v1696_v29, %v1672_v7 }
 0xa4b   : > { %v1681_v26 = vpop.xlane.xlu0 %1680 }
 0xa4c   : > { %v1698_v52 = vadd.f32 %v1697_v51, %v1675_v10  ;;  %6177 = vmatpush3.bf16.msra.mxu1 %v6600_v31 }
 0xa4d   : > { %v1678_v36 = vpop.xlane.xlu1 %1677 }
 0xa4e   : > { %v1699_v5 = vadd.f32 %v1698_v52, %v1678_v36 }
 0xa4f   : > { %v1687_v6 = vpop.xlane.xlu0 %1686 }
 0xa50   : > { %v1700_v50 = vadd.f32 %v1699_v5, %v1681_v26 }
 0xa51   : > { %v1684_v1 = vpop.xlane.xlu1 %1683 }
 0xa52   : > { %v1701_v37 = vadd.f32 %v1700_v50, %v1684_v1  ;;  %v6591_v50 = vld [vmem:[%s10002_s4 + $0x18] sm:$0xff]  }
 0xa54   : > { %v1702_v13 = vadd.f32 %v1701_v37, %v1687_v6 }
 0xa56   : > { %v1703_v49 = vrot.slane %v1702_v13, 4 }
 0xa58   : > { %v1704_v35 = vadd.f32 %v1703_v49, %v1702_v13  ;;  %v6595_v13 = vld [vmem:[%s10003_s5 + $0x40] sm:$0xff]  }
 0xa5a   : > { %v1705_v25 = vrot.slane %v1704_v35, 2 }
 0xa5c   : > { %v1706_v56 = vadd.f32 %v1705_v25, %v1704_v35 }
 0xa5e   : > { %v1707_v40 = vrot.slane %v1706_v56, 1 }
 0xa60   : > { %v1708_v32 = vadd.f32 %v1707_v40, %v1706_v56  ;;  %v6599_v40 = vld [vmem:[%s10003_s5 + $0x50] sm:$0xff]  }
 0xa62   : > { %v1709_v63 = vmul.f32 6.1035156e-05, %v1708_v32 }
 0xa64   : > { %2753 = vst.msk [vmem:[%s312_s15] sm:$0x1] %vm2752_vm1, %v1709_v63  ;;  %s9961_s15 = scalar_lea.vmem %s10004_s6, %s6839_s12 }
 0xabd   : > { %v6112_v55 = vpop.f32.mrb[32].mxu0 }
 0xabe   : > { %v3028_v30 = vpop.f32.mrb[33].mxu0 }
 0xabf   : > { %v6113_v11 = vpop.f32.mrb[34].mxu0 }
 0xac0   : > { %v3092_v14 = vpack.c.bf16 %v6113_v11, %v6112_v55  ;;  %v3031_v60 = vpop.f32.mrb[35].mxu0  ;;  %v6601_v55 = vld [vmem:[%s10003_s5 + $0x58] sm:$0xff]   ;;  %v6603_v11 = vld [vmem:[%s10003_s5 + $0x60] sm:$0xff]  }
 0xac1   : > { %v3091_v10 = vpack.c.bf16 %v3031_v60, %v3028_v30  ;;  %v6602_v30 = vld [vmem:[%s10003_s5 + $0x30] sm:$0xff]   ;;  %v6605_v60 = vld [vmem:[%s10003_s5 + $0x68] sm:$0xff]  }
 0xac2   : > { %3100 = vst.msk [vmem:[#allocation2 + $0x8] sm:$0xff] %vm366_vm0, %v3092_v14  ;;  %6178 = vmatprep.subr.bf16.mxu1 %v6602_v30  ;;  %v6604_v14 = vld [vmem:[%s10003_s5 + $0x38] sm:$0xff]  }
 0xac3   : > { %3099 = vst.msk [vmem:[#allocation2] sm:$0xff] %vm366_vm0, %v3091_v10  ;;  %6179 = vmatpush3.bf16.msra.mxu1 %v6602_v30  ;;  %v6606_v10 = vld [vmem:[%s10003_s5 + $0x70] sm:$0xff]  }
 0xac4   : > { %6180 = vmatprep.subr.bf16.mxu1 %v6604_v14 }
 0xac5   : > { %v6116_v29 = vpop.f32.mrb[36].mxu0 }
 0xac6   : > { %v3044_v7 = vpop.f32.mrb[37].mxu0 }
 0xac7   : > { %v6117_v51 = vpop.f32.mrb[38].mxu0  ;;  %6181 = vmatpush3.bf16.msra.mxu1 %v6604_v14 }
 0xac8   : > { %v3094_v52 = vpack.c.bf16 %v6117_v51, %v6116_v29  ;;  %v3047_v26 = vpop.f32.mrb[39].mxu0  ;;  %v6607_v29 = vld [vmem:[%s10002_s4 + $0x20] sm:$0xff]   ;;  %v9695_v51 = vld [vmem:[%s10002_s4 + $0x30] sm:$0xff]  }
 0xac9   : > { %v3093_v36 = vpack.c.bf16 %v3047_v26, %v3044_v7  ;;  %v3454_v1 = vld [vmem:[#allocation2 + $0x8] sm:$0xff]  ;;  %6214 = vmatprep.subr.bf16.mxu1 %v6607_v29  ;;  %v6608_v7 = vld [vmem:[%s10003_s5 + $0x78] sm:$0xff]  }
 0xaca   : > { %3102 = vst.msk [vmem:[#allocation2 + $0x18] sm:$0xff] %vm366_vm0, %v3094_v52  ;;  %v3453_v5 = vld [vmem:[#allocation2] sm:$0xff]  ;;  %v6144_v52 = vpop.f32.mrb[0].mxu1 }
 0xacb   : > { %3101 = vst.msk [vmem:[#allocation2 + $0x10] sm:$0xff] %vm366_vm0, %v3093_v36  ;;  %6162 = vmatprep.mubr.msk.bf16.mxu0 %vm366_vm0, %v3453_v5  ;;  %v3374_v26 = vpop.f32.mrb[1].mxu1 }
 0xacc   : > { %6163 = vmatmul.mubr.msk.bf16.vlgmr.msra.gmra.mrb[48].mxu0 %vm366_vm0, %v3454_v1  ;;  %v6145_v36 = vpop.f32.mrb[2].mxu1 }
 0xacd   : > { %6187 = vmatpush3.bf16.msra.mxu0 %v6590_v44  ;;  %v6120_v37 = vpop.f32.mrb[40].mxu0  ;;  %v6597_v44 = vld [vmem:[%s10003_s5 + $0x48] sm:$0xff]   ;;  %v3438_v5 = vpack.c.bf16 %v6145_v36, %v6144_v52 }
 0xace   : > { %6188 = vmatprep.subr.bf16.mxu0 %v6591_v50  ;;  %v3060_v6 = vpop.f32.mrb[41].mxu0 }
 0xacf   : > { %v6121_v33 = vpop.f32.mrb[42].mxu0  ;;  %3446 = vst.msk [vmem:[#allocation2 + $0x48] sm:$0xff] %vm366_vm0, %v3438_v5 }
 0xad0   : > { %v3096_v39 = vpack.c.bf16 %v6121_v33, %v6120_v37  ;;  %v3063_v49 = vpop.f32.mrb[43].mxu0 }
 0xad1   : > { %6189 = vmatpush3.bf16.msra.mxu0 %v6591_v50  ;;  %v3095_v35 = vpack.c.bf16 %v3063_v49, %v3060_v6  ;;  %v3650_v25 = vld [vmem:[#allocation2 + $0x18] sm:$0xff]  ;;  %v3377_v50 = vpop.f32.mrb[3].mxu1 }
 0xad2   : > { %v3649_v53 = vld [vmem:[#allocation2 + $0x10] sm:$0xff]  ;;  %3104 = vst.msk [vmem:[#allocation2 + $0x28] sm:$0xff] %vm366_vm0, %v3096_v39  ;;  %6194 = vmatprep.subr.bf16.mxu0 %v6595_v13  ;;  %v3437_v1 = vpack.c.bf16 %v3377_v50, %v3374_v26  ;;  %v6148_v37 = vpop.f32.mrb[4].mxu1  ;;  %v6609_v50 = vld [vmem:[%s10002_s4 + $0x28] sm:$0xff]  }
 0xad3   : > { %6190 = vmatprep.mubr.msk.bf16.mxu0 %vm366_vm0, %v3649_v53  ;;  %3103 = vst.msk [vmem:[#allocation2 + $0x20] sm:$0xff] %vm366_vm0, %v3095_v35  ;;  %v3390_v6 = vpop.f32.mrb[5].mxu1 }
 0xad4   : > { %6191 = vmatmul.mubr.msk.bf16.vlgmr.msra.gmra.mrb[52].mxu0 %vm366_vm0, %v3650_v25  ;;  %3445 = vst.msk [vmem:[#allocation2 + $0x40] sm:$0xff] %vm366_vm0, %v3437_v1 }
 0xad5   : > { %6195 = vmatpush3.bf16.msra.mxu0 %v6595_v13  ;;  %v6124_v56 = vpop.f32.mrb[44].mxu0  ;;  %v6149_v13 = vpop.f32.mrb[6].mxu1 }
 0xad6   : > { %6196 = vmatprep.subr.bf16.mxu0 %v6597_v44  ;;  %v3076_v46 = vpop.f32.mrb[45].mxu0  ;;  %v3440_v33 = vpack.c.bf16 %v6149_v13, %v6148_v37  ;;  %v3393_v39 = vpop.f32.mrb[7].mxu1 }
 0xad7   : > { %v6125_v32 = vpop.f32.mrb[46].mxu0  ;;  %v3439_v49 = vpack.c.bf16 %v3393_v39, %v3390_v6  ;;  %v6152_v35 = vpop.f32.mrb[8].mxu1 }
 0xad8   : > { %v3098_v16 = vpack.c.bf16 %v6125_v32, %v6124_v56  ;;  %v3079_v63 = vpop.f32.mrb[47].mxu0  ;;  %3448 = vst.msk [vmem:[#allocation2 + $0x58] sm:$0xff] %vm366_vm0, %v3440_v33  ;;  %v3406_v53 = vpop.f32.mrb[9].mxu1 }
 0xad9   : > { %6197 = vmatpush3.bf16.msra.mxu0 %v6597_v44  ;;  %v3097_v31 = vpack.c.bf16 %v3079_v63, %v3076_v46  ;;  %3447 = vst.msk [vmem:[#allocation2 + $0x50] sm:$0xff] %vm366_vm0, %v3439_v49  ;;  %v6153_v44 = vpop.f32.mrb[10].mxu1 }
 0xada   : > { %3106 = vst.msk [vmem:[#allocation2 + $0x38] sm:$0xff] %vm366_vm0, %v3098_v16  ;;  %6198 = vmatprep.subr.bf16.mxu0 %v6599_v40  ;;  %v3442_v25 = vpack.c.bf16 %v6153_v44, %v6152_v35  ;;  %v3409_v56 = vpop.f32.mrb[11].mxu1  ;;  %v3847_v6 = vld [vmem:[#allocation2 + $0x20] sm:$0xff] }
 0xadb   : > { %3105 = vst.msk [vmem:[#allocation2 + $0x30] sm:$0xff] %vm366_vm0, %v3097_v31  ;;  %v3441_v46 = vpack.c.bf16 %v3409_v56, %v3406_v53  ;;  %v6612_v35 = vld [vmem:[%s10003_s5 + $0x80] sm:$0xff]  }
 0xadc   : > { %3450 = vst.msk [vmem:[#allocation2 + $0x68] sm:$0xff] %vm366_vm0, %v3442_v25 }
 0xadd   : > { %6199 = vmatpush3.bf16.msra.mxu0 %v6599_v40  ;;  %v6156_v40 = vpop.f32.mrb[12].mxu1  ;;  %3449 = vst.msk [vmem:[#allocation2 + $0x60] sm:$0xff] %vm366_vm0, %v3441_v46  ;;  %v6611_v46 = vld [vmem:[%s10002_s4 + $0x38] sm:$0xff]  }
 0xade   : > { %6200 = vmatprep.subr.bf16.mxu0 %v6601_v55  ;;  %v3422_v32 = vpop.f32.mrb[13].mxu1 }
 0xadf   : > { %v6157_v16 = vpop.f32.mrb[14].mxu1 }
 0xae0   : > { %v3444_v63 = vpack.c.bf16 %v6157_v16, %v6156_v40  ;;  %v3425_v31 = vpop.f32.mrb[15].mxu1  ;;  %v6613_v40 = vld [vmem:[%s10003_s5 + $0x88] sm:$0xff]   ;;  %v6615_v16 = vld [vmem:[%s10003_s5 + $0xc0] sm:$0xff]  }
 0xae1   : > { %6201 = vmatpush3.bf16.msra.mxu0 %v6601_v55  ;;  %v3443_v55 = vpack.c.bf16 %v3425_v31, %v3422_v32  ;;  %v4046_v31 = vld [vmem:[#allocation2 + $0x38] sm:$0xff] }
 0xae2   : > { %6202 = vmatprep.subr.bf16.mxu0 %v6603_v11  ;;  %3452 = vst.msk [vmem:[#allocation2 + $0x78] sm:$0xff] %vm366_vm0, %v3444_v63  ;;  %v4045_v32 = vld [vmem:[#allocation2 + $0x30] sm:$0xff] }
 0xae3   : > { %3451 = vst.msk [vmem:[#allocation2 + $0x70] sm:$0xff] %vm366_vm0, %v3443_v55  ;;  %v6614_v63 = vld [vmem:[%s10003_s5 + $0x90] sm:$0xff]   ;;  %v6616_v55 = vld [vmem:[%s10003_s5 + $0x98] sm:$0xff]  }
 0xae5   : > { %6203 = vmatpush3.bf16.msra.mxu0 %v6603_v11 }
 0xae6   : > { %6204 = vmatprep.subr.bf16.mxu0 %v6605_v60 }
 0xae9   : > { %6205 = vmatpush3.bf16.msra.mxu0 %v6605_v60 }
 0xaea   : > { %6206 = vmatprep.subr.bf16.mxu0 %v6606_v10 }
 0xaed   : > { %6207 = vmatpush3.bf16.msra.mxu0 %v6606_v10 }
 0xaee   : > { %6208 = vmatprep.subr.bf16.mxu0 %v6608_v7 }
 0xaf1   : > { %6209 = vmatpush3.bf16.msra.mxu0 %v6608_v7 }
 0xaf2   : > { %6242 = vmatprep.subr.bf16.mxu0 %v9695_v51 }
 0xb9f   : > { %v6164_v30 = vpop.f32.mrb[48].mxu0 }
 0xba0   : > { %v3511_v11 = vpop.f32.mrb[49].mxu0  ;;  %v3528_v60 = vmax.f32 %v6164_v30, 0.0  ;;  %v6618_v30 = vld [vmem:[%s10003_s5 + $0xa0] sm:$0xff]  }
 0xba1   : > { %v6165_v14 = vpop.f32.mrb[50].mxu0  ;;  %v3526_v52 = vmax.f32 %v3511_v11, 0.0  ;;  %v6619_v11 = vld [vmem:[%s10003_s5 + $0xd0] sm:$0xff]  }
 0xba2   : > { %v3529_v10 = vmax.f32 %v6165_v14, 0.0  ;;  %v3514_v7 = vpop.f32.mrb[51].mxu0  ;;  %v6620_v14 = vld [vmem:[%s10003_s5 + $0xa8] sm:$0xff]  }
 0xba3   : > { %v3527_v26 = vmax.f32 %v3514_v7, 0.0  ;;  %v6623_v7 = vld [vmem:[%s10003_s5 + $0xe0] sm:$0xff]  }
 0xba4   : > { %v3531_v36 = vpack.c.bf16 %v3529_v10, %v3528_v60  ;;  %v6621_v60 = vld [vmem:[%s10003_s5 + $0xd8] sm:$0xff]   ;;  %v6622_v10 = vld [vmem:[%s10003_s5 + $0xb0] sm:$0xff]  }
 0xba5   : > { %v3530_v5 = vpack.c.bf16 %v3527_v26, %v3526_v52  ;;  %v6624_v52 = vld [vmem:[%s10003_s5 + $0xb8] sm:$0xff]   ;;  %v6625_v26 = vld [vmem:[%s10003_s5 + $0xe8] sm:$0xff]  }
 0xba7   : > { %6182 = vmatprep.mubr.bf16.mxu1 %v3530_v5  ;;  %v6192_v1 = vpop.f32.mrb[52].mxu0  ;;  %v6627_v5 = vld [vmem:[%s10002_s4 + $0x40] sm:$0xff]  }
 0xba8   : > { %6183 = vmatmul.mubr.bf16.vlgmr.msra.gmra.mrb[16].mxu1 %v3531_v36  ;;  %v3708_v37 = vpop.f32.mrb[53].mxu0  ;;  %v3725_v33 = vmax.f32 %v6192_v1, 0.0  ;;  %v6626_v36 = vld [vmem:[%s10003_s5 + $0xf0] sm:$0xff]  }
 0xba9   : > { %v6193_v13 = vpop.f32.mrb[54].mxu0  ;;  %6215 = vmatpush3.bf16.msra.mxu1 %v6607_v29  ;;  %6218 = vmatprep.mubr.msk.bf16.mxu1 %vm366_vm0, %v3847_v6  ;;  %v3723_v53 = vmax.f32 %v3708_v37, 0.0  ;;  %v3848_v29 = vld [vmem:[#allocation2 + $0x28] sm:$0xff]  ;;  %v6630_v1 = vld [vmem:[%s10002_s4 + $0x50] sm:$0xff]  }
 0xbaa   : > { %v3726_v39 = vmax.f32 %v6193_v13, 0.0  ;;  %v3711_v49 = vpop.f32.mrb[55].mxu0  ;;  %6216 = vmatprep.subr.bf16.mxu1 %v6609_v50 }
 0xbab   : > { %v3724_v44 = vmax.f32 %v3711_v49, 0.0 }
 0xbac   : > { %v3728_v25 = vpack.c.bf16 %v3726_v39, %v3725_v33 }
 0xbad   : > { %v3727_v56 = vpack.c.bf16 %v3724_v44, %v3723_v53  ;;  %6217 = vmatpush3.bf16.msra.mxu1 %v6609_v50  ;;  %v6628_v50 = vld [vmem:[%s10003_s5 + $0xf8] sm:$0xff]  }
 0xbae   : > { %6222 = vmatprep.subr.bf16.mxu1 %v6612_v35 }
 0xbaf   : > { %6210 = vmatprep.mubr.bf16.mxu0 %v3727_v56 }
 0xbb0   : > { %6211 = vmatmul.mubr.bf16.vlgmr.msra.gmra.mrb[56].mxu0 %v3728_v25  ;;  %6219 = vmatmul.mubr.msk.bf16.vlgmr.msra.gmra.mrb[20].mxu1 %vm366_vm0, %v3848_v29 }
 0xbb1   : > { %6243 = vmatpush3.bf16.msra.mxu0 %v9695_v51  ;;  %6246 = vmatprep.mubr.msk.bf16.mxu0 %vm366_vm0, %v4045_v32  ;;  %v6617_v51 = vld [vmem:[%s10003_s5 + $0xc8] sm:$0xff]  }
 0xbb2   : > { %6244 = vmatprep.subr.bf16.mxu0 %v6611_v46  ;;  %6223 = vmatpush3.bf16.msra.mxu1 %v6612_v35 }
 0xbb3   : > { %6224 = vmatprep.subr.bf16.mxu1 %v6613_v40 }
 0xbb5   : > { %6245 = vmatpush3.bf16.msra.mxu0 %v6611_v46 }
 0xbb6   : > { %6225 = vmatpush3.bf16.msra.mxu1 %v6613_v40  ;;  %6250 = vmatprep.subr.bf16.mxu0 %v6615_v16 }
 0xbb7   : > { %6226 = vmatprep.subr.bf16.mxu1 %v6614_v63 }
 0xbb8   : > { %6247 = vmatmul.mubr.msk.bf16.vlgmr.msra.gmra.mrb[60].mxu0 %vm366_vm0, %v4046_v31  ;;  %v6629_v31 = vld [vmem:[%s10002_s4 + $0x48] sm:$0xff]  }
 0xbb9   : > { %6251 = vmatpush3.bf16.msra.mxu0 %v6615_v16 }
 0xbba   : > { %6227 = vmatpush3.bf16.msra.mxu1 %v6614_v63  ;;  %6252 = vmatprep.subr.bf16.mxu0 %v6617_v51 }
 0xbbb   : > { %6228 = vmatprep.subr.bf16.mxu1 %v6616_v55 }
 0xbbd   : > { %6253 = vmatpush3.bf16.msra.mxu0 %v6617_v51 }
 0xbbe   : > { %6229 = vmatpush3.bf16.msra.mxu1 %v6616_v55  ;;  %6254 = vmatprep.subr.bf16.mxu0 %v6619_v11 }
 0xbbf   : > { %6230 = vmatprep.subr.bf16.mxu1 %v6618_v30 }
 0xbc1   : > { %6255 = vmatpush3.bf16.msra.mxu0 %v6619_v11  ;;  %v4243_v11 = vld [vmem:[#allocation2 + $0x40] sm:$0xff] }
 0xbc2   : > { %6231 = vmatpush3.bf16.msra.mxu1 %v6618_v30  ;;  %6256 = vmatprep.subr.bf16.mxu0 %v6621_v60 }
 0xbc3   : > { %6232 = vmatprep.subr.bf16.mxu1 %v6620_v14 }
 0xbc5   : > { %6257 = vmatpush3.bf16.msra.mxu0 %v6621_v60 }
 0xbc6   : > { %6233 = vmatpush3.bf16.msra.mxu1 %v6620_v14  ;;  %6258 = vmatprep.subr.bf16.mxu0 %v6623_v7 }
 0xbc7   : > { %6234 = vmatprep.subr.bf16.mxu1 %v6622_v10 }
 0xbc9   : > { %6259 = vmatpush3.bf16.msra.mxu0 %v6623_v7 }
 0xbca   : > { %6235 = vmatpush3.bf16.msra.mxu1 %v6622_v10  ;;  %6260 = vmatprep.subr.bf16.mxu0 %v6625_v26 }
 0xbcb   : > { %6236 = vmatprep.subr.bf16.mxu1 %v6624_v52 }
 0xbcd   : > { %6261 = vmatpush3.bf16.msra.mxu0 %v6625_v26 }
 0xbce   : > { %6237 = vmatpush3.bf16.msra.mxu1 %v6624_v52  ;;  %6262 = vmatprep.subr.bf16.mxu0 %v6626_v36  ;;  %v6632_v52 = vld [vmem:[%s10003_s5 + $0x100] sm:$0xff]  }
 0xbcf   : > { %6270 = vmatprep.subr.bf16.mxu1 %v6627_v5 }
 0xbd1   : > { %6263 = vmatpush3.bf16.msra.mxu0 %v6626_v36 }
 0xbd2   : > { %6264 = vmatprep.subr.bf16.mxu0 %v6628_v50 }
 0xbd5   : > { %6265 = vmatpush3.bf16.msra.mxu0 %v6628_v50 }
 0xbd6   : > { %6298 = vmatprep.subr.bf16.mxu0 %v6630_v1 }
 0xc7b   : > { %v6184_v37 = vpop.f32.mrb[16].mxu1 }
 0xc7c   : > { %3647 = vst.msk [vmem:[#allocation3 + $0x10] sm:$0xff] %vm366_vm0, %v6184_v37  ;;  %v3630_v6 = vpop.f32.mrb[17].mxu1 }
 0xc7d   : > { %3645 = vst.msk [vmem:[#allocation3] sm:$0xff] %vm366_vm0, %v3630_v6  ;;  %v6185_v13 = vpop.f32.mrb[18].mxu1  ;;  %v6631_v6 = vld [vmem:[%s10002_s4 + $0x58] sm:$0xff]  }
 0xc7e   : > { %3648 = vst.msk [vmem:[#allocation3 + $0x18] sm:$0xff] %vm366_vm0, %v6185_v13  ;;  %v3633_v33 = vpop.f32.mrb[19].mxu1  ;;  %v6633_v13 = vld [vmem:[%s10003_s5 + $0x108] sm:$0xff]  }
 0xc7f   : > { %3646 = vst.msk [vmem:[#allocation3 + $0x8] sm:$0xff] %vm366_vm0, %v3633_v33  ;;  %v4441_v33 = vld [vmem:[#allocation2 + $0x50] sm:$0xff] }
 0xc83   : > { %v6212_v39 = vpop.f32.mrb[56].mxu0  ;;  %v6220_v49 = vpop.f32.mrb[20].mxu1 }
 0xc84   : > { %3845 = vst.msk [vmem:[#allocation3 + $0x30] sm:$0xff] %vm366_vm0, %v6212_v39  ;;  %v3828_v35 = vpop.f32.mrb[57].mxu0  ;;  %v3906_v53 = vpop.f32.mrb[21].mxu1  ;;  %v3923_v56 = vmax.f32 %v6220_v49, 0.0  ;;  %v6635_v39 = vld [vmem:[%s10003_s5 + $0x140] sm:$0xff]   ;;  %v6634_v49 = vld [vmem:[%s10003_s5 + $0x110] sm:$0xff]  }
 0xc85   : > { %3843 = vst.msk [vmem:[#allocation3 + $0x20] sm:$0xff] %vm366_vm0, %v3828_v35  ;;  %v6213_v44 = vpop.f32.mrb[58].mxu0  ;;  %v6221_v25 = vpop.f32.mrb[22].mxu1  ;;  %v3921_v32 = vmax.f32 %v3906_v53, 0.0  ;;  %v4442_v35 = vld [vmem:[#allocation2 + $0x58] sm:$0xff] }
 0xc86   : > { %3846 = vst.msk [vmem:[#allocation3 + $0x38] sm:$0xff] %vm366_vm0, %v6213_v44  ;;  %v3924_v46 = vmax.f32 %v6221_v25, 0.0  ;;  %v3831_v29 = vpop.f32.mrb[59].mxu0  ;;  %v3909_v40 = vpop.f32.mrb[23].mxu1  ;;  %v6636_v53 = vld [vmem:[%s10003_s5 + $0x118] sm:$0xff]   ;;  %v6638_v44 = vld [vmem:[%s10003_s5 + $0x120] sm:$0xff]  }
 0xc87   : > { %3844 = vst.msk [vmem:[#allocation3 + $0x28] sm:$0xff] %vm366_vm0, %v3831_v29  ;;  %v3922_v16 = vmax.f32 %v3909_v40, 0.0  ;;  %v6639_v25 = vld [vmem:[%s10003_s5 + $0x150] sm:$0xff]   ;;  %v6643_v40 = vld [vmem:[%s10003_s5 + $0x160] sm:$0xff]  }
 0xc88   : > { %v3926_v63 = vpack.c.bf16 %v3924_v46, %v3923_v56  ;;  %v6640_v56 = vld [vmem:[%s10003_s5 + $0x128] sm:$0xff]   ;;  %v6641_v46 = vld [vmem:[%s10003_s5 + $0x158] sm:$0xff]   ;;  %v6642_v29 = vld [vmem:[%s10003_s5 + $0x130] sm:$0xff]  }
 0xc89   : > { %v3925_v51 = vpack.c.bf16 %v3922_v16, %v3921_v32  ;;  %v6644_v32 = vld [vmem:[%s10003_s5 + $0x138] sm:$0xff]   ;;  %v6645_v16 = vld [vmem:[%s10003_s5 + $0x168] sm:$0xff]  }
 0xc8b   : > { %6238 = vmatprep.mubr.bf16.mxu1 %v3925_v51  ;;  %v6248_v55 = vpop.f32.mrb[60].mxu0  ;;  %v6647_v51 = vld [vmem:[%s10002_s4 + $0x60] sm:$0xff]  }
 0xc8c   : > { %6239 = vmatmul.mubr.bf16.vlgmr.msra.gmra.mrb[24].mxu1 %v3926_v63  ;;  %v4104_v30 = vpop.f32.mrb[61].mxu0  ;;  %v4121_v60 = vmax.f32 %v6248_v55, 0.0  ;;  %v6646_v63 = vld [vmem:[%s10003_s5 + $0x170] sm:$0xff]  }
 0xc8d   : > { %v6249_v14 = vpop.f32.mrb[62].mxu0  ;;  %6271 = vmatpush3.bf16.msra.mxu1 %v6627_v5  ;;  %6274 = vmatprep.mubr.msk.bf16.mxu1 %vm366_vm0, %v4243_v11  ;;  %v4119_v26 = vmax.f32 %v4104_v30, 0.0  ;;  %v4244_v5 = vld [vmem:[#allocation2 + $0x48] sm:$0xff]  ;;  %v6650_v55 = vld [vmem:[%s10002_s4 + $0x70] sm:$0xff]  }
 0xc8e   : > { %v4122_v10 = vmax.f32 %v6249_v14, 0.0  ;;  %v4107_v7 = vpop.f32.mrb[63].mxu0  ;;  %6272 = vmatprep.subr.bf16.mxu1 %v6629_v31 }
 0xc8f   : > { %v4120_v36 = vmax.f32 %v4107_v7, 0.0 }
 0xc90   : > { %v4124_v50 = vpack.c.bf16 %v4122_v10, %v4121_v60 }
 0xc91   : > { %v4123_v37 = vpack.c.bf16 %v4120_v36, %v4119_v26  ;;  %6273 = vmatpush3.bf16.msra.mxu1 %v6629_v31  ;;  %v6648_v31 = vld [vmem:[%s10003_s5 + $0x178] sm:$0xff]  }
 0xc92   : > { %6278 = vmatprep.subr.bf16.mxu1 %v6632_v52 }
 0xc93   : > { %6266 = vmatprep.mubr.bf16.mxu0 %v4123_v37 }
 0xc94   : > { %6267 = vmatmul.mubr.bf16.vlgmr.msra.gmra.mrb[64].mxu0 %v4124_v50  ;;  %6275 = vmatmul.mubr.msk.bf16.vlgmr.msra.gmra.mrb[28].mxu1 %vm366_vm0, %v4244_v5 }
 0xc95   : > { %6299 = vmatpush3.bf16.msra.mxu0 %v6630_v1  ;;  %6302 = vmatprep.mubr.msk.bf16.mxu0 %vm366_vm0, %v4441_v33  ;;  %v6637_v1 = vld [vmem:[%s10003_s5 + $0x148] sm:$0xff]  }
 0xc96   : > { %6300 = vmatprep.subr.bf16.mxu0 %v6631_v6  ;;  %6279 = vmatpush3.bf16.msra.mxu1 %v6632_v52 }
 0xc97   : > { %6280 = vmatprep.subr.bf16.mxu1 %v6633_v13 }
 0xc99   : > { %6301 = vmatpush3.bf16.msra.mxu0 %v6631_v6 }
 0xc9a   : > { %6281 = vmatpush3.bf16.msra.mxu1 %v6633_v13  ;;  %6306 = vmatprep.subr.bf16.mxu0 %v6635_v39 }
 0xc9b   : > { %6282 = vmatprep.subr.bf16.mxu1 %v6634_v49 }
 0xc9c   : > { %6303 = vmatmul.mubr.msk.bf16.vlgmr.msra.gmra.mrb[68].mxu0 %vm366_vm0, %v4442_v35  ;;  %v6649_v35 = vld [vmem:[%s10002_s4 + $0x68] sm:$0xff]  }
 0xc9d   : > { %6307 = vmatpush3.bf16.msra.mxu0 %v6635_v39 }
 0xc9e   : > { %6283 = vmatpush3.bf16.msra.mxu1 %v6634_v49  ;;  %6308 = vmatprep.subr.bf16.mxu0 %v6637_v1 }
 0xc9f   : > { %6284 = vmatprep.subr.bf16.mxu1 %v6636_v53 }
 0xca1   : > { %6309 = vmatpush3.bf16.msra.mxu0 %v6637_v1 }
 0xca2   : > { %6285 = vmatpush3.bf16.msra.mxu1 %v6636_v53  ;;  %6310 = vmatprep.subr.bf16.mxu0 %v6639_v25 }
 0xca3   : > { %6286 = vmatprep.subr.bf16.mxu1 %v6638_v44 }
 0xca5   : > { %6311 = vmatpush3.bf16.msra.mxu0 %v6639_v25  ;;  %v4639_v25 = vld [vmem:[#allocation2 + $0x60] sm:$0xff] }
 0xca6   : > { %6287 = vmatpush3.bf16.msra.mxu1 %v6638_v44  ;;  %6312 = vmatprep.subr.bf16.mxu0 %v6641_v46 }
 0xca7   : > { %6288 = vmatprep.subr.bf16.mxu1 %v6640_v56 }
 0xca9   : > { %6313 = vmatpush3.bf16.msra.mxu0 %v6641_v46 }
 0xcaa   : > { %6289 = vmatpush3.bf16.msra.mxu1 %v6640_v56  ;;  %6314 = vmatprep.subr.bf16.mxu0 %v6643_v40 }
 0xcab   : > { %6290 = vmatprep.subr.bf16.mxu1 %v6642_v29 }
 0xcad   : > { %6315 = vmatpush3.bf16.msra.mxu0 %v6643_v40 }
 0xcae   : > { %6291 = vmatpush3.bf16.msra.mxu1 %v6642_v29  ;;  %6316 = vmatprep.subr.bf16.mxu0 %v6645_v16 }
 0xcaf   : > { %6292 = vmatprep.subr.bf16.mxu1 %v6644_v32 }
 0xcb1   : > { %6317 = vmatpush3.bf16.msra.mxu0 %v6645_v16 }
 0xcb2   : > { %6293 = vmatpush3.bf16.msra.mxu1 %v6644_v32  ;;  %6318 = vmatprep.subr.bf16.mxu0 %v6646_v63  ;;  %v6652_v32 = vld [vmem:[%s10003_s5 + $0x180] sm:$0xff]  }
 0xcb3   : > { %6326 = vmatprep.subr.bf16.mxu1 %v6647_v51 }
 0xcb5   : > { %6319 = vmatpush3.bf16.msra.mxu0 %v6646_v63 }
 0xcb6   : > { %6320 = vmatprep.subr.bf16.mxu0 %v6648_v31 }
 0xcb9   : > { %6321 = vmatpush3.bf16.msra.mxu0 %v6648_v31 }
 0xcba   : > { %6354 = vmatprep.subr.bf16.mxu0 %v6650_v55 }
 0xd5f   : > { %v6240_v30 = vpop.f32.mrb[24].mxu1 }
 0xd60   : > { %4043 = vst.msk [vmem:[#allocation3 + $0x50] sm:$0xff] %vm366_vm0, %v6240_v30  ;;  %v4026_v11 = vpop.f32.mrb[25].mxu1 }
 0xd61   : > { %4041 = vst.msk [vmem:[#allocation3 + $0x40] sm:$0xff] %vm366_vm0, %v4026_v11  ;;  %v6241_v14 = vpop.f32.mrb[26].mxu1  ;;  %v6651_v11 = vld [vmem:[%s10002_s4 + $0x78] sm:$0xff]  }
 0xd62   : > { %4044 = vst.msk [vmem:[#allocation3 + $0x58] sm:$0xff] %vm366_vm0, %v6241_v14  ;;  %v4029_v60 = vpop.f32.mrb[27].mxu1  ;;  %v6653_v14 = vld [vmem:[%s10003_s5 + $0x188] sm:$0xff]  }
 0xd63   : > { %4042 = vst.msk [vmem:[#allocation3 + $0x48] sm:$0xff] %vm366_vm0, %v4029_v60  ;;  %v4837_v60 = vld [vmem:[#allocation2 + $0x70] sm:$0xff] }
 0xd67   : > { %v6268_v10 = vpop.f32.mrb[64].mxu0  ;;  %v6276_v7 = vpop.f32.mrb[28].mxu1 }
 0xd68   : > { %4241 = vst.msk [vmem:[#allocation3 + $0x70] sm:$0xff] %vm366_vm0, %v6268_v10  ;;  %v4224_v52 = vpop.f32.mrb[65].mxu0  ;;  %v4302_v26 = vpop.f32.mrb[29].mxu1  ;;  %v4319_v37 = vmax.f32 %v6276_v7, 0.0  ;;  %v6655_v10 = vld [vmem:[%s10003_s5 + $0x1c0] sm:$0xff]   ;;  %v6654_v7 = vld [vmem:[%s10003_s5 + $0x190] sm:$0xff]  }
 0xd69   : > { %4239 = vst.msk [vmem:[#allocation3 + $0x60] sm:$0xff] %vm366_vm0, %v4224_v52  ;;  %v6269_v36 = vpop.f32.mrb[66].mxu0  ;;  %v6277_v50 = vpop.f32.mrb[30].mxu1  ;;  %v4317_v33 = vmax.f32 %v4302_v26, 0.0  ;;  %v4838_v52 = vld [vmem:[#allocation2 + $0x78] sm:$0xff] }
 0xd6a   : > { %4242 = vst.msk [vmem:[#allocation3 + $0x78] sm:$0xff] %vm366_vm0, %v6269_v36  ;;  %v4320_v6 = vmax.f32 %v6277_v50, 0.0  ;;  %v4227_v5 = vpop.f32.mrb[67].mxu0  ;;  %v4305_v13 = vpop.f32.mrb[31].mxu1  ;;  %v6656_v26 = vld [vmem:[%s10003_s5 + $0x198] sm:$0xff]   ;;  %v6658_v36 = vld [vmem:[%s10003_s5 + $0x1a0] sm:$0xff]  }
 0xd6b   : > { %4240 = vst.msk [vmem:[#allocation3 + $0x68] sm:$0xff] %vm366_vm0, %v4227_v5  ;;  %v4318_v39 = vmax.f32 %v4305_v13, 0.0  ;;  %v6659_v50 = vld [vmem:[%s10003_s5 + $0x1d0] sm:$0xff]   ;;  %v6663_v13 = vld [vmem:[%s10003_s5 + $0x1e0] sm:$0xff]  }
 0xd6c   : > { %v4322_v49 = vpack.c.bf16 %v4320_v6, %v4319_v37  ;;  %v6660_v37 = vld [vmem:[%s10003_s5 + $0x1a8] sm:$0xff]   ;;  %v6661_v6 = vld [vmem:[%s10003_s5 + $0x1d8] sm:$0xff]   ;;  %v6662_v5 = vld [vmem:[%s10003_s5 + $0x1b0] sm:$0xff]  }
 0xd6d   : > { %v4321_v1 = vpack.c.bf16 %v4318_v39, %v4317_v33  ;;  %v6664_v33 = vld [vmem:[%s10003_s5 + $0x1b8] sm:$0xff]   ;;  %v6665_v39 = vld [vmem:[%s10003_s5 + $0x1e8] sm:$0xff]  }
 0xd6f   : > { %6294 = vmatprep.mubr.bf16.mxu1 %v4321_v1  ;;  %v6304_v53 = vpop.f32.mrb[68].mxu0  ;;  %v6667_v1 = vld [vmem:[%s10003_s5 + $0x1f8] sm:$0xff]  }
 0xd70   : > { %6295 = vmatmul.mubr.bf16.vlgmr.msra.gmra.mrb[32].mxu1 %v4322_v49  ;;  %v4500_v44 = vpop.f32.mrb[69].mxu0  ;;  %v4517_v46 = vmax.f32 %v6304_v53, 0.0  ;;  %v6666_v49 = vld [vmem:[%s10003_s5 + $0x1f0] sm:$0xff]  }
 0xd71   : > { %v6305_v56 = vpop.f32.mrb[70].mxu0  ;;  %6327 = vmatpush3.bf16.msra.mxu1 %v6647_v51  ;;  %6330 = vmatprep.mubr.msk.bf16.mxu1 %vm366_vm0, %v4639_v25  ;;  %v4515_v16 = vmax.f32 %v4500_v44, 0.0  ;;  %v4640_v51 = vld [vmem:[#allocation2 + $0x68] sm:$0xff] }
 0xd72   : > { %v4518_v29 = vmax.f32 %v6305_v56, 0.0  ;;  %v4503_v40 = vpop.f32.mrb[71].mxu0  ;;  %6328 = vmatprep.subr.bf16.mxu1 %v6649_v35 }
 0xd73   : > { %v4516_v63 = vmax.f32 %v4503_v40, 0.0 }
 0xd74   : > { %v4520_v31 = vpack.c.bf16 %v4518_v29, %v4517_v46 }
 0xd75   : > { %v4519_v30 = vpack.c.bf16 %v4516_v63, %v4515_v16  ;;  %6329 = vmatpush3.bf16.msra.mxu1 %v6649_v35 }
 0xd76   : > { %6334 = vmatprep.subr.bf16.mxu1 %v6652_v32 }
 0xd77   : > { %6322 = vmatprep.mubr.bf16.mxu0 %v4519_v30 }
 0xd78   : > { %6323 = vmatmul.mubr.bf16.vlgmr.msra.gmra.mrb[72].mxu0 %v4520_v31  ;;  %6331 = vmatmul.mubr.msk.bf16.vlgmr.msra.gmra.mrb[36].mxu1 %vm366_vm0, %v4640_v51 }
 0xd79   : > { %6355 = vmatpush3.bf16.msra.mxu0 %v6650_v55  ;;  %6358 = vmatprep.mubr.msk.bf16.mxu0 %vm366_vm0, %v4837_v60  ;;  %v6657_v55 = vld [vmem:[%s10003_s5 + $0x1c8] sm:$0xff]  }
 0xd7a   : > { %6356 = vmatprep.subr.bf16.mxu0 %v6651_v11  ;;  %6335 = vmatpush3.bf16.msra.mxu1 %v6652_v32 }
 0xd7b   : > { %6336 = vmatprep.subr.bf16.mxu1 %v6653_v14 }
 0xd7d   : > { %6357 = vmatpush3.bf16.msra.mxu0 %v6651_v11 }
 0xd7e   : > { %6337 = vmatpush3.bf16.msra.mxu1 %v6653_v14  ;;  %6362 = vmatprep.subr.bf16.mxu0 %v6655_v10 }
 0xd7f   : > { %6338 = vmatprep.subr.bf16.mxu1 %v6654_v7 }
 0xd80   : > { %6359 = vmatmul.mubr.msk.bf16.vlgmr.msra.gmra.mrb[76].mxu0 %vm366_vm0, %v4838_v52  ;;  %v5068_v52 = vld [vmem:[#allocation3 + $0x8] sm:$0xff] }
 0xd81   : > { %6363 = vmatpush3.bf16.msra.mxu0 %v6655_v10 }
 0xd82   : > { %6339 = vmatpush3.bf16.msra.mxu1 %v6654_v7  ;;  %6364 = vmatprep.subr.bf16.mxu0 %v6657_v55 }
 0xd83   : > { %6340 = vmatprep.subr.bf16.mxu1 %v6656_v26 }
 0xd85   : > { %6365 = vmatpush3.bf16.msra.mxu0 %v6657_v55 }
 0xd86   : > { %6341 = vmatpush3.bf16.msra.mxu1 %v6656_v26  ;;  %6366 = vmatprep.subr.bf16.mxu0 %v6659_v50 }
 0xd87   : > { %6342 = vmatprep.subr.bf16.mxu1 %v6658_v36 }
 0xd89   : > { %6367 = vmatpush3.bf16.msra.mxu0 %v6659_v50  ;;  %v5067_v50 = vld [vmem:[#allocation3] sm:$0xff] }
 0xd8a   : > { %6343 = vmatpush3.bf16.msra.mxu1 %v6658_v36  ;;  %6368 = vmatprep.subr.bf16.mxu0 %v6661_v6 }
 0xd8b   : > { %6344 = vmatprep.subr.bf16.mxu1 %v6660_v37 }
 0xd8d   : > { %6369 = vmatpush3.bf16.msra.mxu0 %v6661_v6  ;;  %v6392_v6 = vpack.c.bf16 %v5068_v52, %v5067_v50 }
 0xd8e   : > { %6345 = vmatpush3.bf16.msra.mxu1 %v6660_v37  ;;  %6370 = vmatprep.subr.bf16.mxu0 %v6663_v13 }
 0xd8f   : > { %6346 = vmatprep.subr.bf16.mxu1 %v6662_v5 }
 0xd91   : > { %6371 = vmatpush3.bf16.msra.mxu0 %v6663_v13 }
 0xd92   : > { %6347 = vmatpush3.bf16.msra.mxu1 %v6662_v5  ;;  %6372 = vmatprep.subr.bf16.mxu0 %v6665_v39 }
 0xd93   : > { %6348 = vmatprep.subr.bf16.mxu1 %v6664_v33 }
 0xd95   : > { %6373 = vmatpush3.bf16.msra.mxu0 %v6665_v39  ;;  %v5070_v39 = vld [vmem:[#allocation3 + $0x18] sm:$0xff] }
 0xd96   : > { %6349 = vmatpush3.bf16.msra.mxu1 %v6664_v33  ;;  %6374 = vmatprep.subr.bf16.mxu0 %v6666_v49 }
 0xd99   : > { %6375 = vmatpush3.bf16.msra.mxu0 %v6666_v49 }
 0xd9a   : > { %6376 = vmatprep.subr.bf16.mxu0 %v6667_v1 }
 0xd9d   : > { %6377 = vmatpush3.bf16.msra.mxu0 %v6667_v1 }
 0xe43   : > { %v6296_v35 = vpop.f32.mrb[32].mxu1 }
 0xe44   : > { %4439 = vst.msk [vmem:[#allocation3 + $0x90] sm:$0xff] %vm366_vm0, %v6296_v35  ;;  %v4422_v53 = vpop.f32.mrb[33].mxu1 }
 0xe45   : > { %4437 = vst.msk [vmem:[#allocation3 + $0x80] sm:$0xff] %vm366_vm0, %v4422_v53  ;;  %v6297_v44 = vpop.f32.mrb[34].mxu1 }
 0xe46   : > { %4440 = vst.msk [vmem:[#allocation3 + $0x98] sm:$0xff] %vm366_vm0, %v6297_v44  ;;  %v4425_v25 = vpop.f32.mrb[35].mxu1  ;;  %v5069_v44 = vld [vmem:[#allocation3 + $0x10] sm:$0xff] }
 0xe47   : > { %4438 = vst.msk [vmem:[#allocation3 + $0x88] sm:$0xff] %vm366_vm0, %v4425_v25 }
 0xe4b   : > { %v6324_v56 = vpop.f32.mrb[72].mxu0  ;;  %v6332_v46 = vpop.f32.mrb[36].mxu1  ;;  %v5085_v5 = vld [vmem:[#allocation3 + $0x90] sm:$0xff] }
 0xe4c   : > { %4637 = vst.msk [vmem:[#allocation3 + $0xb0] sm:$0xff] %vm366_vm0, %v6324_v56  ;;  %v4620_v29 = vpop.f32.mrb[73].mxu0  ;;  %v4698_v40 = vpop.f32.mrb[37].mxu1  ;;  %v4715_v63 = vmax.f32 %v6332_v46, 0.0  ;;  %v5083_v51 = vld [vmem:[#allocation3 + $0x80] sm:$0xff] }
 0xe4d   : > { %4635 = vst.msk [vmem:[#allocation3 + $0xa0] sm:$0xff] %vm366_vm0, %v4620_v29  ;;  %v6325_v32 = vpop.f32.mrb[74].mxu0  ;;  %v6333_v16 = vpop.f32.mrb[38].mxu1  ;;  %v4713_v60 = vmax.f32 %v4698_v40, 0.0  ;;  %v5086_v36 = vld [vmem:[#allocation3 + $0x98] sm:$0xff]  ;;  %v6396_v40 = vpack.c.bf16 %v5070_v39, %v5069_v44 }
 0xe4e   : > { %4638 = vst.msk [vmem:[#allocation3 + $0xb8] sm:$0xff] %vm366_vm0, %v6325_v32  ;;  %v4716_v31 = vmax.f32 %v6333_v16, 0.0  ;;  %v4623_v30 = vpop.f32.mrb[75].mxu0  ;;  %v4701_v11 = vpop.f32.mrb[39].mxu1  ;;  %v5084_v14 = vld [vmem:[#allocation3 + $0x88] sm:$0xff]  ;;  %v6394_v33 = vpack.c.bf16 %v5086_v36, %v5085_v5 }
 0xe4f   : > { %4636 = vst.msk [vmem:[#allocation3 + $0xa8] sm:$0xff] %vm366_vm0, %v4623_v30  ;;  %v4714_v10 = vmax.f32 %v4701_v11, 0.0  ;;  %v6390_v7 = vpack.c.bf16 %v5084_v14, %v5083_v51  ;;  %v5071_v11 = vld [vmem:[#allocation3 + $0x20] sm:$0xff]  ;;  %v5076_v5 = vld [vmem:[#allocation3 + $0x48] sm:$0xff] }
 0xe50   : > { %v4718_v55 = vpack.c.bf16 %v4716_v31, %v4715_v63  ;;  %v5072_v63 = vld [vmem:[#allocation3 + $0x28] sm:$0xff] }
 0xe51   : > { %v4717_v26 = vpack.c.bf16 %v4714_v10, %v4713_v60  ;;  %6391 = vmatprep.subr.bf16.mxu1 %v6390_v7  ;;  %v5074_v60 = vld [vmem:[#allocation3 + $0x38] sm:$0xff]  ;;  %v5073_v10 = vld [vmem:[#allocation3 + $0x30] sm:$0xff] }
 0xe52   : > { %v6404_v7 = vpack.c.bf16 %v5074_v60, %v5073_v10  ;;  %v5081_v60 = vld [vmem:[#allocation3 + $0x70] sm:$0xff] }
 0xe53   : > { %6350 = vmatprep.mubr.bf16.mxu1 %v4717_v26  ;;  %v6360_v37 = vpop.f32.mrb[76].mxu0  ;;  %v5089_v51 = vld [vmem:[#allocation3 + $0xb0] sm:$0xff] }
 0xe54   : > { %6351 = vmatmul.mubr.bf16.vlgmr.msra.gmra.mrb[40].mxu1 %v4718_v55  ;;  %v4896_v13 = vpop.f32.mrb[77].mxu0  ;;  %v4913_v1 = vmax.f32 %v6360_v37, 0.0  ;;  %v5087_v25 = vld [vmem:[#allocation3 + $0xa0] sm:$0xff] }
 0xe55   : > { %6393 = vmatpush3.bf16.msra.mxu1 %v6392_v6  ;;  %v6361_v49 = vpop.f32.mrb[78].mxu0  ;;  %5163 = vmatprep.mubr.f32.mxu1 %v9445_v48  ;;  %v4911_v46 = vmax.f32 %v4896_v13, 0.0  ;;  %v5090_v30 = vld [vmem:[#allocation3 + $0xb8] sm:$0xff]  ;;  %v6400_v48 = vpack.c.bf16 %v5072_v63, %v5071_v11 }
 0xe56   : > { %v4914_v35 = vmax.f32 %v6361_v49, 0.0  ;;  %6395 = vmatprep.subr.bf16.mxu1 %v6394_v33  ;;  %v4899_v53 = vpop.f32.mrb[79].mxu0  ;;  %v5088_v56 = vld [vmem:[#allocation3 + $0xa8] sm:$0xff]  ;;  %v6402_v14 = vpack.c.bf16 %v5090_v30, %v5089_v51  ;;  %v5079_v30 = vld [vmem:[#allocation3 + $0x60] sm:$0xff] }
 0xe57   : > { %v4912_v29 = vmax.f32 %v4899_v53, 0.0  ;;  %v6398_v32 = vpack.c.bf16 %v5088_v56, %v5087_v25  ;;  %v5078_v56 = vld [vmem:[#allocation3 + $0x58] sm:$0xff] }
 0xe58   : > { %v4916_v16 = vpack.c.bf16 %v4914_v35, %v4913_v1  ;;  %v5075_v35 = vld [vmem:[#allocation3 + $0x40] sm:$0xff] }
 0xe59   : > { %v4915_v31 = vpack.c.bf16 %v4912_v29, %v4911_v46  ;;  %6397 = vmatpush3.bf16.msra.mxu1 %v6396_v40  ;;  %v6408_v53 = vpack.c.bf16 %v5076_v5, %v5075_v35  ;;  %v5077_v46 = vld [vmem:[#allocation3 + $0x50] sm:$0xff]  ;;  %v5080_v40 = vld [vmem:[#allocation3 + $0x68] sm:$0xff] }
 0xe5a   : > { %6399 = vmatprep.subr.bf16.mxu1 %v6398_v32  ;;  %v6412_v29 = vpack.c.bf16 %v5078_v56, %v5077_v46  ;;  %v6416_v11 = vpack.c.bf16 %v5080_v40, %v5079_v30 }
 0xe5b   : > { %6378 = vmatprep.mubr.bf16.mxu0 %v4915_v31 }
 0xe5c   : > { %6379 = vmatmul.mubr.bf16.vlgmr.msra.gmra.mrb[80].mxu0 %v4916_v16 }
 0xe5d   : > { %6401 = vmatpush3.bf16.msra.mxu1 %v6400_v48 }
 0xe5e   : > { %6403 = vmatprep.subr.bf16.mxu1 %v6402_v14  ;;  %v5082_v14 = vld [vmem:[#allocation3 + $0x78] sm:$0xff] }
 0xe5f   : > { %v6420_v10 = vpack.c.bf16 %v5082_v14, %v5081_v60 }
 0xe61   : > { %6405 = vmatpush3.bf16.msra.mxu1 %v6404_v7 }
 0xf27   : > { %v6352_v55 = vpop.f32.mrb[40].mxu1 }
 0xf28   : > { %4835 = vst.msk [vmem:[#allocation3 + $0xd0] sm:$0xff] %vm366_vm0, %v6352_v55  ;;  %v4818_v52 = vpop.f32.mrb[41].mxu1 }
 0xf29   : > { %4833 = vst.msk [vmem:[#allocation3 + $0xc0] sm:$0xff] %vm366_vm0, %v4818_v52  ;;  %v6353_v26 = vpop.f32.mrb[42].mxu1 }
 0xf2a   : > { %4836 = vst.msk [vmem:[#allocation3 + $0xd8] sm:$0xff] %vm366_vm0, %v6353_v26  ;;  %v4821_v36 = vpop.f32.mrb[43].mxu1 }
 0xf2b   : > { %4834 = vst.msk [vmem:[#allocation3 + $0xc8] sm:$0xff] %vm366_vm0, %v4821_v36 }
 0xf2f   : > { %v6380_v50 = vpop.f32.mrb[80].mxu0  ;;  %v5093_v44 = vld [vmem:[#allocation3 + $0xd0] sm:$0xff] }
 0xf30   : > { %5033 = vst.msk [vmem:[#allocation3 + $0xf0] sm:$0xff] %vm366_vm0, %v6380_v50  ;;  %v5016_v37 = vpop.f32.mrb[81].mxu0  ;;  %v5091_v33 = vld [vmem:[#allocation3 + $0xc0] sm:$0xff] }
 0xf31   : > { %5031 = vst.msk [vmem:[#allocation3 + $0xe0] sm:$0xff] %vm366_vm0, %v5016_v37  ;;  %v6381_v6 = vpop.f32.mrb[82].mxu0  ;;  %v5094_v49 = vld [vmem:[#allocation3 + $0xd8] sm:$0xff] }
 0xf32   : > { %5034 = vst.msk [vmem:[#allocation3 + $0xf8] sm:$0xff] %vm366_vm0, %v6381_v6  ;;  %v5019_v13 = vpop.f32.mrb[83].mxu0  ;;  %v5092_v39 = vld [vmem:[#allocation3 + $0xc8] sm:$0xff]  ;;  %v6410_v25 = vpack.c.bf16 %v5094_v49, %v5093_v44 }
 0xf33   : > { %5032 = vst.msk [vmem:[#allocation3 + $0xe8] sm:$0xff] %vm366_vm0, %v5019_v13  ;;  %v6406_v1 = vpack.c.bf16 %v5092_v39, %v5091_v33 }
 0xf35   : > { %6407 = vmatprep.subr.bf16.mxu1 %v6406_v1 }
 0xf36   : > { %6409 = vmatpush3.bf16.msra.mxu1 %v6408_v53 }
 0xf37   : > { %6411 = vmatprep.subr.bf16.mxu1 %v6410_v25  ;;  %v5097_v48 = vld [vmem:[#allocation3 + $0xf0] sm:$0xff] }
 0xf38   : > { %v5095_v32 = vld [vmem:[#allocation3 + $0xe0] sm:$0xff] }
 0xf39   : > { %v5098_v63 = vld [vmem:[#allocation3 + $0xf8] sm:$0xff] }
 0xf3a   : > { %6413 = vmatpush3.bf16.msra.mxu1 %v6412_v29  ;;  %v5096_v16 = vld [vmem:[#allocation3 + $0xe8] sm:$0xff]  ;;  %v6418_v51 = vpack.c.bf16 %v5098_v63, %v5097_v48 }
 0xf3b   : > { %v6414_v31 = vpack.c.bf16 %v5096_v16, %v5095_v32 }
 0xf3d   : > { %6415 = vmatprep.subr.bf16.mxu1 %v6414_v31 }
 0xf3e   : > { %6417 = vmatpush3.bf16.msra.mxu1 %v6416_v11 }
 0xf3f   : > { %6419 = vmatprep.subr.bf16.mxu1 %v6418_v51 }
 0xf42   : > { %6421 = vmatpush3.bf16.msra.mxu1 %v6420_v10 }
 0xf45   : > { %5164 = vmatmul.mubr.f32.vlgmr.msra.gmra.mrb[44].mxu1 %v9449_v9 }
 0xf46   : > { %5168 = vmatprep.mubr.f32.mxu1 %v9453_v17 }
 0xf49   : > { %5169 = vmatmul.mubr.f32.gmra.mrb[46].mxu1 %v9457_v22 }
 0xf4a   : > { %5173 = vmatprep.mubr.f32.mxu1 %v9461_v23 }
 0xf4d   : > { %5174 = vmatmul.mubr.f32.gmra.mrb[48].mxu1 %v9465_v61 }
 0xf4e   : > { %5178 = vmatprep.mubr.f32.mxu1 %v9469_v19 }
 0xf51   : > { %5179 = vmatmul.mubr.f32.gmra.mrb[50].mxu1 %v9473_v21 }
 0xf52   : > { %5183 = vmatprep.mubr.f32.mxu1 %v9477_v27 }
 0xf55   : > { %5184 = vmatmul.mubr.f32.gmra.mrb[52].mxu1 %v9481_v8 }
 0xf56   : > { %5188 = vmatprep.mubr.f32.mxu1 %v9485_v12 }
 0xf59   : > { %5189 = vmatmul.mubr.f32.gmra.mrb[54].mxu1 %v9489_v42 }
 0xf5a   : > { %5193 = vmatprep.mubr.f32.mxu1 %v9493_v62 }
 0xf5d   : > { %5194 = vmatmul.mubr.f32.gmra.mrb[56].mxu1 %v9497_v15 }
 0xf5e   : > { %5198 = vmatprep.mubr.f32.mxu1 %v9501_v38 }
 0xf61   : > { %5199 = vmatmul.mubr.f32.gmra.mrb[58].mxu1 %v9505_v43 }
 0xf62   : > { %5203 = vmatprep.mubr.f32.mxu1 %v9509_v3 }
 0xf65   : > { %5204 = vmatmul.mubr.f32.gmra.mrb[60].mxu1 %v9513_v4 }
 0xf66   : > { %5208 = vmatprep.mubr.f32.mxu1 %v9517_v58 }
 0xf69   : > { %5209 = vmatmul.mubr.f32.gmra.mrb[62].mxu1 %v9521_v20 }
 0xf6a   : > { %5213 = vmatprep.mubr.f32.mxu1 %v9525_v18 }
 0xf6d   : > { %5214 = vmatmul.mubr.f32.gmra.mrb[64].mxu1 %v9529_v41 }
 0xf6e   : > { %5218 = vmatprep.mubr.f32.mxu1 %v9533_v2 }
 0xf71   : > { %5219 = vmatmul.mubr.f32.gmra.mrb[66].mxu1 %v9537_v24 }
 0xf72   : > { %5223 = vmatprep.mubr.f32.mxu1 %v9540_v59 }
 0xf75   : > { %5224 = vmatmul.mubr.f32.gmra.mrb[68].mxu1 %v9543_v47 }
 0xf76   : > { %5228 = vmatprep.mubr.f32.mxu1 %v9546_v45 }
 0xf79   : > { %5229 = vmatmul.mubr.f32.gmra.mrb[70].mxu1 %v9550_v34 }
 0xf7a   : > { %5233 = vmatprep.mubr.f32.mxu1 %v9553_v28 }
 0xf7d   : > { %5234 = vmatmul.mubr.f32.gmra.mrb[72].mxu1 %v9556_v57 }
 0xf7e   : > { %5238 = vmatprep.mubr.f32.mxu1 %v9559_v0 }
 0xf81   : > { %5239 = vmatmul.mubr.f32.gmra.mrb[74].mxu1 %v9562_v54 }
0x1018   : > { %v5982_v9 = vpop.f32.mrb[44].mxu1 }
0x1019   : > { %v5983_v17 = vpop.f32.mrb[45].mxu1 }
0x101a   : > { %v5984_v22 = vadd.f32 %v5983_v17, %v5982_v9 }
0x101c   : > { %5244 = vst.msk [vmem:[%s9961_s15] sm:$0xff] %vm366_vm0, %v5984_v22  ;;  %v5985_v23 = vpop.f32.mrb[46].mxu1 }
0x101d   : > { %v5986_v61 = vpop.f32.mrb[47].mxu1 }
0x101e   : > { %v5987_v19 = vadd.f32 %v5986_v61, %v5985_v23 }
0x1020   : > { %5245 = vst.msk [vmem:[%s9961_s15 + $0x8] sm:$0xff] %vm366_vm0, %v5987_v19  ;;  %v5988_v21 = vpop.f32.mrb[48].mxu1 }
0x1021   : > { %v5989_v27 = vpop.f32.mrb[49].mxu1 }
0x1022   : > { %v5990_v8 = vadd.f32 %v5989_v27, %v5988_v21 }
0x1024   : > { %5246 = vst.msk [vmem:[%s9961_s15 + $0x10] sm:$0xff] %vm366_vm0, %v5990_v8  ;;  %v5991_v12 = vpop.f32.mrb[50].mxu1 }
0x1025   : > { %v5992_v42 = vpop.f32.mrb[51].mxu1 }
0x1026   : > { %v5993_v62 = vadd.f32 %v5992_v42, %v5991_v12 }
0x1028   : > { %5247 = vst.msk [vmem:[%s9961_s15 + $0x18] sm:$0xff] %vm366_vm0, %v5993_v62  ;;  %v5994_v15 = vpop.f32.mrb[52].mxu1 }
0x1029   : > { %v5995_v38 = vpop.f32.mrb[53].mxu1 }
0x102a   : > { %v5996_v43 = vadd.f32 %v5995_v38, %v5994_v15 }
0x102c   : > { %5248 = vst.msk [vmem:[%s9961_s15 + $0x20] sm:$0xff] %vm366_vm0, %v5996_v43  ;;  %v5997_v3 = vpop.f32.mrb[54].mxu1 }
0x102d   : > { %v5998_v4 = vpop.f32.mrb[55].mxu1 }
0x102e   : > { %v5999_v58 = vadd.f32 %v5998_v4, %v5997_v3 }
0x1030   : > { %5249 = vst.msk [vmem:[%s9961_s15 + $0x28] sm:$0xff] %vm366_vm0, %v5999_v58  ;;  %v6000_v20 = vpop.f32.mrb[56].mxu1 }
0x1031   : > { %v6001_v18 = vpop.f32.mrb[57].mxu1 }
0x1032   : > { %v6002_v41 = vadd.f32 %v6001_v18, %v6000_v20 }
0x1034   : > { %5250 = vst.msk [vmem:[%s9961_s15 + $0x30] sm:$0xff] %vm366_vm0, %v6002_v41  ;;  %v6003_v2 = vpop.f32.mrb[58].mxu1 }
0x1035   : > { %v6004_v24 = vpop.f32.mrb[59].mxu1 }
0x1036   : > { %v6005_v59 = vadd.f32 %v6004_v24, %v6003_v2 }
0x1038   : > { %5251 = vst.msk [vmem:[%s9961_s15 + $0x38] sm:$0xff] %vm366_vm0, %v6005_v59  ;;  %v6006_v47 = vpop.f32.mrb[60].mxu1 }
0x1039   : > { %v6007_v45 = vpop.f32.mrb[61].mxu1 }
0x103a   : > { %v6008_v34 = vadd.f32 %v6007_v45, %v6006_v47 }
0x103c   : > { %5252 = vst.msk [vmem:[%s9961_s15 + $0x40] sm:$0xff] %vm366_vm0, %v6008_v34  ;;  %v6009_v28 = vpop.f32.mrb[62].mxu1 }
0x103d   : > { %v6010_v57 = vpop.f32.mrb[63].mxu1 }
0x103e   : > { %v6011_v0 = vadd.f32 %v6010_v57, %v6009_v28 }
0x1040   : > { %5253 = vst.msk [vmem:[%s9961_s15 + $0x48] sm:$0xff] %vm366_vm0, %v6011_v0  ;;  %v6012_v54 = vpop.f32.mrb[64].mxu1 }
0x1041   : > { %v6013_v7 = vpop.f32.mrb[65].mxu1 }
0x1042   : > { %v6014_v55 = vadd.f32 %v6013_v7, %v6012_v54 }
0x1044   : > { %5254 = vst.msk [vmem:[%s9961_s15 + $0x50] sm:$0xff] %vm366_vm0, %v6014_v55  ;;  %v6015_v52 = vpop.f32.mrb[66].mxu1 }
0x1045   : > { %v6016_v26 = vpop.f32.mrb[67].mxu1 }
0x1046   : > { %v6017_v36 = vadd.f32 %v6016_v26, %v6015_v52 }
0x1048   : > { %5255 = vst.msk [vmem:[%s9961_s15 + $0x58] sm:$0xff] %vm366_vm0, %v6017_v36  ;;  %v6018_v50 = vpop.f32.mrb[68].mxu1 }
0x1049   : > { %v6019_v37 = vpop.f32.mrb[69].mxu1 }
0x104a   : > { %v6020_v6 = vadd.f32 %v6019_v37, %v6018_v50 }
0x104c   : > { %5256 = vst.msk [vmem:[%s9961_s15 + $0x60] sm:$0xff] %vm366_vm0, %v6020_v6  ;;  %v6021_v5 = vpop.f32.mrb[70].mxu1 }
0x104d   : > { %v6022_v13 = vpop.f32.mrb[71].mxu1 }
0x104e   : > { %v6023_v33 = vadd.f32 %v6022_v13, %v6021_v5 }
0x1050   : > { %5257 = vst.msk [vmem:[%s9961_s15 + $0x68] sm:$0xff] %vm366_vm0, %v6023_v33  ;;  %v6024_v39 = vpop.f32.mrb[72].mxu1 }
0x1051   : > { %v6025_v49 = vpop.f32.mrb[73].mxu1 }
0x1052   : > { %v6026_v1 = vadd.f32 %v6025_v49, %v6024_v39 }
0x1054   : > { %5258 = vst.msk [vmem:[%s9961_s15 + $0x70] sm:$0xff] %vm366_vm0, %v6026_v1  ;;  %v6027_v35 = vpop.f32.mrb[74].mxu1 }
0x1055   : > { %v6028_v53 = vpop.f32.mrb[75].mxu1 }
0x1056   : > { %v6029_v44 = vadd.f32 %v6028_v53, %v6027_v35 }
0x1058   : > { %5259 = vst.msk [vmem:[%s9961_s15 + $0x78] sm:$0xff] %vm366_vm0, %v6029_v44 }
0x1059 PF: > { %s18_s24 = sadd.s32 1, %s6770_s24  }
0x105a   : > { %p15_p5 = scmp.ge.s32.totalorder %s18_s24, 4  }
0x105c   :  { %17 = sbr.rel (!%p15_p5) target bundleno = 1 (0x1), region = 103 }

</bundles_post_ra>
